<compile_context>
chip_gen: v7x
topology: tpu7x:2x2x1
jax: 0.10.0
libtpu: 0.0.40
codegen_flags: <defaults>
</compile_context>

<pallas_src>
import functools

import jax
import jax.numpy as jnp
import numpy as np
from jax import lax
from jax.experimental import pallas as pl
from jax.experimental.pallas import tpu as pltpu


def mqa_flash_kernel(q_ref, k_ref, v_ref,
                     wq_ref, bq_ref, wk_ref, bk_ref,
                     wv_ref, bv_ref, wo_ref, bo_ref,
                     out_ref,
                     qs_ref, m_ref, l_ref, acc_ref,
                     *, num_heads, d_k, tq):
    kv = pl.program_id(2)
    last_kv = pl.num_programs(2) - 1
    inv_scale = 1.0 / (d_k ** 0.5)

    @pl.when(kv == 0)
    def _init():
        # Project the Q tile once per (batch, q-tile).  Fold the 1/sqrt(d_k)
        # scale into the small (TQ, D) tensor, then stack heads along rows so
        # every attention matmul below is a single full-width MXU op.
        q = q_ref[0]                                                     # (TQ, D) bf16
        qp = jnp.dot(q, wq_ref[...], preferred_element_type=jnp.float32) + bq_ref[...]
        qp = qp * inv_scale
        for h in range(num_heads):                                       # static unroll, once per q-tile
            qs_ref[h * tq:(h + 1) * tq, :] = (
                qp[:, h * d_k:(h + 1) * d_k].astype(jnp.bfloat16))
        m_ref[...] = jnp.full_like(m_ref, -jnp.inf)
        l_ref[...] = jnp.zeros_like(l_ref)
        acc_ref[...] = jnp.zeros_like(acc_ref)

    # Shared K / V projections for this Sk tile (one KV head for all Q heads).
    kp = jnp.dot(k_ref[0], wk_ref[...], preferred_element_type=jnp.float32) + bk_ref[...]
    vp = jnp.dot(v_ref[0], wv_ref[...], preferred_element_type=jnp.float32) + bv_ref[...]

    # Scores for all heads at once: (H*TQ, d_k) . (TK, d_k)^T -> (H*TQ, TK).
    s = lax.dot_general(qs_ref[...], kp.astype(jnp.bfloat16),
                        (((1,), (1,)), ((), ())),
                        preferred_element_type=jnp.float32)
    # TODO(synk): optional `mask` argument of the reference forward is not
    # plumbed through; this implements the mask=None path (a mask tile would be
    # added to `s` here, before the online-softmax update).

    # Online (flash) softmax update; statistics in f32.
    m_prev = m_ref[...]
    m_new = jnp.maximum(m_prev, jnp.max(s, axis=-1, keepdims=True))
    alpha = jnp.exp(m_prev - m_new)
    p = jnp.exp(s - m_new)
    l_ref[...] = alpha * l_ref[...] + jnp.sum(p, axis=-1, keepdims=True)
    acc_ref[...] = alpha * acc_ref[...] + jnp.dot(
        p.astype(jnp.bfloat16), vp.astype(jnp.bfloat16),
        preferred_element_type=jnp.float32)
    m_ref[...] = m_new

    @pl.when(kv == last_kv)
    def _finalize():
        # Exact f32 normalization: runs once per q-tile, so accuracy > the
        # negligible cost of a broadcast divide here.
        ctx = acc_ref[...] / l_ref[...]                                  # (H*TQ, d_k)
        # (H*TQ, d_k) -> (TQ, H*d_k) == transpose(1,2).view(...) of the reference;
        # done once per q-tile on 128-aligned lane blocks.
        ctx = jnp.concatenate(
            [ctx[h * tq:(h + 1) * tq, :] for h in range(num_heads)], axis=-1)
        out = jnp.dot(ctx.astype(jnp.bfloat16), wo_ref[...],
                      preferred_element_type=jnp.float32) + bo_ref[...]
        out_ref[0] = out.astype(out_ref.dtype)


def multi_query_attention(Q, K, V, params, num_heads, *, tq=128, tk=128):
    """Q,K,V: (B, S, d_model) float32. params: dict of (in,out) weights + (1,out) biases."""
    B, Sq, D = Q.shape
    Sk = K.shape[1]
    d_k = D // num_heads
    tq = min(tq, Sq)
    tk = min(tk, Sk)
    assert Sq % tq == 0 and Sk % tk == 0, "demo requires tile-aligned sequence lengths"
    # TODO(synk): pad Sq/Sk/D to (8,128)-aligned tiles to support arbitrary shapes.

    # bf16 operands over HBM / on the MXU; accumulation stays f32 in-kernel.
    to_bf16 = lambda x: x.astype(jnp.bfloat16)
    Qb, Kb, Vb = to_bf16(Q), to_bf16(K), to_bf16(V)
    wq_b, wk_b, wv_b, wo_b = map(to_bf16, (params["wq_t"], params["wk_t"],
                                           params["wv_t"], params["wo_t"]))
    bq, bk, bv, bo = params["bq"], params["bk"], params["bv"], params["bo"]

    kernel = functools.partial(mqa_flash_kernel, num_heads=num_heads, d_k=d_k, tq=tq)

    def fixed(shape):
        # Constant block index -> the pipeline DMAs this operand once and
        # keeps it resident instead of re-fetching every grid step.
        return pl.BlockSpec(shape, lambda b, qi, kv: (0,) * len(shape))

    grid = (B, Sq // tq, Sk // tk)

    return pl.pallas_call(
        kernel,
        out_shape=jax.ShapeDtypeStruct((B, Sq, D), jnp.float32),
        grid=grid,
        in_specs=[
            pl.BlockSpec((1, tq, D), lambda b, qi, kv: (b, qi, 0)),   # Q tile
            pl.BlockSpec((1, tk, D), lambda b, qi, kv: (b, kv, 0)),   # K tile
            pl.BlockSpec((1, tk, D), lambda b, qi, kv: (b, kv, 0)),   # V tile
            fixed(wq_b.shape), fixed(bq.shape),
            fixed(wk_b.shape), fixed(bk.shape),
            fixed(wv_b.shape), fixed(bv.shape),
            fixed(wo_b.shape), fixed(bo.shape),
        ],
        out_specs=pl.BlockSpec((1, tq, D), lambda b, qi, kv: (b, qi, 0)),
        scratch_shapes=[
            pltpu.VMEM((num_heads * tq, d_k), jnp.bfloat16),   # head-stacked, scaled Q
            pltpu.VMEM((num_heads * tq, 1), jnp.float32),      # running max
            pltpu.VMEM((num_heads * tq, 1), jnp.float32),      # running denominator
            pltpu.VMEM((num_heads * tq, d_k), jnp.float32),    # output accumulator
        ],
        compiler_params=pltpu.CompilerParams(
            dimension_semantics=("parallel", "parallel", "arbitrary"),
            vmem_limit_bytes=32 * 1024 * 1024),
    )(Qb, Kb, Vb, wq_b, bq, wk_b, bk, wv_b, bv, wo_b, bo)


def reference_mqa_f32(Q, K, V, params, num_heads):
    """Pure-JAX f32 re-implementation of the PyTorch forward (mask=None)."""
    B, Sq, D = Q.shape
    d_k = D // num_heads
    qp = Q @ params["wq_t"] + params["bq"]
    kp = K @ params["wk_t"] + params["bk"]
    vp = V @ params["wv_t"] + params["bv"]
    qh = qp.reshape(B, Sq, num_heads, d_k).transpose(0, 2, 1, 3)
    scores = jnp.einsum("bhqd,bkd->bhqk", qh, kp) / (d_k ** 0.5)
    attn = jax.nn.softmax(scores, axis=-1)
    out = jnp.einsum("bhqk,bkd->bhqd", attn, vp)
    out = out.transpose(0, 2, 1, 3).reshape(B, Sq, D)
    return out @ params["wo_t"] + params["bo"]


def reference_mqa_mixed(Q, K, V, params, num_heads):
    """Same forward with the kernel's mixed-precision policy (bf16 MXU operands,
    f32 accumulation, normalize after PV) for the numerical cross-check."""
    B, Sq, D = Q.shape
    d_k = D // num_heads
    bf, f32 = jnp.bfloat16, jnp.float32
    qp = jnp.dot(Q.astype(bf), params["wq_t"].astype(bf),
                 preferred_element_type=f32) + params["bq"]
    kp = jnp.dot(K.astype(bf), params["wk_t"].astype(bf),
                 preferred_element_type=f32) + params["bk"]
    vp = jnp.dot(V.astype(bf), params["wv_t"].astype(bf),
                 preferred_element_type=f32) + params["bv"]
    qp = (qp * (1.0 / (d_k ** 0.5))).astype(bf)
    qh = qp.reshape(B, Sq, num_heads, d_k).transpose(0, 2, 1, 3)       # (B,H,Sq,d_k)
    s = jnp.einsum("bhqd,bkd->bhqk", qh, kp.astype(bf),
                   preferred_element_type=f32)
    m = jnp.max(s, axis=-1, keepdims=True)
    p = jnp.exp(s - m)
    l = jnp.sum(p, axis=-1, keepdims=True)
    o = jnp.einsum("bhqk,bkd->bhqd", p.astype(bf), vp.astype(bf),
                   preferred_element_type=f32) / l
    o = o.transpose(0, 2, 1, 3).reshape(B, Sq, D)
    return jnp.dot(o.astype(bf), params["wo_t"].astype(bf),
                   preferred_element_type=f32) + params["bo"]


def make_params(key, d_model, num_heads):
    d_k = d_model // num_heads
    ks = jax.random.split(key, 8)
    scale = 0.1

    def lin(kw, kb, in_f, out_f):
        w = scale * jax.random.normal(kw, (out_f, in_f), jnp.float32)  # nn.Linear layout
        b = scale * jax.random.normal(kb, (out_f,), jnp.float32)
        return w.T, b.reshape(1, out_f)   # pre-transposed weight, 2-D bias for TPU

    wq_t, bq = lin(ks[0], ks[1], d_model, d_model)
    wk_t, bk = lin(ks[2], ks[3], d_model, d_k)
    wv_t, bv = lin(ks[4], ks[5], d_model, d_k)
    wo_t, bo = lin(ks[6], ks[7], d_model, d_model)
    return dict(wq_t=wq_t, bq=bq, wk_t=wk_t, bk=bk,
                wv_t=wv_t, bv=bv, wo_t=wo_t, bo=bo)


if __name__ == "__main__":
    # Small but lane-dense demo: d_k = 128, D = 256, seq = 256 -> grid (2, 2, 2),
    # every block's last dim is a multiple of 128 and the Sk axis is tiled.
    d_model, num_heads = 256, 2
    B, Sq, Sk = 2, 256, 256

    key = jax.random.PRNGKey(0)
    k_q, k_k, k_v, k_p = jax.random.split(key, 4)
    Q = jax.random.normal(k_q, (B, Sq, d_model), jnp.float32)
    K = jax.random.normal(k_k, (B, Sk, d_model), jnp.float32)
    V = jax.random.normal(k_v, (B, Sk, d_model), jnp.float32)
    params = make_params(k_p, d_model, num_heads)

    out = multi_query_attention(Q, K, V, params, num_heads)
    out = jax.block_until_ready(out)
    out_np = np.asarray(out)

    # Cross-check vs. a reference with the same bf16-operand / f32-accumulate
    # policy.  The flash (online) softmax + bf16 probability quantization can
    # legitimately differ from the single-pass reference by O(1e-2) on O(1)
    # outputs, so: elementwise bound 5e-2 plus a tight mean-|error| bound.
    ref_mixed = np.asarray(reference_mqa_mixed(Q, K, V, params, num_heads))
    np.testing.assert_allclose(out_np, ref_mixed, rtol=5e-2, atol=5e-2)
    assert float(np.mean(np.abs(out_np - ref_mixed))) < 1e-2, "mean error vs mixed ref too large"

    # Loose sanity check vs. the full-precision reference (gap = bf16 MXU policy).
    ref_f32 = np.asarray(reference_mqa_f32(Q, K, V, params, num_heads))
    np.testing.assert_allclose(out_np, ref_f32, rtol=2e-1, atol=2e-1)

    print("KERNEL_OK")
</pallas_src>

<mosaic_0001>
module attributes {stable_mosaic.version = 11 : i64} {
  func.func @mqa_flash_kernel(%arg0: i32, %arg1: i32, %arg2: i32, %arg3: memref<1x128x256xbf16, #tpu.memory_space<vmem>>, %arg4: memref<1x128x256xbf16, #tpu.memory_space<vmem>>, %arg5: memref<1x128x256xbf16, #tpu.memory_space<vmem>>, %arg6: memref<256x256xbf16, #tpu.memory_space<vmem>>, %arg7: memref<1x256xf32, #tpu.memory_space<vmem>>, %arg8: memref<256x128xbf16, #tpu.memory_space<vmem>>, %arg9: memref<1x128xf32, #tpu.memory_space<vmem>>, %arg10: memref<256x128xbf16, #tpu.memory_space<vmem>>, %arg11: memref<1x128xf32, #tpu.memory_space<vmem>>, %arg12: memref<256x256xbf16, #tpu.memory_space<vmem>>, %arg13: memref<1x256xf32, #tpu.memory_space<vmem>>, %arg14: memref<1x128x256xf32, #tpu.memory_space<vmem>>, %arg15: memref<256x128xbf16, #tpu.memory_space<vmem>>, %arg16: memref<256x1xf32, #tpu.memory_space<vmem>>, %arg17: memref<256x1xf32, #tpu.memory_space<vmem>>, %arg18: memref<256x128xf32, #tpu.memory_space<vmem>>) attributes {dimension_semantics = [#tpu.dimension_semantics<parallel>, #tpu.dimension_semantics<parallel>, #tpu.dimension_semantics<arbitrary>], iteration_bounds = array<i64: 2, 2, 2>, scalar_prefetch = 0 : i64, scratch_operands = 4 : i64, tpu.core_type = #tpu.core_type<tc>, window_params = [{transform_indices = @transform_0, window_bounds = array<i64: 1, 128, 256>}, {transform_indices = @transform_1, window_bounds = array<i64: 1, 128, 256>}, {transform_indices = @transform_2, window_bounds = array<i64: 1, 128, 256>}, {pipeline_mode = #tpu.pipeline_mode<synchronous>, transform_indices = @transform_3, window_bounds = array<i64: 256, 256>}, {pipeline_mode = #tpu.pipeline_mode<synchronous>, transform_indices = @transform_4, window_bounds = array<i64: 1, 256>}, {pipeline_mode = #tpu.pipeline_mode<synchronous>, transform_indices = @transform_5, window_bounds = array<i64: 256, 128>}, {pipeline_mode = #tpu.pipeline_mode<synchronous>, transform_indices = @transform_6, window_bounds = array<i64: 1, 128>}, {pipeline_mode = #tpu.pipeline_mode<synchronous>, transform_indices = @transform_7, window_bounds = array<i64: 256, 128>}, {pipeline_mode = #tpu.pipeline_mode<synchronous>, transform_indices = @transform_8, window_bounds = array<i64: 1, 128>}, {pipeline_mode = #tpu.pipeline_mode<synchronous>, transform_indices = @transform_9, window_bounds = array<i64: 256, 256>}, {pipeline_mode = #tpu.pipeline_mode<synchronous>, transform_indices = @transform_10, window_bounds = array<i64: 1, 256>}, {transform_indices = @transform_11, window_bounds = array<i64: 1, 128, 256>}]} {
    %c0_i32 = arith.constant 0 : i32
    %0 = arith.cmpi eq, %arg2, %c0_i32 : i32
    %1 = arith.extui %0 : i1 to i32
    %c0_i32_0 = arith.constant 0 : i32
    %2 = arith.cmpi ne, %1, %c0_i32_0 : i32
    scf.if %2 {
      %c0_34 = arith.constant 0 : index
      %c0_35 = arith.constant 0 : index
      %c0_36 = arith.constant 0 : index
      %47 = vector.load %arg3[%c0_34, %c0_35, %c0_36] : memref<1x128x256xbf16, #tpu.memory_space<vmem>>, vector<1x128x256xbf16>
      %48 = vector.shape_cast %47 : vector<1x128x256xbf16> to vector<128x256xbf16>
      %c0_37 = arith.constant 0 : index
      %c0_38 = arith.constant 0 : index
      %49 = vector.load %arg6[%c0_37, %c0_38] : memref<256x256xbf16, #tpu.memory_space<vmem>>, vector<256x256xbf16>
      %cst_39 = arith.constant dense<0.000000e+00> : vector<128x256xf32>
      %50 = tpu.matmul %48, %49, %cst_39 {dimension_numbers = #tpu.dot_dimension_numbers<[1], [0], [0], [1], [0, 0, 1, 1], [], []>} : vector<128x256xbf16>, vector<256x256xbf16>, vector<128x256xf32> -> vector<128x256xf32>
      %c0_40 = arith.constant 0 : index
      %c0_41 = arith.constant 0 : index
      %51 = vector.load %arg7[%c0_40, %c0_41] : memref<1x256xf32, #tpu.memory_space<vmem>>, vector<1x256xf32>
      %52 = vector.broadcast %51 : vector<1x256xf32> to vector<128x256xf32>
      %53 = arith.addf %50, %52 : vector<128x256xf32>
      %cst_42 = arith.constant 0.0883883461 : f32
      %54 = vector.broadcast %cst_42 : f32 to vector<128x256xf32>
      %55 = arith.mulf %53, %54 : vector<128x256xf32>
      %56 = vector.extract_strided_slice %55 {offsets = [0, 0], sizes = [128, 128], strides = [1, 1]} : vector<128x256xf32> to vector<128x128xf32>
      %57 = arith.truncf %56 : vector<128x128xf32> to vector<128x128xbf16>
      %c0_43 = arith.constant 0 : index
      %c0_44 = arith.constant 0 : index
      %58 = vector.load %arg15[%c0_43, %c0_44] : memref<256x128xbf16, #tpu.memory_space<vmem>>, vector<128x128xbf16>
      tpu.vector_store %arg15[%c0_43, %c0_44], %57 {strides = array<i32>} : memref<256x128xbf16, #tpu.memory_space<vmem>>, vector<128x128xbf16>,
      %59 = vector.extract_strided_slice %55 {offsets = [0, 128], sizes = [128, 128], strides = [1, 1]} : vector<128x256xf32> to vector<128x128xf32>
      %60 = arith.truncf %59 : vector<128x128xf32> to vector<128x128xbf16>
      %c128 = arith.constant 128 : index
      %c0_45 = arith.constant 0 : index
      %61 = vector.load %arg15[%c128, %c0_45] : memref<256x128xbf16, #tpu.memory_space<vmem>>, vector<128x128xbf16>
      tpu.vector_store %arg15[%c128, %c0_45], %60 {strides = array<i32>} : memref<256x128xbf16, #tpu.memory_space<vmem>>, vector<128x128xbf16>,
      %cst_46 = arith.constant 0xFF800000 : f32
      %62 = vector.broadcast %cst_46 : f32 to vector<256x1xf32>
      %c0_47 = arith.constant 0 : index
      %c0_48 = arith.constant 0 : index
      %63 = vector.load %arg16[%c0_47, %c0_48] : memref<256x1xf32, #tpu.memory_space<vmem>>, vector<256x1xf32>
      tpu.vector_store %arg16[%c0_47, %c0_48], %62 {strides = array<i32>} : memref<256x1xf32, #tpu.memory_space<vmem>>, vector<256x1xf32>,
      %cst_49 = arith.constant 0.000000e+00 : f32
      %64 = vector.broadcast %cst_49 : f32 to vector<256x1xf32>
      %c0_50 = arith.constant 0 : index
      %c0_51 = arith.constant 0 : index
      %65 = vector.load %arg17[%c0_50, %c0_51] : memref<256x1xf32, #tpu.memory_space<vmem>>, vector<256x1xf32>
      tpu.vector_store %arg17[%c0_50, %c0_51], %64 {strides = array<i32>} : memref<256x1xf32, #tpu.memory_space<vmem>>, vector<256x1xf32>,
      %cst_52 = arith.constant 0.000000e+00 : f32
      %66 = vector.broadcast %cst_52 : f32 to vector<256x128xf32>
      %c0_53 = arith.constant 0 : index
      %c0_54 = arith.constant 0 : index
      %67 = vector.load %arg18[%c0_53, %c0_54] : memref<256x128xf32, #tpu.memory_space<vmem>>, vector<256x128xf32>
      tpu.vector_store %arg18[%c0_53, %c0_54], %66 {strides = array<i32>} : memref<256x128xf32, #tpu.memory_space<vmem>>, vector<256x128xf32>,
    } else {
    }
    %c0 = arith.constant 0 : index
    %c0_1 = arith.constant 0 : index
    %c0_2 = arith.constant 0 : index
    %3 = vector.load %arg4[%c0, %c0_1, %c0_2] : memref<1x128x256xbf16, #tpu.memory_space<vmem>>, vector<1x128x256xbf16>
    %4 = vector.shape_cast %3 : vector<1x128x256xbf16> to vector<128x256xbf16>
    %c0_3 = arith.constant 0 : index
    %c0_4 = arith.constant 0 : index
    %5 = vector.load %arg8[%c0_3, %c0_4] : memref<256x128xbf16, #tpu.memory_space<vmem>>, vector<256x128xbf16>
    %cst = arith.constant dense<0.000000e+00> : vector<128x128xf32>
    %6 = tpu.matmul %4, %5, %cst {dimension_numbers = #tpu.dot_dimension_numbers<[1], [0], [0], [1], [0, 0, 1, 1], [], []>} : vector<128x256xbf16>, vector<256x128xbf16>, vector<128x128xf32> -> vector<128x128xf32>
    %c0_5 = arith.constant 0 : index
    %c0_6 = arith.constant 0 : index
    %7 = vector.load %arg9[%c0_5, %c0_6] : memref<1x128xf32, #tpu.memory_space<vmem>>, vector<1x128xf32>
    %8 = vector.broadcast %7 : vector<1x128xf32> to vector<128x128xf32>
    %9 = arith.addf %6, %8 : vector<128x128xf32>
    %c0_7 = arith.constant 0 : index
    %c0_8 = arith.constant 0 : index
    %c0_9 = arith.constant 0 : index
    %10 = vector.load %arg5[%c0_7, %c0_8, %c0_9] : memref<1x128x256xbf16, #tpu.memory_space<vmem>>, vector<1x128x256xbf16>
    %11 = vector.shape_cast %10 : vector<1x128x256xbf16> to vector<128x256xbf16>
    %c0_10 = arith.constant 0 : index
    %c0_11 = arith.constant 0 : index
    %12 = vector.load %arg10[%c0_10, %c0_11] : memref<256x128xbf16, #tpu.memory_space<vmem>>, vector<256x128xbf16>
    %cst_12 = arith.constant dense<0.000000e+00> : vector<128x128xf32>
    %13 = tpu.matmul %11, %12, %cst_12 {dimension_numbers = #tpu.dot_dimension_numbers<[1], [0], [0], [1], [0, 0, 1, 1], [], []>} : vector<128x256xbf16>, vector<256x128xbf16>, vector<128x128xf32> -> vector<128x128xf32>
    %c0_13 = arith.constant 0 : index
    %c0_14 = arith.constant 0 : index
    %14 = vector.load %arg11[%c0_13, %c0_14] : memref<1x128xf32, #tpu.memory_space<vmem>>, vector<1x128xf32>
    %15 = vector.broadcast %14 : vector<1x128xf32> to vector<128x128xf32>
    %16 = arith.addf %13, %15 : vector<128x128xf32>
    %c0_15 = arith.constant 0 : index
    %c0_16 = arith.constant 0 : index
    %17 = vector.load %arg15[%c0_15, %c0_16] : memref<256x128xbf16, #tpu.memory_space<vmem>>, vector<256x128xbf16>
    %18 = arith.truncf %9 : vector<128x128xf32> to vector<128x128xbf16>
    %cst_17 = arith.constant dense<0.000000e+00> : vector<256x128xf32>
    %19 = tpu.matmul %17, %18, %cst_17 {dimension_numbers = #tpu.dot_dimension_numbers<[1], [1], [0], [0], [0, 0, 1, 0], [], []>} : vector<256x128xbf16>, vector<128x128xbf16>, vector<256x128xf32> -> vector<256x128xf32>
    %c0_18 = arith.constant 0 : index
    %c0_19 = arith.constant 0 : index
    %20 = vector.load %arg16[%c0_18, %c0_19] : memref<256x1xf32, #tpu.memory_space<vmem>>, vector<256x1xf32>
    %cst_20 = arith.constant dense<0xFF800000> : vector<256xf32>
    %21 = vector.multi_reduction <maximumf>, %19, %cst_20 [1] : vector<256x128xf32> to vector<256xf32>
    %22 = vector.shape_cast %21 : vector<256xf32> to vector<256x1xf32>
    %23 = arith.maximumf %20, %22 : vector<256x1xf32>
    %24 = arith.subf %20, %23 : vector<256x1xf32>
    %25 = math.exp %24 : vector<256x1xf32>
    %26 = vector.broadcast %23 : vector<256x1xf32> to vector<256x128xf32>
    %27 = arith.subf %19, %26 : vector<256x128xf32>
    %28 = math.exp %27 : vector<256x128xf32>
    %c0_21 = arith.constant 0 : index
    %c0_22 = arith.constant 0 : index
    %29 = vector.load %arg17[%c0_21, %c0_22] : memref<256x1xf32, #tpu.memory_space<vmem>>, vector<256x1xf32>
    %30 = arith.mulf %25, %29 : vector<256x1xf32>
    %cst_23 = arith.constant dense<0.000000e+00> : vector<256xf32>
    %31 = vector.multi_reduction <add>, %28, %cst_23 [1] : vector<256x128xf32> to vector<256xf32>
    %32 = vector.shape_cast %31 : vector<256xf32> to vector<256x1xf32>
    %33 = arith.addf %30, %32 : vector<256x1xf32>
    %c0_24 = arith.constant 0 : index
    %c0_25 = arith.constant 0 : index
    %34 = vector.load %arg17[%c0_24, %c0_25] : memref<256x1xf32, #tpu.memory_space<vmem>>, vector<256x1xf32>
    tpu.vector_store %arg17[%c0_24, %c0_25], %33 {strides = array<i32>} : memref<256x1xf32, #tpu.memory_space<vmem>>, vector<256x1xf32>,
    %c0_26 = arith.constant 0 : index
    %c0_27 = arith.constant 0 : index
    %35 = vector.load %arg18[%c0_26, %c0_27] : memref<256x128xf32, #tpu.memory_space<vmem>>, vector<256x128xf32>
    %36 = vector.broadcast %25 : vector<256x1xf32> to vector<256x128xf32>
    %37 = arith.mulf %36, %35 : vector<256x128xf32>
    %38 = arith.truncf %28 : vector<256x128xf32> to vector<256x128xbf16>
    %39 = arith.truncf %16 : vector<128x128xf32> to vector<128x128xbf16>
    %cst_28 = arith.constant dense<0.000000e+00> : vector<256x128xf32>
    %40 = tpu.matmul %38, %39, %cst_28 {dimension_numbers = #tpu.dot_dimension_numbers<[1], [0], [0], [1], [0, 0, 1, 1], [], []>} : vector<256x128xbf16>, vector<128x128xbf16>, vector<256x128xf32> -> vector<256x128xf32>
    %41 = arith.addf %37, %40 : vector<256x128xf32>
    %c0_29 = arith.constant 0 : index
    %c0_30 = arith.constant 0 : index
    %42 = vector.load %arg18[%c0_29, %c0_30] : memref<256x128xf32, #tpu.memory_space<vmem>>, vector<256x128xf32>
    tpu.vector_store %arg18[%c0_29, %c0_30], %41 {strides = array<i32>} : memref<256x128xf32, #tpu.memory_space<vmem>>, vector<256x128xf32>,
    %c0_31 = arith.constant 0 : index
    %c0_32 = arith.constant 0 : index
    %43 = vector.load %arg16[%c0_31, %c0_32] : memref<256x1xf32, #tpu.memory_space<vmem>>, vector<256x1xf32>
    tpu.vector_store %arg16[%c0_31, %c0_32], %23 {strides = array<i32>} : memref<256x1xf32, #tpu.memory_space<vmem>>, vector<256x1xf32>,
    %c1_i32 = arith.constant 1 : i32
    %44 = arith.cmpi eq, %arg2, %c1_i32 : i32
    %45 = arith.extui %44 : i1 to i32
    %c0_i32_33 = arith.constant 0 : i32
    %46 = arith.cmpi ne, %45, %c0_i32_33 : i32
    scf.if %46 {
      %c0_34 = arith.constant 0 : index
      %c0_35 = arith.constant 0 : index
      %47 = vector.load %arg18[%c0_34, %c0_35] : memref<256x128xf32, #tpu.memory_space<vmem>>, vector<256x128xf32>
      %c0_36 = arith.constant 0 : index
      %c0_37 = arith.constant 0 : index
      %48 = vector.load %arg17[%c0_36, %c0_37] : memref<256x1xf32, #tpu.memory_space<vmem>>, vector<256x1xf32>
      %49 = vector.broadcast %48 : vector<256x1xf32> to vector<256x128xf32>
      %50 = arith.divf %47, %49 : vector<256x128xf32>
      %51 = vector.extract_strided_slice %50 {offsets = [0, 0], sizes = [128, 128], strides = [1, 1]} : vector<256x128xf32> to vector<128x128xf32>
      %52 = vector.extract_strided_slice %50 {offsets = [128, 0], sizes = [128, 128], strides = [1, 1]} : vector<256x128xf32> to vector<128x128xf32>
      %53 = tpu.concatenate %51, %52 in 1 : vector<128x128xf32>, vector<128x128xf32> -> vector<128x256xf32>
      %54 = arith.truncf %53 : vector<128x256xf32> to vector<128x256xbf16>
      %c0_38 = arith.constant 0 : index
      %c0_39 = arith.constant 0 : index
      %55 = vector.load %arg12[%c0_38, %c0_39] : memref<256x256xbf16, #tpu.memory_space<vmem>>, vector<256x256xbf16>
      %cst_40 = arith.constant dense<0.000000e+00> : vector<128x256xf32>
      %56 = tpu.matmul %54, %55, %cst_40 {dimension_numbers = #tpu.dot_dimension_numbers<[1], [0], [0], [1], [0, 0, 1, 1], [], []>} : vector<128x256xbf16>, vector<256x256xbf16>, vector<128x256xf32> -> vector<128x256xf32>
      %c0_41 = arith.constant 0 : index
      %c0_42 = arith.constant 0 : index
      %57 = vector.load %arg13[%c0_41, %c0_42] : memref<1x256xf32, #tpu.memory_space<vmem>>, vector<1x256xf32>
      %58 = vector.broadcast %57 : vector<1x256xf32> to vector<128x256xf32>
      %59 = arith.addf %56, %58 : vector<128x256xf32>
      %c0_43 = arith.constant 0 : index
      %c0_44 = arith.constant 0 : index
      %c0_45 = arith.constant 0 : index
      %60 = vector.load %arg14[%c0_43, %c0_44, %c0_45] : memref<1x128x256xf32, #tpu.memory_space<vmem>>, vector<1x128x256xf32>
      %61 = vector.shape_cast %60 : vector<1x128x256xf32> to vector<128x256xf32>
      %62 = vector.shape_cast %59 : vector<128x256xf32> to vector<1x128x256xf32>
      tpu.vector_store %arg14[%c0_43, %c0_44, %c0_45], %62 {strides = array<i32>} : memref<1x128x256xf32, #tpu.memory_space<vmem>>, vector<1x128x256xf32>,
    } else {
    }
    return
  }
  func.func @transform_0(%arg0: i32, %arg1: i32, %arg2: i32) -> (i32, i32, i32) {
    %c0_i32 = arith.constant 0 : i32
    %c0_i32_0 = arith.constant 0 : i32
    return %arg0, %arg1, %c0_i32 : i32, i32, i32
  }
  func.func @transform_1(%arg0: i32, %arg1: i32, %arg2: i32) -> (i32, i32, i32) {
    %c0_i32 = arith.constant 0 : i32
    %c0_i32_0 = arith.constant 0 : i32
    return %arg0, %arg2, %c0_i32 : i32, i32, i32
  }
  func.func @transform_2(%arg0: i32, %arg1: i32, %arg2: i32) -> (i32, i32, i32) {
    %c0_i32 = arith.constant 0 : i32
    %c0_i32_0 = arith.constant 0 : i32
    return %arg0, %arg2, %c0_i32 : i32, i32, i32
  }
  func.func @transform_3(%arg0: i32, %arg1: i32, %arg2: i32) -> (i32, i32) {
    %c0_i32 = arith.constant 0 : i32
    %c0_i32_0 = arith.constant 0 : i32
    %c0_i32_1 = arith.constant 0 : i32
    return %c0_i32, %c0_i32_0 : i32, i32
  }
  func.func @transform_4(%arg0: i32, %arg1: i32, %arg2: i32) -> (i32, i32) {
    %c0_i32 = arith.constant 0 : i32
    %c0_i32_0 = arith.constant 0 : i32
    %c0_i32_1 = arith.constant 0 : i32
    return %c0_i32, %c0_i32_0 : i32, i32
  }
  func.func @transform_5(%arg0: i32, %arg1: i32, %arg2: i32) -> (i32, i32) {
    %c0_i32 = arith.constant 0 : i32
    %c0_i32_0 = arith.constant 0 : i32
    %c0_i32_1 = arith.constant 0 : i32
    return %c0_i32, %c0_i32_0 : i32, i32
  }
  func.func @transform_6(%arg0: i32, %arg1: i32, %arg2: i32) -> (i32, i32) {
    %c0_i32 = arith.constant 0 : i32
    %c0_i32_0 = arith.constant 0 : i32
    %c0_i32_1 = arith.constant 0 : i32
    return %c0_i32, %c0_i32_0 : i32, i32
  }
  func.func @transform_7(%arg0: i32, %arg1: i32, %arg2: i32) -> (i32, i32) {
    %c0_i32 = arith.constant 0 : i32
    %c0_i32_0 = arith.constant 0 : i32
    %c0_i32_1 = arith.constant 0 : i32
    return %c0_i32, %c0_i32_0 : i32, i32
  }
  func.func @transform_8(%arg0: i32, %arg1: i32, %arg2: i32) -> (i32, i32) {
    %c0_i32 = arith.constant 0 : i32
    %c0_i32_0 = arith.constant 0 : i32
    %c0_i32_1 = arith.constant 0 : i32
    return %c0_i32, %c0_i32_0 : i32, i32
  }
  func.func @transform_9(%arg0: i32, %arg1: i32, %arg2: i32) -> (i32, i32) {
    %c0_i32 = arith.constant 0 : i32
    %c0_i32_0 = arith.constant 0 : i32
    %c0_i32_1 = arith.constant 0 : i32
    return %c0_i32, %c0_i32_0 : i32, i32
  }
  func.func @transform_10(%arg0: i32, %arg1: i32, %arg2: i32) -> (i32, i32) {
    %c0_i32 = arith.constant 0 : i32
    %c0_i32_0 = arith.constant 0 : i32
    %c0_i32_1 = arith.constant 0 : i32
    return %c0_i32, %c0_i32_0 : i32, i32
  }
  func.func @transform_11(%arg0: i32, %arg1: i32, %arg2: i32) -> (i32, i32, i32) {
    %c0_i32 = arith.constant 0 : i32
    %c0_i32_0 = arith.constant 0 : i32
    return %arg0, %arg1, %c0_i32 : i32, i32, i32
  }
}

</mosaic_0001>

<bundles_post_ra>
// kernel: tpu_custom_call.1
= control target key start
LH: loop header
LB: loop body
LE: loop exit
PB: predicated region body
PF: predicated region fallthrough
CT: control target
= control target key end

     0   :  { %s7170_s0 = inlined_call_operand.hbm [shape: bf16[2,256,256], index: 0, kind: input, shape index: {}]   ;;  %s7171_s1 = inlined_call_operand.hbm [shape: bf16[2,256,256], index: 1, kind: input, shape index: {}]   ;;  %s7172_s2 = inlined_call_operand.hbm [shape: bf16[2,256,256], index: 2, kind: input, shape index: {}]   ;;  %s7173_s3 = inlined_call_operand.hbm [shape: bf16[256,256], index: 3, kind: input, shape index: {}]   ;;  %s7174_s4 = inlined_call_operand.vmem [shape: f32[1,256], index: 4, kind: input, shape index: {}]   ;;  %s7175_s5 = inlined_call_operand.hbm [shape: bf16[256,128], index: 5, kind: input, shape index: {}]   ;;  %s7176_s6 = inlined_call_operand.vmem [shape: f32[1,128], index: 6, kind: input, shape index: {}]   ;;  %s7177_s7 = inlined_call_operand.hbm [shape: bf16[256,128], index: 7, kind: input, shape index: {}]   ;;  %s7178_s8 = inlined_call_operand.vmem [shape: f32[1,128], index: 8, kind: input, shape index: {}]   ;;  %s7179_s9 = inlined_call_operand.hbm [shape: bf16[256,256], index: 9, kind: input, shape index: {}]   ;;  %s7180_s10 = inlined_call_operand.vmem [shape: f32[1,256], index: 10, kind: input, shape index: {}]   ;;  %s7181_s11 = inlined_call_operand.hbm [shape: f32[2,256,256], index: 11, kind: output, shape index: {}]  }
   0x1   :  { %7256 = sst [smem:[#allocation74_spill]] %s7170_s0 }
   0x2   :  { %7257 = sst [smem:[#allocation75_spill]] %s7171_s1 }
   0x3   :  { %7258 = sst [smem:[#allocation76_spill]] %s7172_s2 }
   0x4   :  { %7259 = sst [smem:[#allocation77_spill]] %s7173_s3 }
   0x5   :  { %7260 = sst [smem:[#allocation78_spill]] %s7174_s4 }
   0x6   :  { %7261 = sst [smem:[#allocation79_spill]] %s7175_s5 }
   0x7   :  { %7262 = sst [smem:[#allocation80_spill]] %s7176_s6 }
   0x8   :  { %7263 = sst [smem:[#allocation81_spill]] %s7177_s7 }
   0x9   :  { %7264 = sst [smem:[#allocation82_spill]] %s7178_s8 }
   0xa   :  { %7265 = sst [smem:[#allocation83_spill]] %s7179_s9 }
   0xb   :  { %7266 = sst [smem:[#allocation84_spill]] %s7180_s10 }
   0xc   :  { %7267 = sst [smem:[#allocation85_spill]] %s7181_s11 }
   0xd   :  { %16 = vsyncpa [#allocation7], 0 }
   0xe   :  { %18 = vsyncpa [#allocation7 + $0x1], 0 }
   0xf   :  { %19 = vsyncpa [#allocation10], 0 }
  0x10   :  { %21 = vsyncpa [#allocation10 + $0x1], 0 }
  0x11   :  { %22 = vsyncpa [#allocation13], 0 }
  0x12   :  { %23 = vsyncpa [#allocation16], 0 }
  0x13   :  { %24 = vsyncpa [#allocation8], 0 }
  0x14   :  { %26 = vsyncpa [#allocation8 + $0x1], 0  ;;  %s5569_s17 = smov 0   ;;  %s5571_s18 = smov 0  }
  0x15   :  { %s5573_s19 = smov 0   ;;  %s5575_s20 = smov 0  }
  0x16   :  { %s5577_s21 = smov 0   ;;  %s5579_s22 = smov 0  }
  0x17   :  { %s5581_s23 = smov 0   ;;  %s5583_s24 = smov 0  }
  0x18   :  { %s5585_s25 = smov 0   ;;  %s5587_s26 = smov 0  }
  0x19   :  { %s5589_s27 = smov 0   ;;  %s5591_s28 = smov 0  }
  0x1a   :  { %s5593_s29 = smov 0  }
  0x1b LB: > { %7268 = sst [smem:[#allocation24_spill]] %s5445_s18  ;;  %s5635_s30 = sadd.s32 4294967295, %s5489_s29   ;;  %s5489_s29 = sphi %s5593_s29, %s32_s29   ;;  %s5485_s28 = sphi %s5591_s28, %s7466_s28   ;;  %s5481_s27 = sphi %s5589_s27, %s7456_s27   ;;  %s5477_s26 = sphi %s5587_s26, %s7465_s26   ;;  %s5473_s25 = sphi %s5585_s25, %s7464_s25   ;;  %s5469_s24 = sphi %s5583_s24, %s7455_s24   ;;  %s5465_s23 = sphi %s5581_s23, %s7463_s23   ;;  %s5461_s22 = sphi %s5579_s22, %s7462_s22   ;;  %s5457_s21 = sphi %s5577_s21, %s7461_s21   ;;  %s5453_s20 = sphi %s5575_s20, %s7460_s20   ;;  %s5449_s19 = sphi %s5573_s19, %s7459_s19   ;;  %s5445_s18 = sphi %s5571_s18, %s7458_s18   ;;  %s5441_s17 = sphi %s5569_s17, %s7452_s17  }
  0x1c   : > { %7269 = sst [smem:[#allocation25_spill]] %s5449_s19  ;;  %p4037_p0 = scmp.ge.s32.totalorder %s5489_s29, 1 }
  0x1d   : > { %7270 = sst [smem:[#allocation26_spill]] %s5453_s20  ;;  %p7183_p1 = scmp.eq.s32.totalorder %s5635_s30, 0 }
  0x1e   : > { %7271 = sst [smem:[#allocation27_spill]] %s5465_s23  ;;  %p336_p2 = scmp.lt.s32.totalorder %s5489_s29, 9 }
  0x1f   : > { %7272 = sst [smem:[#allocation28_spill]] %s5469_s24  ;;  %s5491_s13 = smov [#allocation12]  }
  0x20   : > { %7273 = sst [smem:[#allocation29_spill]] %s5473_s25  ;;  %p5641_p4 = pnand %p4037_p0, %p336_p2 }
  0x21   : > { %7274 = sst [smem:[#allocation30_spill]] %s5481_s27  ;;  %s348_s14 = sshll.u32 %s5491_s13, 4  ;;  %s349_s14 = int_to_ptr.vmem [resolvable:$true] %s348_s14 }
  0x22   : > { %7275 = sst [smem:[#allocation31_spill]] %s5635_s30  ;;  %p4586_p5 = pneg %p5641_p4 }
  0x23   : > { %s7276_s12 = scalar_select %p5641_p4, 1, 0 }
  0x24   : > { %p5649_p6 = pnand %p4586_p5, %p7183_p1  ;;  %s5492_s16 = smov [#allocation15]  }
  0x25   : > { %7277 = sst [smem:[#allocation32_spill]] %s7276_s12  ;;  %s380_s11 = sshll.u32 %s5492_s16, 4  ;;  %s5653_s11 = int_to_ptr.vmem [resolvable:$true] %s380_s11 }
  0x26   : > { %s7278_s15 = scalar_select %p5649_p6, 1, 0 }
  0x27   : > { %s7279_s3 = sld [smem:[#allocation77_spill]]  ;;  %p5663_p8 = pneg %p5649_p6 }
  0x2d   : > { %s5137_s10 = scalar_lea.hbm %s7279_s3, 4096 }
  0x2e   : > { %p5138_p7 = scmp.ne.s32.totalorder %s7279_s3, %s5137_s10  ;;  %p5144_p11 = scmp.lt.u32.totalorder %s5137_s10, %s7279_s3 }
  0x30   : > { %p5140_p9 = pnand %p5663_p8, %p5138_p7 }
  0x32   : > { %p5141_p10 = pneg %p5140_p9 }
  0x34   : > { %p5146_p12 = pnand %p5144_p11, %p5141_p10 }
  0x36   : > { %5149 = shalt.err (!%p5146_p12)
}
  0x37   : > { %s5150_s24 = scalar_lea.vmem %s349_s14, 4096  ;;  %p5158_p5 = scmp.lt.s32.totalorder %s349_s14, %s349_s14 }
  0x38   : > { %p5151_p13 = scmp.ne.s32.totalorder %s349_s14, %s5150_s24  ;;  %p5159_p3 = scmp.lt.s32.totalorder %s5150_s24, %s5150_s24 }
  0x3a   : > { %p5153_p0 = pnand %p5151_p13, %p5663_p8  ;;  %p5160_p1 = por %p5159_p3, %p5158_p5 }
  0x3c   : > { %p5154_p2 = pneg %p5153_p0 }
  0x3e   : > { %p5161_p4 = pnand %p5160_p1, %p5154_p2 }
  0x40   : > { %5164 = shalt.err (!%p5161_p4)
}
  0x41   : > { %s7189_s6 = smov 128   ;;  %s7191_s8 = smov 8  }
  0x42   : > { %4589 = dma.hbm_to_vmem [thread:$0]  (!%p5649_p6), %s7279_s3, 4096, %s349_s14, [#allocation13], %s7189_s6, %s7189_s6, %s7191_s8  }
  0x43   : > { %s7281_s7 = sld [smem:[#allocation81_spill]] }
  0x49   : > { %s5165_s23 = scalar_lea.hbm %s7281_s7, 2048 }
  0x4a   : > { %p5166_p1 = scmp.ne.s32.totalorder %s7281_s7, %s5165_s23  ;;  %p5172_p7 = scmp.lt.u32.totalorder %s5165_s23, %s7281_s7 }
  0x4c   : > { %p5168_p3 = pnand %p5166_p1, %p5663_p8 }
  0x4e   : > { %p5169_p4 = pneg %p5168_p3 }
  0x50   : > { %p5174_p9 = pnand %p5172_p7, %p5169_p4 }
  0x52   : > { %5177 = shalt.err (!%p5174_p9)
}
  0x53   : > { %s5178_s14 = scalar_lea.vmem %s5653_s11, 2048  ;;  %p5186_p13 = scmp.lt.s32.totalorder %s5653_s11, %s5653_s11 }
  0x54   : > { %p5179_p10 = scmp.ne.s32.totalorder %s5653_s11, %s5178_s14  ;;  %p5187_p0 = scmp.lt.s32.totalorder %s5178_s14, %s5178_s14 }
  0x56   : > { %p5181_p11 = pnand %p5179_p10, %p5663_p8  ;;  %p5188_p2 = por %p5187_p0, %p5186_p13 }
  0x58   : > { %p5182_p12 = pneg %p5181_p11 }
  0x5a   : > { %p5189_p5 = pnand %p5188_p2, %p5182_p12 }
  0x5c   : > { %5192 = shalt.err (!%p5189_p5)
}
  0x5d   : > { %s7187_s12 = smov 64   ;;  %s7188_s0 = smov 4  }
  0x5e   : > { %4595 = dma.hbm_to_vmem [thread:$0]  (!%p5649_p6), %s7281_s7, 2048, %s5653_s11, [#allocation16], %s7187_s12, %s7187_s12, %s7188_s0  }
  0x5f   : > { %s44_s4 = sadd.s32 1, %s5477_s26  ;;  %p7200_p3 = scmp.eq.s32.totalorder %s5489_s29, 0 }
  0x60   : > { %p5709_p1 = scmp.ge.s32.totalorder %s44_s4, 2  ;;  %p95_p4 = scmp.ne.s32.totalorder %s5449_s19, %s5445_s18 }
  0x61   : > { %p101_p7 = scmp.ne.s32.totalorder %s5445_s18, %s5441_s17  ;;  %p7199_p9 = scmp.lt.s32.totalorder %s5489_s29, 8 }
  0x62   : > { %s7282_s10 = scalar_select %p5709_p1, 1, 0 }
  0x63   : > { %s7468_s4 = smov (%p5709_p1, %s44_s4), 0  ;;  %p5727_p10 = por %p95_p4, %p7200_p3 }
  0x64   : > { %p7284_p11 = scmp.eq.s32.totalorder %s5635_s30, 0  ;;  %s7193_s14 = sshll.u32 %s5485_s28, 6 }
  0x65   : > { %s437_s20 = sand.u32 1, %s5489_s29   ;;  %s439_s23 = sand.u32 1, %s5449_s19  }
  0x66   : > { %p5733_p12 = por %p101_p7, %p7284_p11  ;;  %s4048_s17 = sshll.u32 %s439_s23, 7 }
  0x67   : > { %s4223_s25 = sshll.u32 %s5477_s26, 5  ;;  %s441_s0 = scalar_lea.vmem [#allocation9], %s4048_s17 }
  0x68   : > { %s7285_s24 = scalar_select %p5733_p12, 1, 0 }
  0x69   : > { %s448_s16 = sadd.s32 %s4223_s25, %s7193_s14  ;;  %s451_s6 = sshll.u32 %s441_s0, 4  ;;  %s5748_s6 = int_to_ptr.vmem [resolvable:$true] %s451_s6 }
  0x6a   : > { %7286 = sst [smem:[#allocation33_spill]] %s7285_s24  ;;  %s4052_s12 = sshll.u32 %s448_s16, 6 }
  0x6b   : > { %s7287_s1 = sld [smem:[#allocation75_spill]]  ;;  %p5754_p13 = pnand %p7199_p9, %p5727_p10 }
  0x6c   : > { %s7289_s2 = sld [smem:[#allocation76_spill]]  ;;  %s465_s8 = scalar_lea.vmem [#allocation11], %s4048_s17 }
  0x6d   : > { %s5765_s14 = sshll.u32 %s465_s8, 4  ;;  %s5767_s24 = scalar_lea.sflag [#allocation10], %s437_s20  ;;  %s5848_s14 = int_to_ptr.vmem [resolvable:$true] %s5765_s14 }
  0x6e   : > { %7290 = sst [smem:[#allocation34_spill]] %s5767_s24  ;;  %p7206_p2 = pneg %p5754_p13 }
  0x71   : > { %s5746_s7 = scalar_lea.hbm %s7287_s1, %s4052_s12  ;;  %s5198_s19 = scalar_lea.hbm %s7287_s1, 8192 }
  0x72   : > { %s5763_s3 = scalar_lea.hbm %s7289_s2, %s4052_s12  ;;  %s5193_s11 = scalar_lea.hbm %s5746_s7, 2048 }
  0x73   : > { %p5194_p0 = scmp.ne.s32.totalorder %s5746_s7, %s5193_s11  ;;  %p5199_p7 = scmp.lt.u32.totalorder %s5746_s7, %s7287_s1 }
  0x74   : > { %p5200_p10 = scmp.lt.u32.totalorder %s5198_s19, %s5193_s11  ;;  %p5202_p9 = scmp.lt.u32.totalorder %s5193_s11, %s5746_s7 }
  0x75   : > { %p5196_p5 = pnand %p7206_p2, %p5194_p0 }
  0x76   : > { %p5201_p11 = por %p5200_p10, %p5199_p7 }
  0x77   : > { %p5197_p4 = pneg %p5196_p5 }
  0x78   : > { %p5203_p3 = por %p5202_p9, %p5201_p11 }
  0x7a   : > { %p5204_p12 = pnand %p5203_p3, %p5197_p4 }
  0x7c   : > { %5207 = shalt.err (!%p5204_p12)
}
  0x7d   : > { %s5208_s20 = scalar_lea.vmem %s5748_s6, 2048  ;;  %s5497_s18 = smov [#allocation9]  }
  0x7e   : > { %p5209_p0 = scmp.ne.s32.totalorder %s5748_s6, %s5208_s20  ;;  %s5213_s17 = sshll.u32 %s5497_s18, 4  ;;  %s5214_s17 = int_to_ptr.vmem [resolvable:$false] %s5213_s17 }
  0x7f   : > { %s5215_s0 = scalar_lea.vmem %s5214_s17, 4096  ;;  %p5216_p6 = scmp.lt.s32.totalorder %s5748_s6, %s5214_s17 }
  0x80   : > { %p5211_p5 = pnand %p5209_p0, %p7206_p2  ;;  %p5217_p7 = scmp.lt.s32.totalorder %s5215_s0, %s5208_s20 }
  0x82   : > { %p5212_p1 = pneg %p5211_p5  ;;  %p5218_p10 = por %p5217_p7, %p5216_p6 }
  0x84   : > { %p5219_p9 = pnand %p5218_p10, %p5212_p1 }
  0x86   : > { %5222 = shalt.err (!%p5219_p9)
}
  0x87   : > { %s7291_s19 = smov 8   ;;  %s7292_s16 = smov 128  }
  0x88   : > { %4605 = dma.hbm_to_vmem [thread:$0]  (!%p5754_p13), %s5746_s7, 2048, %s5748_s6, %s5767_s24, %s7292_s16, %s7292_s16, %s7291_s19  }
  0x89   : > { %s5498_s8 = smov [#allocation14]   ;;  %s5499_s25 = smov [#allocation17]  }
  0x8a   : > { %s364_s11 = sshll.u32 %s5498_s8, 4  ;;  %s396_s12 = sshll.u32 %s5499_s25, 4  ;;  %s365_s11 = int_to_ptr.vmem [resolvable:$true] %s364_s11  ;;  %s5798_s12 = int_to_ptr.vmem [resolvable:$true] %s396_s12 }
  0x8b   : > { %s7293_s5 = sld [smem:[#allocation79_spill]] }
  0x91   : > { %s5223_s17 = scalar_lea.hbm %s7293_s5, 2048 }
  0x92   : > { %p5224_p6 = scmp.ne.s32.totalorder %s7293_s5, %s5223_s17  ;;  %p5230_p12 = scmp.lt.u32.totalorder %s5223_s17, %s7293_s5 }
  0x94   : > { %p5226_p1 = pnand %p5224_p6, %p5663_p8 }
  0x96   : > { %p5227_p3 = pneg %p5226_p1 }
  0x98   : > { %p5232_p4 = pnand %p5230_p12, %p5227_p3 }
  0x9a   : > { %5235 = shalt.err (!%p5232_p4)
}
  0x9b   : > { %s5236_s6 = scalar_lea.vmem %s365_s11, 2048  ;;  %p5244_p7 = scmp.lt.s32.totalorder %s365_s11, %s365_s11 }
  0x9c   : > { %p5237_p11 = scmp.ne.s32.totalorder %s365_s11, %s5236_s6  ;;  %p5245_p10 = scmp.lt.s32.totalorder %s5236_s6, %s5236_s6 }
  0x9e   : > { %p5239_p0 = pnand %p5237_p11, %p5663_p8  ;;  %p5246_p9 = por %p5245_p10, %p5244_p7 }
  0xa0   : > { %p5240_p5 = pneg %p5239_p0 }
  0xa2   : > { %p5247_p2 = pnand %p5246_p9, %p5240_p5 }
  0xa4   : > { %5250 = shalt.err (!%p5247_p2)
}
  0xa5   : > { %p7294_p6 = scmp.ne.s32.totalorder %s7278_s15, 0  ;;  %s7295_s1 = smov 4  }
  0xa6   : > { %s7296_s8 = smov 64   ;;  %s7297_s9 = sld [smem:[#allocation83_spill]] }
  0xa7   : > { %4592 = dma.hbm_to_vmem [thread:$0]  (!%p7294_p6), %s7293_s5, 2048, %s365_s11, [#allocation13], %s7296_s8, %s7296_s8, %s7295_s1  }
  0xac   : > { %s5251_s17 = scalar_lea.hbm %s7297_s9, 4096 }
  0xad   : > { %p5252_p1 = scmp.ne.s32.totalorder %s7297_s9, %s5251_s17  ;;  %p5258_p12 = scmp.lt.u32.totalorder %s5251_s17, %s7297_s9 }
  0xaf   : > { %p5254_p2 = pnand %p5252_p1, %p5663_p8 }
  0xb1   : > { %p5255_p3 = pneg %p5254_p2 }
  0xb3   : > { %p5260_p4 = pnand %p5258_p12, %p5255_p3 }
  0xb5   : > { %5263 = shalt.err (!%p5260_p4)
}
  0xb6   : > { %s5264_s11 = scalar_lea.vmem %s5798_s12, 4096  ;;  %p5272_p7 = scmp.lt.s32.totalorder %s5798_s12, %s5798_s12 }
  0xb7   : > { %p5265_p11 = scmp.ne.s32.totalorder %s5798_s12, %s5264_s11  ;;  %p5273_p10 = scmp.lt.s32.totalorder %s5264_s11, %s5264_s11 }
  0xb9   : > { %p5267_p0 = pnand %p5265_p11, %p5663_p8  ;;  %p5274_p9 = por %p5273_p10, %p5272_p7 }
  0xbb   : > { %p5268_p5 = pneg %p5267_p0 }
  0xbd   : > { %p5275_p1 = pnand %p5274_p9, %p5268_p5 }
  0xbf   : > { %5278 = shalt.err (!%p5275_p1)
}
  0xc0   : > { %s7298_s13 = sld [smem:[#allocation26_spill]]  ;;  %s47_s15 = sadd.s32 1, %s5481_s27 }
  0xc1   : > { %4598 = dma.hbm_to_vmem [thread:$0]  (!%p7294_p6), %s7297_s9, 4096, %s5798_s12, [#allocation16], %s7292_s16, %s7292_s16, %s7291_s19  }
  0xc2   : > { %p7299_p8 = scmp.ne.s32.totalorder %s7282_s10, 0  ;;  %s4036_s8 = sadd.s32 4294967294, %s5489_s29  }
  0xc3   : > { %p67_p2 = scmp.ne.s32.totalorder %s5461_s22, %s5457_s21  ;;  %s60_s2 = sadd.s32 1, %s5461_s22 }
  0xc4   : > { %s7470_s15 = smov (!%p7299_p8, %s47_s15), %s5481_s27  ;;  %p7300_p4 = scmp.eq.s32.totalorder %s5635_s30, 7 }
  0xc5   : > { %p49_p3 = scmp.ge.s32.totalorder %s7470_s15, 2  ;;  %s7304_s25 = sadd.s32 1, %s5485_s28 }
  0xc6   : > { %p73_p12 = scmp.ne.s32.totalorder %s5457_s21, %s7298_s13  ;;  %p5862_p11 = por %p7300_p4, %p67_p2 }
  0xc7   : > { %s7472_s15 = smov (%p49_p3, %s7470_s15), 0  ;;  %s7474_s25 = smov (!%p49_p3, %s7304_s25), %s5485_s28 }
  0xc8   : > { %s7301_s12 = scalar_select %p5862_p11, 1, 0 }
  0xc9   : > { %7303 = sst [smem:[#allocation36_spill]] %s7472_s15  ;;  %p7305_p6 = scmp.eq.s32.totalorder %s5489_s29, 0 }
  0xca   : > { %7302 = sst [smem:[#allocation35_spill]] %s7301_s12  ;;  %p7307_p5 = scmp.eq.s32.totalorder %s5635_s30, 0 }
  0xcb   : > { %p5873_p0 = por %p7305_p6, %p67_p2  ;;  %s7310_s18 = sld [smem:[#allocation25_spill]] }
  0xcc   : > { %p5879_p7 = por %p7307_p5, %p73_p12  ;;  %p53_p10 = scmp.ge.s32.totalorder %s7474_s25, 2 }
  0xcd   : > { %p329_p9 = scmp.eq.s32.totalorder %s4036_s8, 7  ;;  %s56_s17 = ssub.s32 %s5481_s27, %s7472_s15 }
  0xce   : > { %s7308_s20 = scalar_select %p5879_p7, 1, 0 }
  0xcf   : > { %s7216_s0 = sand.u32 1, %s5461_s22   ;;  %s7476_s25 = smov (%p53_p10, %s7474_s25), 0 }
  0xd0   : > { %7309 = sst [smem:[#allocation37_spill]] %s7308_s20  ;;  %p5888_p1 = por %p329_p9, %p73_p12 }
  0xd1   : > { %7311 = sst [smem:[#allocation38_spill]] %s7476_s25  ;;  %s4222_s6 = sshll.u32 %s5481_s27, 5 }
  0xd2   : > { %s7312_s7 = scalar_select %p5888_p1, 1, 0 }
  0xd3   : > { %s55_s11 = ssub.s32 %s5485_s28, %s7476_s25  ;;  %s4043_s24 = sshll.u32 %s7216_s0, 7 }
  0xd4   : > { %7313 = sst [smem:[#allocation39_spill]] %s7312_s7  ;;  %s57_s1 = sor.u32 %s56_s17, %s55_s11 }
  0xd5   : > { %s7314_s13 = ssub.s32 %s5477_s26, %s7468_s4  ;;  %p58_p8 = scmp.eq.s32.totalorder %s57_s1, 0 }
  0xd6   : > { %s85_s8 = sor.u32 %s7314_s13, %s55_s11  ;;  %s7315_s5 = sshll.u32 %s5485_s28, 6 }
  0xd7   : > { %p86_p2 = scmp.eq.s32.totalorder %s85_s8, 0  ;;  %s424_s9 = sadd.s32 %s4222_s6, %s7315_s5 }
  0xd8   : > { %s5903_s15 = scalar_select %p58_p8, %s5461_s22, %s60_s2  }
  0xd9   : > { %s7316_s7 = sadd.s32 1, %s7310_s18  ;;  %s4047_s27 = sshll.u32 %s424_s9, 6 }
  0xda   : > { %s7478_s18 = smov (!%p86_p2, %s7310_s18), %s7316_s7  ;;  %s417_s25 = scalar_lea.vmem [#allocation6], %s4043_s24 }
  0xdb   : > { %s427_s12 = sshll.u32 %s417_s25, 4  ;;  %s7317_s20 = sld [smem:[#allocation74_spill]]  ;;  %s5915_s12 = int_to_ptr.vmem [resolvable:$true] %s427_s12 }
  0xdc   : > { %p7319_p3 = scmp.lt.s32.totalorder %s5489_s29, 8  ;;  %s5279_s2 = scalar_lea.hbm %s5763_s3, 2048 }
  0xdd   : > { %p5280_p4 = scmp.ne.s32.totalorder %s5763_s3, %s5279_s2  ;;  %p7321_p6 = pneg %p5754_p13 }
  0xde   : > { %p5921_p12 = pnand %p7319_p3, %p5873_p0  ;;  %s7322_s7 = sld [smem:[#allocation76_spill]] }
  0xdf   : > { %p5282_p5 = pnand %p5280_p4, %p7321_p6  ;;  %p5288_p0 = scmp.lt.u32.totalorder %s5279_s2, %s5763_s3 }
  0xe1   : > { %s7318_s16 = smov %s7317_s20  ;;  %s5913_s17 = scalar_lea.hbm %s7317_s20, %s4047_s27 }
  0xe2   : > { %p5283_p10 = pneg %p5282_p5 }
  0xe4   : > { %s5284_s30 = scalar_lea.hbm %s7322_s7, 8192  ;;  %p5285_p9 = scmp.lt.u32.totalorder %s5763_s3, %s7322_s7 }
  0xe5   : > { %p5286_p8 = scmp.lt.u32.totalorder %s5284_s30, %s5279_s2 }
  0xe7   : > { %p5287_p2 = por %p5286_p8, %p5285_p9 }
  0xe9   : > { %p5289_p3 = por %p5288_p0, %p5287_p2 }
  0xeb   : > { %p5290_p1 = pnand %p5289_p3, %p5283_p10 }
  0xed   : > { %5293 = shalt.err (!%p5290_p1)
}
  0xee   : > { %s5294_s10 = scalar_lea.vmem %s5848_s14, 2048  ;;  %s5500_s0 = smov [#allocation11]  }
  0xef   : > { %p5295_p4 = scmp.ne.s32.totalorder %s5848_s14, %s5294_s10  ;;  %s5299_s6 = sshll.u32 %s5500_s0, 4  ;;  %s5300_s6 = int_to_ptr.vmem [resolvable:$false] %s5299_s6 }
  0xf0   : > { %s5301_s11 = scalar_lea.vmem %s5300_s6, 4096  ;;  %p5302_p7 = scmp.lt.s32.totalorder %s5848_s14, %s5300_s6 }
  0xf1   : > { %p5297_p5 = pnand %p5295_p4, %p7321_p6  ;;  %p5303_p9 = scmp.lt.s32.totalorder %s5301_s11, %s5294_s10 }
  0xf3   : > { %p5298_p11 = pneg %p5297_p5  ;;  %p5304_p8 = por %p5303_p9, %p5302_p7 }
  0xf5   : > { %p5305_p2 = pnand %p5304_p8, %p5298_p11 }
  0xf7   : > { %5308 = shalt.err (!%p5305_p2)
}
  0xf8   : > { %s7323_s24 = smov 128   ;;  %s7324_s1 = sld [smem:[#allocation34_spill]] }
  0xf9   : > { %s7325_s13 = sand.u32 1, %s5461_s22   ;;  %s5309_s2 = scalar_lea.hbm %s5913_s17, 2048 }
  0xfa   : > { %s5954_s8 = scalar_lea.sflag [#allocation7], %s7325_s13  ;;  %p5310_p11 = scmp.ne.s32.totalorder %s5913_s17, %s5309_s2 }
  0xfb   : > { %p5311_p7 = pneg %p5921_p12  ;;  %s5314_s25 = scalar_lea.hbm %s7318_s16, 8192 }
  0xfc   : > { %p5315_p0 = scmp.lt.u32.totalorder %s5913_s17, %s7318_s16  ;;  %p5318_p4 = scmp.lt.u32.totalorder %s5309_s2, %s5913_s17 }
  0xfd   : > { %p5312_p1 = pnand %p5311_p7, %p5310_p11 }
  0xfe   : > { %4608 = dma.hbm_to_vmem [thread:$0]  (!%p5754_p13), %s5763_s3, 2048, %s5848_s14, %s7324_s1, %s7323_s24, %s7323_s24, %s7291_s19  }
  0xff   : > { %p5313_p10 = pneg %p5312_p1  ;;  %p5316_p13 = scmp.lt.u32.totalorder %s5314_s25, %s5309_s2 }
 0x101   : > { %p5317_p3 = por %p5316_p13, %p5315_p0 }
 0x103   : > { %p5319_p6 = por %p5318_p4, %p5317_p3 }
 0x105   : > { %p5320_p5 = pnand %p5319_p6, %p5313_p10 }
 0x107   : > { %5323 = shalt.err (!%p5320_p5)
}
 0x108   : > { %s5324_s14 = scalar_lea.vmem %s5915_s12, 2048  ;;  %s5501_s3 = smov [#allocation6]  }
 0x109   : > { %p5325_p9 = scmp.ne.s32.totalorder %s5915_s12, %s5324_s14  ;;  %s5329_s27 = sshll.u32 %s5501_s3, 4  ;;  %s5330_s27 = int_to_ptr.vmem [resolvable:$false] %s5329_s27 }
 0x10a   : > { %s5331_s20 = scalar_lea.vmem %s5330_s27, 4096  ;;  %p5332_p11 = scmp.lt.s32.totalorder %s5915_s12, %s5330_s27 }
 0x10b   : > { %p5327_p8 = pnand %p5325_p9, %p5311_p7  ;;  %p5333_p1 = scmp.lt.s32.totalorder %s5331_s20, %s5324_s14 }
 0x10d   : > { %p5328_p2 = pneg %p5327_p8  ;;  %p5334_p0 = por %p5333_p1, %p5332_p11 }
 0x10f   : > { %p5335_p13 = pnand %p5334_p0, %p5328_p2 }
 0x111   : > { %5338 = shalt.err (!%p5335_p13)
}
 0x112   : > { %4602 = dma.hbm_to_vmem [thread:$0]  (!%p5921_p12), %s5913_s17, 2048, %s5915_s12, %s5954_s8, %s7323_s24, %s7323_s24, %s7291_s19  }
 0x113   : > { %s7326_s10 = sld [smem:[#allocation32_spill]] }
 0x119   : > { %p7327_p7 = scmp.ne.s32.totalorder %s7326_s10, 0 }
 0x11b   : > { %487 = sbr.rel (%p7327_p7) target bundleno = 2171 (0x87b), region = 64 }
 0x122   : > { %s7328_s0 = sld [smem:[#allocation37_spill]]  ;;  %s5988_s6 = sand.u32 1, %s5457_s21  }
 0x123   : > { %s4059_s11 = sshll.u32 %s5988_s6, 7  ;;  %s490_s1 = scalar_lea.sflag [#allocation7], %s5988_s6 }
 0x124   : > { %s5992_s13 = scalar_lea.vmem [#allocation6], %s4059_s11 }
 0x128   : > { %p7329_p10 = scmp.ne.s32.totalorder %s7328_s0, 0 }
 0x12a   : > { %5420 = dma.done.wait (%p7329_p10), %s490_s1, 2048  }
 0x12b   : > { %5422 = vsyncadd (%p7329_p10), %s490_s1, 4294965248  ;;  %s7330_s5 = sld [smem:[#allocation31_spill]]  ;;  %s7331_s19 = sld [smem:[#allocation24_spill]] }
 0x12c   : > { %s7332_s12 = sld [smem:[#allocation33_spill]] }
 0x131   : > { %s498_s17 = sand.u32 1, %s7330_s5   ;;  %s500_s24 = sand.u32 1, %s7331_s19  }
 0x132   : > { %s4060_s8 = sshll.u32 %s500_s24, 7  ;;  %s499_s2 = scalar_lea.sflag [#allocation10], %s498_s17 }
 0x133   : > { %s6000_s23 = scalar_lea.vmem [#allocation9], %s4060_s8  ;;  %p7333_p12 = scmp.ne.s32.totalorder %s7332_s12, 0 }
 0x135   : > { %5424 = dma.done.wait (%p7333_p12), %s499_s2, 4096  }
 0x136   : > { %5426 = vsyncadd (%p7333_p12), %s499_s2, 4294963200  ;;  %s6006_s9 = scalar_lea.vmem [#allocation11], %s4060_s8  ;;  %p7334_p3 = scmp.eq.s32.totalorder %s7330_s5, 0 }
 0x138   : > { %5428 = dma.done.wait (%p7334_p3), [#allocation13], 6144   ;;  %p7335_p4 = pmov %p7334_p3 }
 0x139   : > { %p7336_p6 = pmov %p7334_p3 }
 0x13a   : > { %5430 = vsyncadd (%p7335_p4), [#allocation13], 4294961152 }
 0x13b   : > { %5432 = dma.done.wait (%p7336_p6), [#allocation16], 6144   ;;  %p7337_p5 = pmov %p7334_p3 }
 0x13c   : > { %s4066_s25 = sshll.u32 %s5988_s6, 8  ;;  %s7338_s30 = sld [smem:[#allocation27_spill]] }
 0x13d   : > { %5434 = vsyncadd (%p7337_p5), [#allocation16], 4294961152  ;;  %s6017_s7 = scalar_lea.vmem [#allocation18], %s4066_s25 }
 0x142   : > { %p4067_p9 = scmp.ne.s32.totalorder %s7338_s30, 0 }
 0x143   : > { %v4741_v0 = vld [vmem:[#allocation12 + $0x4] ss:$8 sps:$4 sm:$0xff] (!%p4067_p9)   ;;  %v4743_v1 = vld [vmem:[#allocation12] ss:$8 sps:$4 sm:$0xff] (!%p4067_p9)   ;;  %v4744_v2 = vld [vmem:[#allocation12 + $0x14] ss:$8 sps:$4 sm:$0xff] (!%p4067_p9)   ;;  %v635_v50 = vlaneseq (!%p4067_p9) }
 0x144   : > { %584 = sbr.rel (%p4067_p9) target bundleno = 634 (0x27a), region = 96  ;;  %885 = vmatprep.subr.bf16.mxu0 (!%p4067_p9), %v4741_v0  ;;  %4498 = vmatprep.subr.bf16.mxu1 (!%p4067_p9), %v4741_v0  ;;  %v4746_v3 = vld [vmem:[#allocation12 + $0x10] ss:$8 sps:$4 sm:$0xff] (!%p4067_p9)   ;;  %v4747_v4 = vld [vmem:[#allocation12 + $0x24] ss:$8 sps:$4 sm:$0xff] (!%p4067_p9)   ;;  %vm1062_vm0 = vcmask (!%p4067_p9), 7168  }
 0x145   : > { %886 = vmatpush1.bf16.msra.mxu0 (!%p4067_p9), %v4743_v1  ;;  %4514 = vmatpush1.bf16.msra.mxu1 (!%p4067_p9), %v4743_v1  ;;  %v4749_v5 = vld [vmem:[#allocation12 + $0x20] ss:$8 sps:$4 sm:$0xff] (!%p4067_p9)   ;;  %v4750_v6 = vld [vmem:[#allocation12 + $0x34] ss:$8 sps:$4 sm:$0xff] (!%p4067_p9)   ;;  %v4752_v7 = vld [vmem:[#allocation12 + $0x30] ss:$8 sps:$4 sm:$0xff] (!%p4067_p9)  }
 0x146   : > { %887 = vmatprep.subr.bf16.mxu0 (!%p4067_p9), %v4744_v2  ;;  %4499 = vmatprep.subr.bf16.mxu1 (!%p4067_p9), %v4744_v2  ;;  %v4753_v8 = vld [vmem:[#allocation12 + $0x44] ss:$8 sps:$4 sm:$0xff] (!%p4067_p9)   ;;  %v4755_v9 = vld [vmem:[#allocation12 + $0x40] ss:$8 sps:$4 sm:$0xff] (!%p4067_p9)   ;;  %v4756_v10 = vld [vmem:[#allocation12 + $0x54] ss:$8 sps:$4 sm:$0xff] (!%p4067_p9)  }
 0x147   : > { %v4758_v11 = vld [vmem:[#allocation12 + $0x50] ss:$8 sps:$4 sm:$0xff] (!%p4067_p9)   ;;  %v4759_v12 = vld [vmem:[#allocation12 + $0x64] ss:$8 sps:$4 sm:$0xff] (!%p4067_p9)   ;;  %v4761_v14 = vld [vmem:[#allocation12 + $0x60] ss:$8 sps:$4 sm:$0xff] (!%p4067_p9)  }
 0x148   : > { %v4791_v13 = vld [vmem:[%s5992_s13 + $0x4] ss:$8 sps:$4 sm:$0xff] (!%p4067_p9)   ;;  %v4762_v16 = vld [vmem:[#allocation12 + $0x74] ss:$8 sps:$4 sm:$0xff] (!%p4067_p9)   ;;  %v4764_v17 = vld [vmem:[#allocation12 + $0x70] ss:$8 sps:$4 sm:$0xff] (!%p4067_p9)  }
 0x149   : > { %888 = vmatpush1.bf16.msra.mxu0 (!%p4067_p9), %v4746_v3  ;;  %4515 = vmatpush1.bf16.msra.mxu1 (!%p4067_p9), %v4746_v3  ;;  %v4794_v15 = vld [vmem:[%s5992_s13 + $0x44] ss:$8 sps:$4 sm:$0xff] (!%p4067_p9)   ;;  %v4767_v19 = vld [vmem:[#allocation12 + $0x80] ss:$8 sps:$4 sm:$0xff] (!%p4067_p9)   ;;  %v4768_v20 = vld [vmem:[#allocation12 + $0x94] ss:$8 sps:$4 sm:$0xff] (!%p4067_p9)  }
 0x14a   : > { %889 = vmatprep.subr.bf16.mxu0 (!%p4067_p9), %v4747_v4  ;;  %4500 = vmatprep.subr.bf16.mxu1 (!%p4067_p9), %v4747_v4  ;;  %v4765_v18 = vld [vmem:[#allocation12 + $0x84] ss:$8 sps:$4 sm:$0xff] (!%p4067_p9)   ;;  %v4770_v21 = vld [vmem:[#allocation12 + $0x90] ss:$8 sps:$4 sm:$0xff] (!%p4067_p9)   ;;  %v4773_v23 = vld [vmem:[#allocation12 + $0xa0] ss:$8 sps:$4 sm:$0xff] (!%p4067_p9)  }
 0x14b   : > { %917 = vmatprep.mubr.bf16.mxu0 %v4791_v13  ;;  %957 = vmatprep.mubr.bf16.mxu1 %v4794_v15  ;;  %v4771_v22 = vld [vmem:[#allocation12 + $0xa4] ss:$8 sps:$4 sm:$0xff]   ;;  %v4774_v24 = vld [vmem:[#allocation12 + $0xb4] ss:$8 sps:$4 sm:$0xff]   ;;  %v4776_v25 = vld [vmem:[#allocation12 + $0xb0] ss:$8 sps:$4 sm:$0xff]  }
 0x14c   : > { %v4777_v26 = vld [vmem:[#allocation12 + $0xc4] ss:$8 sps:$4 sm:$0xff]   ;;  %v4779_v27 = vld [vmem:[#allocation12 + $0xc0] ss:$8 sps:$4 sm:$0xff]   ;;  %v4780_v28 = vld [vmem:[#allocation12 + $0xd4] ss:$8 sps:$4 sm:$0xff]  }
 0x14d   : > { %890 = vmatpush1.bf16.msra.mxu0 %v4749_v5  ;;  %4516 = vmatpush1.bf16.msra.mxu1 %v4749_v5  ;;  %v4782_v29 = vld [vmem:[#allocation12 + $0xd0] ss:$8 sps:$4 sm:$0xff]   ;;  %v4783_v30 = vld [vmem:[#allocation12 + $0xe4] ss:$8 sps:$4 sm:$0xff]   ;;  %v4785_v31 = vld [vmem:[#allocation12 + $0xe0] ss:$8 sps:$4 sm:$0xff]  }
 0x14e   : > { %891 = vmatprep.subr.bf16.mxu0 %v4750_v6  ;;  %4501 = vmatprep.subr.bf16.mxu1 %v4750_v6  ;;  %v4786_v32 = vld [vmem:[#allocation12 + $0xf4] ss:$8 sps:$4 sm:$0xff]   ;;  %v4788_v33 = vld [vmem:[#allocation12 + $0xf0] ss:$8 sps:$4 sm:$0xff]   ;;  %v4789_v34 = vld [vmem:[%s5992_s13] ss:$8 sps:$4 sm:$0xff]  }
 0x14f   : > { %v4792_v35 = vld [vmem:[%s5992_s13 + $0x40] ss:$8 sps:$4 sm:$0xff]   ;;  %v4795_v36 = vld [vmem:[%s5992_s13 + $0x14] ss:$8 sps:$4 sm:$0xff]   ;;  %v4799_v38 = vld [vmem:[%s5992_s13 + $0x10] ss:$8 sps:$4 sm:$0xff]  }
 0x150   : > { %v4797_v37 = vld [vmem:[%s5992_s13 + $0x54] ss:$8 sps:$4 sm:$0xff]   ;;  %v4800_v39 = vld [vmem:[%s5992_s13 + $0x50] ss:$8 sps:$4 sm:$0xff]   ;;  %v4801_v40 = vld [vmem:[%s5992_s13 + $0x24] ss:$8 sps:$4 sm:$0xff]  }
 0x151   : > { %892 = vmatpush1.bf16.msra.mxu0 %v4752_v7  ;;  %4517 = vmatpush1.bf16.msra.mxu1 %v4752_v7  ;;  %v4803_v41 = vld [vmem:[%s5992_s13 + $0x64] ss:$8 sps:$4 sm:$0xff]   ;;  %v4805_v42 = vld [vmem:[%s5992_s13 + $0x20] ss:$8 sps:$4 sm:$0xff]   ;;  %v4807_v44 = vld [vmem:[%s5992_s13 + $0x34] ss:$8 sps:$4 sm:$0xff]  }
 0x152   : > { %893 = vmatprep.subr.bf16.mxu0 %v4753_v8  ;;  %4502 = vmatprep.subr.bf16.mxu1 %v4753_v8  ;;  %v4806_v43 = vld [vmem:[%s5992_s13 + $0x60] ss:$8 sps:$4 sm:$0xff]   ;;  %v4809_v45 = vld [vmem:[%s5992_s13 + $0x74] ss:$8 sps:$4 sm:$0xff]   ;;  %v4811_v46 = vld [vmem:[%s5992_s13 + $0x30] ss:$8 sps:$4 sm:$0xff]  }
 0x153   : > { %v4812_v47 = vld [vmem:[%s5992_s13 + $0x70] ss:$8 sps:$4 sm:$0xff]   ;;  %v5502_v48 = vmov -inf   ;;  %v5503_v49 = vmov 0.0   ;;  %v636_v51 = vshrl.u32 %v635_v50, 7  ;;  %s7339_s27 = sld [smem:[#allocation78_spill]] }
 0x154   : > { %1063 = vst.msk [vmem:[#allocation3] sm:$0xff] %vm1062_vm0, %v5502_v48  ;;  %1064 = vst.msk [vmem:[#allocation3 + $0x8] sm:$0xff] %vm1062_vm0, %v5502_v48 }
 0x155   : > { %894 = vmatpush1.bf16.msra.mxu0 %v4755_v9  ;;  %4518 = vmatpush1.bf16.msra.mxu1 %v4755_v9  ;;  %1065 = vst.msk [vmem:[#allocation3 + $0x10] sm:$0xff] %vm1062_vm0, %v5502_v48  ;;  %1066 = vst.msk [vmem:[#allocation3 + $0x18] sm:$0xff] %vm1062_vm0, %v5502_v48  ;;  %v637_v52 = vsub.s32 0, %v636_v51  ;;  %v641_v54 = vsub.s32 1, %v636_v51 }
 0x156   : > { %895 = vmatprep.subr.bf16.mxu0 %v4756_v10  ;;  %4503 = vmatprep.subr.bf16.mxu1 %v4756_v10  ;;  %1067 = vst.msk [vmem:[#allocation3 + $0x20] sm:$0xff] %vm1062_vm0, %v5502_v48  ;;  %1068 = vst.msk [vmem:[#allocation3 + $0x28] sm:$0xff] %vm1062_vm0, %v5502_v48 }
 0x157   : > { %1069 = vst.msk [vmem:[#allocation3 + $0x30] sm:$0xff] %vm1062_vm0, %v5502_v48  ;;  %1070 = vst.msk [vmem:[#allocation3 + $0x38] sm:$0xff] %vm1062_vm0, %v5502_v48 }
 0x158   : > { %1071 = vst.msk [vmem:[#allocation3 + $0x40] sm:$0xff] %vm1062_vm0, %v5502_v48  ;;  %1072 = vst.msk [vmem:[#allocation3 + $0x48] sm:$0xff] %vm1062_vm0, %v5502_v48 }
 0x159   : > { %896 = vmatpush1.bf16.msra.mxu0 %v4758_v11  ;;  %4519 = vmatpush1.bf16.msra.mxu1 %v4758_v11  ;;  %1073 = vst.msk [vmem:[#allocation3 + $0x50] sm:$0xff] %vm1062_vm0, %v5502_v48  ;;  %1074 = vst.msk [vmem:[#allocation3 + $0x58] sm:$0xff] %vm1062_vm0, %v5502_v48  ;;  %v633_v53 = vld [vmem:[%s7339_s27] sm:$0x3] }
 0x15a   : > { %897 = vmatprep.subr.bf16.mxu0 %v4759_v12  ;;  %4504 = vmatprep.subr.bf16.mxu1 %v4759_v12  ;;  %1075 = vst.msk [vmem:[#allocation3 + $0x60] sm:$0xff] %vm1062_vm0, %v5502_v48  ;;  %1076 = vst.msk [vmem:[#allocation3 + $0x68] sm:$0xff] %vm1062_vm0, %v5502_v48  ;;  %v6167_v55 = vrot.slane %v633_v53, %v637_v52  ;;  %v6169_v56 = vrot.slane %v633_v53, %v641_v54 }
 0x15b   : > { %1077 = vst.msk [vmem:[#allocation3 + $0x70] sm:$0xff] %vm1062_vm0, %v5502_v48  ;;  %1078 = vst.msk [vmem:[#allocation3 + $0x78] sm:$0xff] %vm1062_vm0, %v5502_v48 }
 0x15c   : > { %1079 = vst.msk [vmem:[#allocation3 + $0x80] sm:$0xff] %vm1062_vm0, %v5502_v48  ;;  %1080 = vst.msk [vmem:[#allocation3 + $0x88] sm:$0xff] %vm1062_vm0, %v5502_v48 }
 0x15d   : > { %898 = vmatpush1.bf16.msra.mxu0 %v4761_v14  ;;  %4520 = vmatpush1.bf16.msra.mxu1 %v4761_v14  ;;  %1081 = vst.msk [vmem:[#allocation3 + $0x90] sm:$0xff] %vm1062_vm0, %v5502_v48  ;;  %1082 = vst.msk [vmem:[#allocation3 + $0x98] sm:$0xff] %vm1062_vm0, %v5502_v48 }
 0x15e   : > { %899 = vmatprep.subr.bf16.mxu0 %v4762_v16  ;;  %4505 = vmatprep.subr.bf16.mxu1 %v4762_v16  ;;  %1083 = vst.msk [vmem:[#allocation3 + $0xa0] sm:$0xff] %vm1062_vm0, %v5502_v48  ;;  %1084 = vst.msk [vmem:[#allocation3 + $0xa8] sm:$0xff] %vm1062_vm0, %v5502_v48 }
 0x15f   : > { %1085 = vst.msk [vmem:[#allocation3 + $0xb0] sm:$0xff] %vm1062_vm0, %v5502_v48  ;;  %1086 = vst.msk [vmem:[#allocation3 + $0xb8] sm:$0xff] %vm1062_vm0, %v5502_v48 }
 0x160   : > { %1087 = vst.msk [vmem:[#allocation3 + $0xc0] sm:$0xff] %vm1062_vm0, %v5502_v48  ;;  %1088 = vst.msk [vmem:[#allocation3 + $0xc8] sm:$0xff] %vm1062_vm0, %v5502_v48 }
 0x161   : > { %900 = vmatpush1.bf16.msra.mxu0 %v4764_v17  ;;  %4521 = vmatpush1.bf16.msra.mxu1 %v4764_v17  ;;  %1089 = vst.msk [vmem:[#allocation3 + $0xd0] sm:$0xff] %vm1062_vm0, %v5502_v48  ;;  %1090 = vst.msk [vmem:[#allocation3 + $0xd8] sm:$0xff] %vm1062_vm0, %v5502_v48 }
 0x162   : > { %901 = vmatprep.subr.bf16.mxu0 %v4765_v18  ;;  %4506 = vmatprep.subr.bf16.mxu1 %v4765_v18  ;;  %1091 = vst.msk [vmem:[#allocation3 + $0xe0] sm:$0xff] %vm1062_vm0, %v5502_v48  ;;  %1092 = vst.msk [vmem:[#allocation3 + $0xe8] sm:$0xff] %vm1062_vm0, %v5502_v48 }
 0x163   : > { %1093 = vst.msk [vmem:[#allocation3 + $0xf0] sm:$0xff] %vm1062_vm0, %v5502_v48  ;;  %1094 = vst.msk [vmem:[#allocation3 + $0xf8] sm:$0xff] %vm1062_vm0, %v5502_v48 }
 0x164   : > { %1095 = vst.msk [vmem:[#allocation4] sm:$0xff] %vm1062_vm0, %v5503_v49  ;;  %1096 = vst.msk [vmem:[#allocation4 + $0x8] sm:$0xff] %vm1062_vm0, %v5503_v49 }
 0x165   : > { %902 = vmatpush1.bf16.msra.mxu0 %v4767_v19  ;;  %4522 = vmatpush1.bf16.msra.mxu1 %v4767_v19  ;;  %1097 = vst.msk [vmem:[#allocation4 + $0x10] sm:$0xff] %vm1062_vm0, %v5503_v49  ;;  %1098 = vst.msk [vmem:[#allocation4 + $0x18] sm:$0xff] %vm1062_vm0, %v5503_v49 }
 0x166   : > { %903 = vmatprep.subr.bf16.mxu0 %v4768_v20  ;;  %4507 = vmatprep.subr.bf16.mxu1 %v4768_v20  ;;  %1099 = vst.msk [vmem:[#allocation4 + $0x20] sm:$0xff] %vm1062_vm0, %v5503_v49  ;;  %1100 = vst.msk [vmem:[#allocation4 + $0x28] sm:$0xff] %vm1062_vm0, %v5503_v49 }
 0x167   : > { %1101 = vst.msk [vmem:[#allocation4 + $0x30] sm:$0xff] %vm1062_vm0, %v5503_v49  ;;  %1102 = vst.msk [vmem:[#allocation4 + $0x38] sm:$0xff] %vm1062_vm0, %v5503_v49 }
 0x168   : > { %1103 = vst.msk [vmem:[#allocation4 + $0x40] sm:$0xff] %vm1062_vm0, %v5503_v49  ;;  %1104 = vst.msk [vmem:[#allocation4 + $0x48] sm:$0xff] %vm1062_vm0, %v5503_v49 }
 0x169   : > { %904 = vmatpush1.bf16.msra.mxu0 %v4770_v21  ;;  %4523 = vmatpush1.bf16.msra.mxu1 %v4770_v21  ;;  %1105 = vst.msk [vmem:[#allocation4 + $0x50] sm:$0xff] %vm1062_vm0, %v5503_v49  ;;  %1106 = vst.msk [vmem:[#allocation4 + $0x58] sm:$0xff] %vm1062_vm0, %v5503_v49 }
 0x16a   : > { %905 = vmatprep.subr.bf16.mxu0 %v4771_v22  ;;  %4508 = vmatprep.subr.bf16.mxu1 %v4771_v22  ;;  %1107 = vst.msk [vmem:[#allocation4 + $0x60] sm:$0xff] %vm1062_vm0, %v5503_v49  ;;  %1108 = vst.msk [vmem:[#allocation4 + $0x68] sm:$0xff] %vm1062_vm0, %v5503_v49 }
 0x16b   : > { %1109 = vst.msk [vmem:[#allocation4 + $0x70] sm:$0xff] %vm1062_vm0, %v5503_v49  ;;  %1110 = vst.msk [vmem:[#allocation4 + $0x78] sm:$0xff] %vm1062_vm0, %v5503_v49 }
 0x16c   : > { %1111 = vst.msk [vmem:[#allocation4 + $0x80] sm:$0xff] %vm1062_vm0, %v5503_v49  ;;  %1112 = vst.msk [vmem:[#allocation4 + $0x88] sm:$0xff] %vm1062_vm0, %v5503_v49 }
 0x16d   : > { %906 = vmatpush1.bf16.msra.mxu0 %v4773_v23  ;;  %4524 = vmatpush1.bf16.msra.mxu1 %v4773_v23  ;;  %1113 = vst.msk [vmem:[#allocation4 + $0x90] sm:$0xff] %vm1062_vm0, %v5503_v49  ;;  %1114 = vst.msk [vmem:[#allocation4 + $0x98] sm:$0xff] %vm1062_vm0, %v5503_v49 }
 0x16e   : > { %907 = vmatprep.subr.bf16.mxu0 %v4774_v24  ;;  %4509 = vmatprep.subr.bf16.mxu1 %v4774_v24  ;;  %1115 = vst.msk [vmem:[#allocation4 + $0xa0] sm:$0xff] %vm1062_vm0, %v5503_v49  ;;  %1116 = vst.msk [vmem:[#allocation4 + $0xa8] sm:$0xff] %vm1062_vm0, %v5503_v49 }
 0x16f   : > { %1117 = vst.msk [vmem:[#allocation4 + $0xb0] sm:$0xff] %vm1062_vm0, %v5503_v49  ;;  %1118 = vst.msk [vmem:[#allocation4 + $0xb8] sm:$0xff] %vm1062_vm0, %v5503_v49 }
 0x170   : > { %1119 = vst.msk [vmem:[#allocation4 + $0xc0] sm:$0xff] %vm1062_vm0, %v5503_v49  ;;  %1120 = vst.msk [vmem:[#allocation4 + $0xc8] sm:$0xff] %vm1062_vm0, %v5503_v49 }
 0x171   : > { %908 = vmatpush1.bf16.msra.mxu0 %v4776_v25  ;;  %4525 = vmatpush1.bf16.msra.mxu1 %v4776_v25  ;;  %1121 = vst.msk [vmem:[#allocation4 + $0xd0] sm:$0xff] %vm1062_vm0, %v5503_v49  ;;  %1122 = vst.msk [vmem:[#allocation4 + $0xd8] sm:$0xff] %vm1062_vm0, %v5503_v49 }
 0x172   : > { %909 = vmatprep.subr.bf16.mxu0 %v4777_v26  ;;  %4510 = vmatprep.subr.bf16.mxu1 %v4777_v26  ;;  %1123 = vst.msk [vmem:[#allocation4 + $0xe0] sm:$0xff] %vm1062_vm0, %v5503_v49  ;;  %1124 = vst.msk [vmem:[#allocation4 + $0xe8] sm:$0xff] %vm1062_vm0, %v5503_v49 }
 0x173   : > { %1125 = vst.msk [vmem:[#allocation4 + $0xf0] sm:$0xff] %vm1062_vm0, %v5503_v49  ;;  %1126 = vst.msk [vmem:[#allocation4 + $0xf8] sm:$0xff] %vm1062_vm0, %v5503_v49 }
 0x174   : > { %1127 = vst [vmem:[#allocation5] sm:$0xff] %v5503_v49  ;;  %1128 = vst [vmem:[#allocation5 + $0x8] sm:$0xff] %v5503_v49 }
 0x175   : > { %910 = vmatpush1.bf16.msra.mxu0 %v4779_v27  ;;  %4526 = vmatpush1.bf16.msra.mxu1 %v4779_v27  ;;  %1129 = vst [vmem:[#allocation5 + $0x10] sm:$0xff] %v5503_v49  ;;  %1130 = vst [vmem:[#allocation5 + $0x18] sm:$0xff] %v5503_v49 }
 0x176   : > { %911 = vmatprep.subr.bf16.mxu0 %v4780_v28  ;;  %4511 = vmatprep.subr.bf16.mxu1 %v4780_v28  ;;  %1131 = vst [vmem:[#allocation5 + $0x20] sm:$0xff] %v5503_v49  ;;  %1132 = vst [vmem:[#allocation5 + $0x28] sm:$0xff] %v5503_v49 }
 0x177   : > { %1133 = vst [vmem:[#allocation5 + $0x30] sm:$0xff] %v5503_v49  ;;  %1134 = vst [vmem:[#allocation5 + $0x38] sm:$0xff] %v5503_v49 }
 0x178   : > { %1135 = vst [vmem:[#allocation5 + $0x40] sm:$0xff] %v5503_v49  ;;  %1136 = vst [vmem:[#allocation5 + $0x48] sm:$0xff] %v5503_v49 }
 0x179   : > { %912 = vmatpush1.bf16.msra.mxu0 %v4782_v29  ;;  %4527 = vmatpush1.bf16.msra.mxu1 %v4782_v29  ;;  %1137 = vst [vmem:[#allocation5 + $0x50] sm:$0xff] %v5503_v49  ;;  %1138 = vst [vmem:[#allocation5 + $0x58] sm:$0xff] %v5503_v49 }
 0x17a   : > { %913 = vmatprep.subr.bf16.mxu0 %v4783_v30  ;;  %4512 = vmatprep.subr.bf16.mxu1 %v4783_v30  ;;  %1139 = vst [vmem:[#allocation5 + $0x60] sm:$0xff] %v5503_v49  ;;  %1140 = vst [vmem:[#allocation5 + $0x68] sm:$0xff] %v5503_v49 }
 0x17b   : > { %1141 = vst [vmem:[#allocation5 + $0x70] sm:$0xff] %v5503_v49  ;;  %1142 = vst [vmem:[#allocation5 + $0x78] sm:$0xff] %v5503_v49 }
 0x17c   : > { %1143 = vst [vmem:[#allocation5 + $0x80] sm:$0xff] %v5503_v49  ;;  %1144 = vst [vmem:[#allocation5 + $0x88] sm:$0xff] %v5503_v49 }
 0x17d   : > { %914 = vmatpush1.bf16.msra.mxu0 %v4785_v31  ;;  %4528 = vmatpush1.bf16.msra.mxu1 %v4785_v31  ;;  %1145 = vst [vmem:[#allocation5 + $0x90] sm:$0xff] %v5503_v49  ;;  %1146 = vst [vmem:[#allocation5 + $0x98] sm:$0xff] %v5503_v49 }
 0x17e   : > { %915 = vmatprep.subr.bf16.mxu0 %v4786_v32  ;;  %4513 = vmatprep.subr.bf16.mxu1 %v4786_v32  ;;  %1147 = vst [vmem:[#allocation5 + $0xa0] sm:$0xff] %v5503_v49  ;;  %1148 = vst [vmem:[#allocation5 + $0xa8] sm:$0xff] %v5503_v49 }
 0x17f   : > { %1149 = vst [vmem:[#allocation5 + $0xb0] sm:$0xff] %v5503_v49  ;;  %1150 = vst [vmem:[#allocation5 + $0xb8] sm:$0xff] %v5503_v49 }
 0x180   : > { %1151 = vst [vmem:[#allocation5 + $0xc0] sm:$0xff] %v5503_v49  ;;  %1152 = vst [vmem:[#allocation5 + $0xc8] sm:$0xff] %v5503_v49 }
 0x181   : > { %916 = vmatpush1.bf16.msra.mxu0 %v4788_v33  ;;  %4529 = vmatpush1.bf16.msra.mxu1 %v4788_v33  ;;  %1153 = vst [vmem:[#allocation5 + $0xd0] sm:$0xff] %v5503_v49  ;;  %1154 = vst [vmem:[#allocation5 + $0xd8] sm:$0xff] %v5503_v49 }
 0x182   : > { %1155 = vst [vmem:[#allocation5 + $0xe0] sm:$0xff] %v5503_v49  ;;  %1156 = vst [vmem:[#allocation5 + $0xe8] sm:$0xff] %v5503_v49 }
 0x183   : > { %1157 = vst [vmem:[#allocation5 + $0xf0] sm:$0xff] %v5503_v49  ;;  %1158 = vst [vmem:[#allocation5 + $0xf8] sm:$0xff] %v5503_v49 }
 0x184   : > { %918 = vmatmul.mubr.bf16.vlgmr.msra.gmra.mrb[0].mxu0 %v4789_v34  ;;  %958 = vmatmul.mubr.bf16.vlgmr.msra.gmra.mrb[0].mxu1 %v4792_v35 }
 0x185   : > { %927 = vmatprep.mubr.bf16.mxu0 %v4795_v36  ;;  %967 = vmatprep.mubr.bf16.mxu1 %v4797_v37 }
 0x18c   : > { %928 = vmatmul.mubr.bf16.gmra.mrb[4].mxu0 %v4799_v38  ;;  %968 = vmatmul.mubr.bf16.gmra.mrb[4].mxu1 %v4800_v39 }
 0x18d   : > { %937 = vmatprep.mubr.bf16.mxu0 %v4801_v40  ;;  %977 = vmatprep.mubr.bf16.mxu1 %v4803_v41 }
 0x194   : > { %938 = vmatmul.mubr.bf16.gmra.mrb[8].mxu0 %v4805_v42  ;;  %978 = vmatmul.mubr.bf16.gmra.mrb[8].mxu1 %v4806_v43 }
 0x195   : > { %947 = vmatprep.mubr.bf16.mxu0 %v4807_v44  ;;  %987 = vmatprep.mubr.bf16.mxu1 %v4809_v45 }
 0x19c   : > { %948 = vmatmul.mubr.bf16.gmra.mrb[12].mxu0 %v4811_v46  ;;  %988 = vmatmul.mubr.bf16.gmra.mrb[12].mxu1 %v4812_v47 }
 0x257   : > { %v919_v57 = vpop.f32.mrb[0].mxu0  ;;  %v959_v58 = vpop.f32.mrb[0].mxu1 }
 0x258   : > { %v920_v59 = vadd.f32 %v919_v57, %v6167_v55  ;;  %v960_v60 = vadd.f32 %v959_v58, %v6167_v55  ;;  %v921_v61 = vpop.f32.mrb[1].mxu0  ;;  %v961_v62 = vpop.f32.mrb[1].mxu1 }
 0x259   : > { %v922_v63 = vadd.f32 %v921_v61, %v6169_v56  ;;  %v962_v0 = vadd.f32 %v961_v62, %v6169_v56  ;;  %v923_v1 = vpop.f32.mrb[2].mxu0  ;;  %v963_v2 = vpop.f32.mrb[2].mxu1 }
 0x25a   : > { %v924_v3 = vadd.f32 %v923_v1, %v6167_v55  ;;  %v964_v4 = vadd.f32 %v963_v2, %v6167_v55  ;;  %v925_v5 = vpop.f32.mrb[3].mxu0  ;;  %v965_v6 = vpop.f32.mrb[3].mxu1  ;;  %v998_v7 = vmul.f32 0.088388346, %v920_v59  ;;  %v1014_v8 = vmul.f32 0.088388346, %v960_v60 }
 0x25b   : > { %v926_v9 = vadd.f32 %v925_v5, %v6169_v56  ;;  %v966_v10 = vadd.f32 %v965_v6, %v6169_v56  ;;  %v999_v11 = vmul.f32 0.088388346, %v922_v63  ;;  %v1015_v14 = vmul.f32 0.088388346, %v962_v0 }
 0x25c   : > { %v1000_v12 = vmul.f32 0.088388346, %v924_v3  ;;  %v1016_v13 = vmul.f32 0.088388346, %v964_v4 }
 0x25d   : > { %v1001_v15 = vmul.f32 0.088388346, %v926_v9  ;;  %v1017_v16 = vmul.f32 0.088388346, %v966_v10 }
 0x25e   : > { %v1030_v17 = vpack.c.bf16 %v1000_v12, %v998_v7  ;;  %v1034_v18 = vpack.c.bf16 %v1016_v13, %v1014_v8 }
 0x25f   : > { %v1046_v19 = vpack.c.bf16 %v1001_v15, %v999_v11  ;;  %v1050_v20 = vpack.c.bf16 %v1017_v16, %v1015_v14  ;;  %v929_v21 = vpop.f32.mrb[4].mxu0  ;;  %v969_v22 = vpop.f32.mrb[4].mxu1 }
 0x260   : > { %1038 = vst [vmem:[#allocation2] sm:$0xff] %v1030_v17  ;;  %1042 = vst [vmem:[#allocation2 + $0x20] sm:$0xff] %v1034_v18  ;;  %v930_v23 = vadd.f32 %v929_v21, %v6167_v55  ;;  %v970_v24 = vadd.f32 %v969_v22, %v6167_v55  ;;  %v931_v25 = vpop.f32.mrb[5].mxu0  ;;  %v971_v26 = vpop.f32.mrb[5].mxu1 }
 0x261   : > { %1054 = vst [vmem:[#allocation2 + $0x40] sm:$0xff] %v1046_v19  ;;  %1058 = vst [vmem:[#allocation2 + $0x60] sm:$0xff] %v1050_v20  ;;  %v932_v27 = vadd.f32 %v931_v25, %v6169_v56  ;;  %v972_v28 = vadd.f32 %v971_v26, %v6169_v56  ;;  %v933_v29 = vpop.f32.mrb[6].mxu0  ;;  %v973_v30 = vpop.f32.mrb[6].mxu1 }
 0x262   : > { %v934_v31 = vadd.f32 %v933_v29, %v6167_v55  ;;  %v974_v32 = vadd.f32 %v973_v30, %v6167_v55  ;;  %v935_v33 = vpop.f32.mrb[7].mxu0  ;;  %v975_v34 = vpop.f32.mrb[7].mxu1  ;;  %v1002_v35 = vmul.f32 0.088388346, %v930_v23  ;;  %v1018_v36 = vmul.f32 0.088388346, %v970_v24 }
 0x263   : > { %v936_v37 = vadd.f32 %v935_v33, %v6169_v56  ;;  %v976_v38 = vadd.f32 %v975_v34, %v6169_v56  ;;  %v1003_v39 = vmul.f32 0.088388346, %v932_v27  ;;  %v1019_v42 = vmul.f32 0.088388346, %v972_v28 }
 0x264   : > { %v1004_v40 = vmul.f32 0.088388346, %v934_v31  ;;  %v1020_v41 = vmul.f32 0.088388346, %v974_v32 }
 0x265   : > { %v1005_v43 = vmul.f32 0.088388346, %v936_v37  ;;  %v1021_v44 = vmul.f32 0.088388346, %v976_v38 }
 0x266   : > { %v1031_v45 = vpack.c.bf16 %v1004_v40, %v1002_v35  ;;  %v1035_v46 = vpack.c.bf16 %v1020_v41, %v1018_v36 }
 0x267   : > { %v1047_v47 = vpack.c.bf16 %v1005_v43, %v1003_v39  ;;  %v1051_v48 = vpack.c.bf16 %v1021_v44, %v1019_v42  ;;  %v939_v49 = vpop.f32.mrb[8].mxu0  ;;  %v979_v50 = vpop.f32.mrb[8].mxu1 }
 0x268   : > { %1039 = vst [vmem:[#allocation2 + $0x8] sm:$0xff] %v1031_v45  ;;  %1043 = vst [vmem:[#allocation2 + $0x28] sm:$0xff] %v1035_v46  ;;  %v940_v51 = vadd.f32 %v939_v49, %v6167_v55  ;;  %v980_v52 = vadd.f32 %v979_v50, %v6167_v55  ;;  %v941_v53 = vpop.f32.mrb[9].mxu0  ;;  %v981_v54 = vpop.f32.mrb[9].mxu1 }
 0x269   : > { %1055 = vst [vmem:[#allocation2 + $0x48] sm:$0xff] %v1047_v47  ;;  %1059 = vst [vmem:[#allocation2 + $0x68] sm:$0xff] %v1051_v48  ;;  %v942_v57 = vadd.f32 %v941_v53, %v6169_v56  ;;  %v982_v58 = vadd.f32 %v981_v54, %v6169_v56  ;;  %v943_v59 = vpop.f32.mrb[10].mxu0  ;;  %v983_v60 = vpop.f32.mrb[10].mxu1 }
 0x26a   : > { %v944_v61 = vadd.f32 %v943_v59, %v6167_v55  ;;  %v984_v62 = vadd.f32 %v983_v60, %v6167_v55  ;;  %v945_v63 = vpop.f32.mrb[11].mxu0  ;;  %v985_v0 = vpop.f32.mrb[11].mxu1  ;;  %v1006_v1 = vmul.f32 0.088388346, %v940_v51  ;;  %v1022_v2 = vmul.f32 0.088388346, %v980_v52 }
 0x26b   : > { %v946_v3 = vadd.f32 %v945_v63, %v6169_v56  ;;  %v986_v4 = vadd.f32 %v985_v0, %v6169_v56  ;;  %v1007_v5 = vmul.f32 0.088388346, %v942_v57  ;;  %v1023_v8 = vmul.f32 0.088388346, %v982_v58 }
 0x26c   : > { %v1008_v6 = vmul.f32 0.088388346, %v944_v61  ;;  %v1024_v7 = vmul.f32 0.088388346, %v984_v62 }
 0x26d   : > { %v1009_v9 = vmul.f32 0.088388346, %v946_v3  ;;  %v1025_v10 = vmul.f32 0.088388346, %v986_v4 }
 0x26e   : > { %v1032_v11 = vpack.c.bf16 %v1008_v6, %v1006_v1  ;;  %v1036_v12 = vpack.c.bf16 %v1024_v7, %v1022_v2 }
 0x26f   : > { %v1048_v13 = vpack.c.bf16 %v1009_v9, %v1007_v5  ;;  %v1052_v14 = vpack.c.bf16 %v1025_v10, %v1023_v8  ;;  %v949_v15 = vpop.f32.mrb[12].mxu0  ;;  %v989_v16 = vpop.f32.mrb[12].mxu1 }
 0x270   : > { %1040 = vst [vmem:[#allocation2 + $0x10] sm:$0xff] %v1032_v11  ;;  %1044 = vst [vmem:[#allocation2 + $0x30] sm:$0xff] %v1036_v12  ;;  %v950_v17 = vadd.f32 %v949_v15, %v6167_v55  ;;  %v990_v18 = vadd.f32 %v989_v16, %v6167_v55  ;;  %v951_v19 = vpop.f32.mrb[13].mxu0  ;;  %v991_v20 = vpop.f32.mrb[13].mxu1 }
 0x271   : > { %1056 = vst [vmem:[#allocation2 + $0x50] sm:$0xff] %v1048_v13  ;;  %1060 = vst [vmem:[#allocation2 + $0x70] sm:$0xff] %v1052_v14  ;;  %v952_v21 = vadd.f32 %v951_v19, %v6169_v56  ;;  %v992_v22 = vadd.f32 %v991_v20, %v6169_v56  ;;  %v953_v23 = vpop.f32.mrb[14].mxu0  ;;  %v993_v24 = vpop.f32.mrb[14].mxu1 }
 0x272   : > { %v954_v25 = vadd.f32 %v953_v23, %v6167_v55  ;;  %v994_v26 = vadd.f32 %v993_v24, %v6167_v55  ;;  %v955_v27 = vpop.f32.mrb[15].mxu0  ;;  %v995_v28 = vpop.f32.mrb[15].mxu1  ;;  %v1010_v29 = vmul.f32 0.088388346, %v950_v17  ;;  %v1026_v30 = vmul.f32 0.088388346, %v990_v18 }
 0x273   : > { %v956_v31 = vadd.f32 %v955_v27, %v6169_v56  ;;  %v996_v32 = vadd.f32 %v995_v28, %v6169_v56  ;;  %v1011_v33 = vmul.f32 0.088388346, %v952_v21  ;;  %v1027_v36 = vmul.f32 0.088388346, %v992_v22 }
 0x274   : > { %v1012_v34 = vmul.f32 0.088388346, %v954_v25  ;;  %v1028_v35 = vmul.f32 0.088388346, %v994_v26 }
 0x275   : > { %v1013_v37 = vmul.f32 0.088388346, %v956_v31  ;;  %v1029_v38 = vmul.f32 0.088388346, %v996_v32 }
 0x276   : > { %v1033_v39 = vpack.c.bf16 %v1012_v34, %v1010_v29  ;;  %v1037_v40 = vpack.c.bf16 %v1028_v35, %v1026_v30 }
 0x277   : > { %v1049_v41 = vpack.c.bf16 %v1013_v37, %v1011_v33  ;;  %v1053_v42 = vpack.c.bf16 %v1029_v38, %v1027_v36 }
 0x278   : > { %1041 = vst [vmem:[#allocation2 + $0x18] sm:$0xff] %v1033_v39  ;;  %1045 = vst [vmem:[#allocation2 + $0x38] sm:$0xff] %v1037_v40 }
 0x279   : > { %1057 = vst [vmem:[#allocation2 + $0x58] sm:$0xff] %v1049_v41  ;;  %1061 = vst [vmem:[#allocation2 + $0x78] sm:$0xff] %v1053_v42 }
 0x27a PF: > { %v4815_v55 = vld [vmem:[#allocation14 + $0x40] sm:$0xff]   ;;  %v4817_v44 = vld [vmem:[#allocation14 + $0x48] sm:$0xff]   ;;  %v4819_v45 = vld [vmem:[#allocation14 + $0x50] sm:$0xff]   ;;  %s7340_s0 = sld [smem:[#allocation80_spill]]  ;;  %s7373_s13 = sld [smem:[#allocation82_spill]]  ;;  %vm2640_vm1 = vcmask 7168  }
 0x27b   : > { %v4816_v43 = vld [vmem:[#allocation14] sm:$0xff]   ;;  %4226 = vmatprep.subr.bf16.mxu0 %v4815_v55  ;;  %v4818_v56 = vld [vmem:[#allocation14 + $0x8] sm:$0xff]   ;;  %v4820_v46 = vld [vmem:[#allocation14 + $0x10] sm:$0xff]   ;;  %s7440_s5 = sld [smem:[#allocation27_spill]] }
 0x27c   : > { %4227 = vmatpush3.bf16.msra.mxu0 %v4816_v43  ;;  %v4821_v47 = vld [vmem:[#allocation14 + $0x58] sm:$0xff]   ;;  %v4823_v49 = vld [vmem:[#allocation14 + $0x60] sm:$0xff]   ;;  %v4825_v51 = vld [vmem:[#allocation14 + $0x68] sm:$0xff]  }
 0x27d   : > { %4228 = vmatprep.subr.bf16.mxu0 %v4817_v44  ;;  %v4822_v48 = vld [vmem:[#allocation14 + $0x18] sm:$0xff]   ;;  %v4824_v50 = vld [vmem:[#allocation14 + $0x20] sm:$0xff]   ;;  %v4826_v53 = vld [vmem:[#allocation14 + $0x28] sm:$0xff]  }
 0x27e   : > { %v4833_v52 = vld [vmem:[%s6000_s23 + $0x4] ss:$8 sps:$4 sm:$0xff]   ;;  %v4827_v54 = vld [vmem:[#allocation14 + $0x70] sm:$0xff]   ;;  %v4829_v58 = vld [vmem:[#allocation14 + $0x78] sm:$0xff]  }
 0x27f   : > { %1422 = vmatprep.mubr.bf16.mxu0 %v4833_v52  ;;  %v4828_v57 = vld [vmem:[#allocation14 + $0x30] sm:$0xff]   ;;  %v4830_v59 = vld [vmem:[#allocation14 + $0x38] sm:$0xff]   ;;  %v4831_v60 = vld [vmem:[%s6000_s23] ss:$8 sps:$4 sm:$0xff]  }
 0x280   : > { %4229 = vmatpush3.bf16.msra.mxu0 %v4818_v56  ;;  %v4834_v61 = vld [vmem:[%s6000_s23 + $0x14] ss:$8 sps:$4 sm:$0xff]   ;;  %v4836_v62 = vld [vmem:[%s6000_s23 + $0x10] ss:$8 sps:$4 sm:$0xff]   ;;  %v4837_v63 = vld [vmem:[%s6000_s23 + $0x24] ss:$8 sps:$4 sm:$0xff]  }
 0x281   : > { %4230 = vmatprep.subr.bf16.mxu0 %v4819_v45  ;;  %v4839_v0 = vld [vmem:[%s6000_s23 + $0x20] ss:$8 sps:$4 sm:$0xff]   ;;  %v4840_v1 = vld [vmem:[%s6000_s23 + $0x34] ss:$8 sps:$4 sm:$0xff]   ;;  %v4842_v2 = vld [vmem:[%s6000_s23 + $0x30] ss:$8 sps:$4 sm:$0xff]  }
 0x282   : > { %v4843_v3 = vld [vmem:[%s6000_s23 + $0x44] ss:$8 sps:$4 sm:$0xff]   ;;  %v4845_v4 = vld [vmem:[%s6000_s23 + $0x40] ss:$8 sps:$4 sm:$0xff]   ;;  %v4846_v5 = vld [vmem:[%s6000_s23 + $0x54] ss:$8 sps:$4 sm:$0xff]  }
 0x283   : > { %v4848_v6 = vld [vmem:[%s6000_s23 + $0x50] ss:$8 sps:$4 sm:$0xff]   ;;  %v4849_v7 = vld [vmem:[%s6000_s23 + $0x64] ss:$8 sps:$4 sm:$0xff]   ;;  %v4851_v8 = vld [vmem:[%s6000_s23 + $0x60] ss:$8 sps:$4 sm:$0xff]  }
 0x284   : > { %4231 = vmatpush3.bf16.msra.mxu0 %v4820_v46  ;;  %v4852_v9 = vld [vmem:[%s6000_s23 + $0x74] ss:$8 sps:$4 sm:$0xff]   ;;  %v4854_v10 = vld [vmem:[%s6000_s23 + $0x70] ss:$8 sps:$4 sm:$0xff]   ;;  %v1815_v11 = vld [vmem:[#allocation2] sm:$0xff]  ;;  %p4182_p8 = scmp.ne.s32.totalorder %s7440_s5, 1 }
 0x285   : > { %4232 = vmatprep.subr.bf16.mxu0 %v4821_v47  ;;  %v4855_v16 = vld [vmem:[#allocation15 + $0x40] sm:$0xff]   ;;  %v4857_v18 = vld [vmem:[#allocation15 + $0x48] sm:$0xff]   ;;  %v4859_v25 = vld [vmem:[#allocation15 + $0x50] sm:$0xff]   ;;  %s7441_s17 = sld [smem:[#allocation84_spill]] (!%p4182_p8) }
 0x286   : > { %v4856_v17 = vld [vmem:[#allocation15] sm:$0xff]   ;;  %4290 = vmatprep.subr.bf16.mxu1 %v4855_v16  ;;  %v4858_v22 = vld [vmem:[#allocation15 + $0x8] sm:$0xff]   ;;  %v4860_v29 = vld [vmem:[#allocation15 + $0x10] sm:$0xff]  }
 0x287   : > { %v6222_v19 = vld [vmem:[%s7340_s0] ss:$0 sm:$0xff]  ;;  %4291 = vmatpush3.bf16.msra.mxu1 %v4856_v17  ;;  %v4861_v32 = vld [vmem:[#allocation15 + $0x58] sm:$0xff]  }
 0x288   : > { %4233 = vmatpush3.bf16.msra.mxu0 %v4822_v48  ;;  %4292 = vmatprep.subr.bf16.mxu1 %v4857_v18  ;;  %v4862_v35 = vld [vmem:[#allocation15 + $0x18] sm:$0xff]  }
 0x289   : > { %4234 = vmatprep.subr.bf16.mxu0 %v4823_v49 }
 0x28b   : > { %4293 = vmatpush3.bf16.msra.mxu1 %v4858_v22 }
 0x28c   : > { %4235 = vmatpush3.bf16.msra.mxu0 %v4824_v50  ;;  %4294 = vmatprep.subr.bf16.mxu1 %v4859_v25 }
 0x28d   : > { %4236 = vmatprep.subr.bf16.mxu0 %v4825_v51 }
 0x28f   : > { %4295 = vmatpush3.bf16.msra.mxu1 %v4860_v29 }
 0x290   : > { %4237 = vmatpush3.bf16.msra.mxu0 %v4826_v53  ;;  %4296 = vmatprep.subr.bf16.mxu1 %v4861_v32  ;;  %v1818_v32 = vld [vmem:[#allocation2 + $0x18] sm:$0xff] }
 0x291   : > { %4238 = vmatprep.subr.bf16.mxu0 %v4827_v54 }
 0x293   : > { %4297 = vmatpush3.bf16.msra.mxu1 %v4862_v35  ;;  %v1821_v35 = vld [vmem:[#allocation2 + $0x30] sm:$0xff] }
 0x294   : > { %4239 = vmatpush3.bf16.msra.mxu0 %v4828_v57 }
 0x295   : > { %4240 = vmatprep.subr.bf16.mxu0 %v4829_v58 }
 0x298   : > { %4241 = vmatpush3.bf16.msra.mxu0 %v4830_v59 }
 0x29b   : > { %1423 = vmatmul.mubr.bf16.vlgmr.msra.gmra.mrb[0].mxu0 %v4831_v60 }
 0x29c   : > { %1430 = vmatprep.mubr.bf16.mxu0 %v4834_v61 }
 0x2a3   : > { %1431 = vmatmul.mubr.bf16.gmra.mrb[4].mxu0 %v4836_v62 }
 0x2a4   : > { %1438 = vmatprep.mubr.bf16.mxu0 %v4837_v63 }
 0x2ab   : > { %1439 = vmatmul.mubr.bf16.gmra.mrb[8].mxu0 %v4839_v0 }
 0x2ac   : > { %1446 = vmatprep.mubr.bf16.mxu0 %v4840_v1 }
 0x2b3   : > { %1447 = vmatmul.mubr.bf16.gmra.mrb[12].mxu0 %v4842_v2 }
 0x2b4   : > { %1454 = vmatprep.mubr.bf16.mxu0 %v4843_v3 }
 0x2bb   : > { %1455 = vmatmul.mubr.bf16.gmra.mrb[16].mxu0 %v4845_v4 }
 0x2bc   : > { %1462 = vmatprep.mubr.bf16.mxu0 %v4846_v5 }
 0x2c3   : > { %1463 = vmatmul.mubr.bf16.gmra.mrb[20].mxu0 %v4848_v6 }
 0x2c4   : > { %1470 = vmatprep.mubr.bf16.mxu0 %v4849_v7 }
 0x2cb   : > { %1471 = vmatmul.mubr.bf16.gmra.mrb[24].mxu0 %v4851_v8 }
 0x2cc   : > { %1478 = vmatprep.mubr.bf16.mxu0 %v4852_v9 }
 0x2d3   : > { %1479 = vmatmul.mubr.bf16.gmra.mrb[28].mxu0 %v4854_v10 }
 0x2d4   : > { %4418 = vmatprep.mubr.bf16.mxu0 %v1815_v11 }
 0x36e   : > { %v4242_v12 = vpop.f32.mrb[0].mxu0 }
 0x36f   : > { %v4243_v13 = vpop.f32.mrb[1].mxu0 }
 0x370   : > { %v4244_v14 = vadd.f32 %v4243_v13, %v4242_v12  ;;  %v4245_v15 = vpop.f32.mrb[2].mxu0 }
 0x371   : > { %v4246_v20 = vpop.f32.mrb[3].mxu0 }
 0x372   : > { %v4247_v21 = vadd.f32 %v4246_v20, %v4245_v15  ;;  %v1425_v23 = vadd.f32 %v4244_v14, %v6222_v19 }
 0x374   : > { %v1428_v24 = vadd.f32 %v4247_v21, %v6222_v19 }
 0x376   : > { %v4248_v26 = vpop.f32.mrb[4].mxu0  ;;  %v1831_v27 = vpack.c.bf16 %v1428_v24, %v1425_v23 }
 0x377   : > { %v4249_v28 = vpop.f32.mrb[5].mxu0 }
 0x378   : > { %v4250_v30 = vadd.f32 %v4249_v28, %v4248_v26  ;;  %v4251_v31 = vpop.f32.mrb[6].mxu0  ;;  %4402 = vmatprep.subr.bf16.mxu0 %v1831_v27 }
 0x379   : > { %v4252_v33 = vpop.f32.mrb[7].mxu0  ;;  %4403 = vmatpush3.bf16.xpose.msra.mxu0 %v1831_v27 }
 0x37a   : > { %v4253_v34 = vadd.f32 %v4252_v33, %v4251_v31  ;;  %v1433_v36 = vadd.f32 %v4250_v30, %v6222_v19  ;;  %v1816_v30 = vld [vmem:[#allocation2 + $0x8] sm:$0xff]  ;;  %v1817_v31 = vld [vmem:[#allocation2 + $0x10] sm:$0xff]  ;;  %v1819_v33 = vld [vmem:[#allocation2 + $0x20] sm:$0xff] }
 0x37c   : > { %v1436_v37 = vadd.f32 %v4253_v34, %v6222_v19  ;;  %v1820_v34 = vld [vmem:[#allocation2 + $0x28] sm:$0xff] }
 0x37e   : > { %v4254_v38 = vpop.f32.mrb[8].mxu0  ;;  %v1832_v39 = vpack.c.bf16 %v1436_v37, %v1433_v36  ;;  %v1822_v36 = vld [vmem:[#allocation2 + $0x38] sm:$0xff]  ;;  %v1823_v37 = vld [vmem:[#allocation2 + $0x40] sm:$0xff] }
 0x37f   : > { %v4255_v40 = vpop.f32.mrb[9].mxu0 }
 0x380   : > { %v4256_v41 = vadd.f32 %v4255_v40, %v4254_v38  ;;  %v4257_v42 = vpop.f32.mrb[10].mxu0  ;;  %4404 = vmatprep.subr.bf16.mxu0 %v1832_v39  ;;  %v1825_v38 = vld [vmem:[#allocation2 + $0x50] sm:$0xff]  ;;  %v1827_v40 = vld [vmem:[#allocation2 + $0x60] sm:$0xff] }
 0x381   : > { %v4258_v55 = vpop.f32.mrb[11].mxu0  ;;  %4405 = vmatpush3.bf16.xpose.msra.mxu0 %v1832_v39  ;;  %v1826_v39 = vld [vmem:[#allocation2 + $0x58] sm:$0xff] }
 0x382   : > { %v4259_v43 = vadd.f32 %v4258_v55, %v4257_v42  ;;  %v1441_v44 = vadd.f32 %v4256_v41, %v6222_v19  ;;  %v1828_v41 = vld [vmem:[#allocation2 + $0x68] sm:$0xff]  ;;  %v1829_v42 = vld [vmem:[#allocation2 + $0x70] sm:$0xff]  ;;  %v1830_v55 = vld [vmem:[#allocation2 + $0x78] sm:$0xff] }
 0x384   : > { %v1444_v56 = vadd.f32 %v4259_v43, %v6222_v19  ;;  %v4863_v43 = vld [vmem:[#allocation15 + $0x60] sm:$0xff]  }
 0x385   : > { %4298 = vmatprep.subr.bf16.mxu1 %v4863_v43 }
 0x386   : > { %v4260_v45 = vpop.f32.mrb[12].mxu0  ;;  %v1833_v46 = vpack.c.bf16 %v1444_v56, %v1441_v44  ;;  %v4864_v44 = vld [vmem:[#allocation15 + $0x20] sm:$0xff]   ;;  %v4865_v56 = vld [vmem:[#allocation15 + $0x68] sm:$0xff]  }
 0x387   : > { %v4261_v47 = vpop.f32.mrb[13].mxu0  ;;  %4299 = vmatpush3.bf16.msra.mxu1 %v4864_v44 }
 0x388   : > { %v4262_v48 = vadd.f32 %v4261_v47, %v4260_v45  ;;  %v4263_v49 = vpop.f32.mrb[14].mxu0  ;;  %4406 = vmatprep.subr.bf16.mxu0 %v1833_v46  ;;  %4300 = vmatprep.subr.bf16.mxu1 %v4865_v56  ;;  %v4866_v45 = vld [vmem:[#allocation15 + $0x28] sm:$0xff]   ;;  %v4868_v47 = vld [vmem:[#allocation15 + $0x30] sm:$0xff]  }
 0x389   : > { %v4264_v50 = vpop.f32.mrb[15].mxu0  ;;  %4407 = vmatpush3.bf16.xpose.msra.mxu0 %v1833_v46  ;;  %v4867_v46 = vld [vmem:[#allocation15 + $0x70] sm:$0xff]  }
 0x38a   : > { %v4265_v51 = vadd.f32 %v4264_v50, %v4263_v49  ;;  %v1449_v52 = vadd.f32 %v4262_v48, %v6222_v19  ;;  %v4869_v48 = vld [vmem:[#allocation15 + $0x78] sm:$0xff]   ;;  %v4871_v50 = vld [vmem:[%s6006_s9] ss:$8 sps:$4 sm:$0xff]  }
 0x38b   : > { %4301 = vmatpush3.bf16.msra.mxu1 %v4866_v45  ;;  %v4870_v49 = vld [vmem:[#allocation15 + $0x38] sm:$0xff]  }
 0x38c   : > { %v1452_v53 = vadd.f32 %v4265_v51, %v6222_v19  ;;  %4302 = vmatprep.subr.bf16.mxu1 %v4867_v46  ;;  %v4873_v51 = vld [vmem:[%s6006_s9 + $0x4] ss:$8 sps:$4 sm:$0xff]  }
 0x38d   : > { %1750 = vmatprep.mubr.bf16.mxu1 %v4873_v51 }
 0x38e   : > { %v4266_v54 = vpop.f32.mrb[16].mxu0  ;;  %v1834_v57 = vpack.c.bf16 %v1452_v53, %v1449_v52  ;;  %v4874_v52 = vld [vmem:[%s6006_s9 + $0x14] ss:$8 sps:$4 sm:$0xff]   ;;  %v4876_v53 = vld [vmem:[%s6006_s9 + $0x10] ss:$8 sps:$4 sm:$0xff]  }
 0x38f   : > { %v4267_v58 = vpop.f32.mrb[17].mxu0  ;;  %4303 = vmatpush3.bf16.msra.mxu1 %v4868_v47 }
 0x390   : > { %v4268_v59 = vadd.f32 %v4267_v58, %v4266_v54  ;;  %v4269_v60 = vpop.f32.mrb[18].mxu0  ;;  %4408 = vmatprep.subr.bf16.mxu0 %v1834_v57  ;;  %4304 = vmatprep.subr.bf16.mxu1 %v4869_v48  ;;  %v4877_v54 = vld [vmem:[%s6006_s9 + $0x24] ss:$8 sps:$4 sm:$0xff]   ;;  %v4880_v58 = vld [vmem:[%s6006_s9 + $0x34] ss:$8 sps:$4 sm:$0xff]  }
 0x391   : > { %v4270_v61 = vpop.f32.mrb[19].mxu0  ;;  %4409 = vmatpush3.bf16.xpose.msra.mxu0 %v1834_v57  ;;  %v4879_v57 = vld [vmem:[%s6006_s9 + $0x20] ss:$8 sps:$4 sm:$0xff]  }
 0x392   : > { %v4271_v62 = vadd.f32 %v4270_v61, %v4269_v60  ;;  %v1457_v63 = vadd.f32 %v4268_v59, %v6222_v19  ;;  %v4882_v59 = vld [vmem:[%s6006_s9 + $0x30] ss:$8 sps:$4 sm:$0xff]   ;;  %v4883_v60 = vld [vmem:[%s6006_s9 + $0x44] ss:$8 sps:$4 sm:$0xff]   ;;  %v4885_v61 = vld [vmem:[%s6006_s9 + $0x40] ss:$8 sps:$4 sm:$0xff]  }
 0x393   : > { %4305 = vmatpush3.bf16.msra.mxu1 %v4870_v49 }
 0x394   : > { %v1460_v0 = vadd.f32 %v4271_v62, %v6222_v19  ;;  %v4886_v62 = vld [vmem:[%s6006_s9 + $0x54] ss:$8 sps:$4 sm:$0xff]  }
 0x396   : > { %v4272_v1 = vpop.f32.mrb[20].mxu0  ;;  %v1835_v2 = vpack.c.bf16 %v1460_v0, %v1457_v63  ;;  %1751 = vmatmul.mubr.bf16.vlgmr.msra.gmra.mrb[0].mxu1 %v4871_v50  ;;  %v4888_v63 = vld [vmem:[%s6006_s9 + $0x50] ss:$8 sps:$4 sm:$0xff]   ;;  %v4889_v0 = vld [vmem:[%s6006_s9 + $0x64] ss:$8 sps:$4 sm:$0xff]  }
 0x397   : > { %v4273_v3 = vpop.f32.mrb[21].mxu0  ;;  %1758 = vmatprep.mubr.bf16.mxu1 %v4874_v52 }
 0x398   : > { %v4274_v4 = vadd.f32 %v4273_v3, %v4272_v1  ;;  %v4275_v5 = vpop.f32.mrb[22].mxu0  ;;  %4410 = vmatprep.subr.bf16.mxu0 %v1835_v2  ;;  %v4891_v1 = vld [vmem:[%s6006_s9 + $0x60] ss:$8 sps:$4 sm:$0xff]   ;;  %v4894_v3 = vld [vmem:[%s6006_s9 + $0x70] ss:$8 sps:$4 sm:$0xff]  }
 0x399   : > { %v4276_v6 = vpop.f32.mrb[23].mxu0  ;;  %4411 = vmatpush3.bf16.xpose.msra.mxu0 %v1835_v2  ;;  %v4892_v2 = vld [vmem:[%s6006_s9 + $0x74] ss:$8 sps:$4 sm:$0xff]  }
 0x39a   : > { %v4277_v7 = vadd.f32 %v4276_v6, %v4275_v5  ;;  %v1465_v8 = vadd.f32 %v4274_v4, %v6222_v19 }
 0x39c   : > { %v1468_v9 = vadd.f32 %v4277_v7, %v6222_v19 }
 0x39e   : > { %v4278_v10 = vpop.f32.mrb[24].mxu0  ;;  %v1836_v11 = vpack.c.bf16 %v1468_v9, %v1465_v8  ;;  %1759 = vmatmul.mubr.bf16.gmra.mrb[4].mxu1 %v4876_v53 }
 0x39f   : > { %v4279_v12 = vpop.f32.mrb[25].mxu0  ;;  %1766 = vmatprep.mubr.bf16.mxu1 %v4877_v54 }
 0x3a0   : > { %v4280_v13 = vadd.f32 %v4279_v12, %v4278_v10  ;;  %v4281_v14 = vpop.f32.mrb[26].mxu0  ;;  %4412 = vmatprep.subr.bf16.mxu0 %v1836_v11 }
 0x3a1   : > { %v4282_v15 = vpop.f32.mrb[27].mxu0  ;;  %4413 = vmatpush3.bf16.xpose.msra.mxu0 %v1836_v11 }
 0x3a2   : > { %v4283_v16 = vadd.f32 %v4282_v15, %v4281_v14  ;;  %v1473_v17 = vadd.f32 %v4280_v13, %v6222_v19  ;;  %v5504_v13 = vmov 0  }
 0x3a3   : > { %4814 = vset.pattern.permute.xlu1 %v5504_v13  ;;  %4813 = vset.pattern.permute.xlu0 %v5504_v13 }
 0x3a4   : > { %v1476_v18 = vadd.f32 %v4283_v16, %v6222_v19 }
 0x3a6   : > { %v4284_v20 = vpop.f32.mrb[28].mxu0  ;;  %v1837_v21 = vpack.c.bf16 %v1476_v18, %v1473_v17  ;;  %1767 = vmatmul.mubr.bf16.gmra.mrb[8].mxu1 %v4879_v57 }
 0x3a7   : > { %v4285_v22 = vpop.f32.mrb[29].mxu0  ;;  %1774 = vmatprep.mubr.bf16.mxu1 %v4880_v58 }
 0x3a8   : > { %v4286_v23 = vadd.f32 %v4285_v22, %v4284_v20  ;;  %v4287_v24 = vpop.f32.mrb[30].mxu0  ;;  %4414 = vmatprep.subr.bf16.mxu0 %v1837_v21 }
 0x3a9   : > { %v4288_v25 = vpop.f32.mrb[31].mxu0  ;;  %4415 = vmatpush3.bf16.xpose.msra.mxu0 %v1837_v21 }
 0x3aa   : > { %v4289_v26 = vadd.f32 %v4288_v25, %v4287_v24  ;;  %v1481_v27 = vadd.f32 %v4286_v23, %v6222_v19 }
 0x3ac   : > { %v1484_v28 = vadd.f32 %v4289_v26, %v6222_v19  ;;  %v1824_v19 = vld [vmem:[#allocation2 + $0x48] sm:$0xff] }
 0x3ae   : > { %v1838_v29 = vpack.c.bf16 %v1484_v28, %v1481_v27  ;;  %1775 = vmatmul.mubr.bf16.gmra.mrb[12].mxu1 %v4882_v59 }
 0x3af   : > { %1782 = vmatprep.mubr.bf16.mxu1 %v4883_v60 }
 0x3b0   : > { %4416 = vmatprep.subr.bf16.mxu0 %v1838_v29 }
 0x3b1   : > { %4417 = vmatpush3.bf16.xpose.msra.mxu0 %v1838_v29 }
 0x3b6   : > { %1783 = vmatmul.mubr.bf16.gmra.mrb[16].mxu1 %v4885_v61 }
 0x3b7   : > { %1790 = vmatprep.mubr.bf16.mxu1 %v4886_v62 }
 0x3b8   : > { %4419 = vmatmul.mubr.bf16.vlgmr.msra.gmra.mrb[32].mxu0 %v1816_v30 }
 0x3b9   : > { %4422 = vmatprep.mubr.bf16.mxu0 %v1817_v31 }
 0x3be   : > { %1791 = vmatmul.mubr.bf16.gmra.mrb[20].mxu1 %v4888_v63 }
 0x3bf   : > { %1798 = vmatprep.mubr.bf16.mxu1 %v4889_v0 }
 0x3c0   : > { %4423 = vmatmul.mubr.bf16.gmra.mrb[36].mxu0 %v1818_v32 }
 0x3c1   : > { %4426 = vmatprep.mubr.bf16.mxu0 %v1819_v33 }
 0x3c6   : > { %1799 = vmatmul.mubr.bf16.gmra.mrb[24].mxu1 %v4891_v1 }
 0x3c7   : > { %1806 = vmatprep.mubr.bf16.mxu1 %v4892_v2 }
 0x3c8   : > { %4427 = vmatmul.mubr.bf16.gmra.mrb[40].mxu0 %v1820_v34 }
 0x3c9   : > { %4430 = vmatprep.mubr.bf16.mxu0 %v1821_v35 }
 0x3ce   : > { %1807 = vmatmul.mubr.bf16.gmra.mrb[28].mxu1 %v4894_v3 }
 0x3d0   : > { %4431 = vmatmul.mubr.bf16.gmra.mrb[44].mxu0 %v1822_v36 }
 0x3d1   : > { %4434 = vmatprep.mubr.bf16.mxu0 %v1823_v37 }
 0x3d8   : > { %4435 = vmatmul.mubr.bf16.gmra.mrb[48].mxu0 %v1824_v19 }
 0x3d9   : > { %4438 = vmatprep.mubr.bf16.mxu0 %v1825_v38  ;;  %v6355_v38 = vld [vmem:[%s7373_s13] ss:$0 sm:$0xff] }
 0x3e0   : > { %4439 = vmatmul.mubr.bf16.gmra.mrb[52].mxu0 %v1826_v39 }
 0x3e1   : > { %4442 = vmatprep.mubr.bf16.mxu0 %v1827_v40 }
 0x3e8   : > { %4443 = vmatmul.mubr.bf16.gmra.mrb[56].mxu0 %v1828_v41 }
 0x3e9   : > { %4446 = vmatprep.mubr.bf16.mxu0 %v1829_v42 }
 0x3f0   : > { %4447 = vmatmul.mubr.bf16.gmra.mrb[60].mxu0 %v1830_v55 }
 0x469   : > { %v4306_v19 = vpop.f32.mrb[0].mxu1 }
 0x46a   : > { %v4307_v39 = vpop.f32.mrb[1].mxu1 }
 0x46b   : > { %v4308_v40 = vadd.f32 %v4307_v39, %v4306_v19  ;;  %v4309_v41 = vpop.f32.mrb[2].mxu1 }
 0x46c   : > { %v4310_v42 = vpop.f32.mrb[3].mxu1 }
 0x46d   : > { %v1753_v55 = vadd.f32 %v4308_v40, %v6355_v38  ;;  %v4311_v43 = vadd.f32 %v4310_v42, %v4309_v41 }
 0x46f   : > { %v1756_v44 = vadd.f32 %v4311_v43, %v6355_v38 }
 0x471   : > { %v4312_v56 = vpop.f32.mrb[4].mxu1  ;;  %v2913_v45 = vpack.c.bf16 %v1756_v44, %v1753_v55 }
 0x472   : > { %v4313_v46 = vpop.f32.mrb[5].mxu1 }
 0x473   : > { %v4314_v47 = vadd.f32 %v4313_v46, %v4312_v56  ;;  %v4315_v48 = vpop.f32.mrb[6].mxu1  ;;  %4450 = vmatprep.subr.bf16.mxu1 %v2913_v45 }
 0x474   : > { %v4316_v49 = vpop.f32.mrb[7].mxu1  ;;  %4451 = vmatpush3.bf16.msra.mxu1 %v2913_v45 }
 0x475   : > { %v1761_v50 = vadd.f32 %v4314_v47, %v6355_v38  ;;  %v4317_v51 = vadd.f32 %v4316_v49, %v4315_v48  ;;  %v6367_v49 = vld [vmem:[#allocation3 + $0x10] sm:$0xff] }
 0x477   : > { %v1764_v52 = vadd.f32 %v4317_v51, %v6355_v38 }
 0x479   : > { %v4318_v53 = vpop.f32.mrb[8].mxu1  ;;  %v2914_v54 = vpack.c.bf16 %v1764_v52, %v1761_v50  ;;  %v6369_v50 = vld [vmem:[#allocation3] sm:$0xff] }
 0x47a   : > { %v4319_v57 = vpop.f32.mrb[9].mxu1 }
 0x47b   : > { %v4320_v58 = vadd.f32 %v4319_v57, %v4318_v53  ;;  %v4321_v59 = vpop.f32.mrb[10].mxu1  ;;  %4452 = vmatprep.subr.bf16.mxu1 %v2914_v54 }
 0x47c   : > { %v4322_v60 = vpop.f32.mrb[11].mxu1  ;;  %4453 = vmatpush3.bf16.msra.mxu1 %v2914_v54 }
 0x47d   : > { %v1769_v61 = vadd.f32 %v4320_v58, %v6355_v38  ;;  %v4323_v62 = vadd.f32 %v4322_v60, %v4321_v59 }
 0x47f   : > { %v1772_v63 = vadd.f32 %v4323_v62, %v6355_v38  ;;  %v6377_v62 = vld [vmem:[#allocation3 + $0x18] sm:$0xff] }
 0x481   : > { %v4324_v0 = vpop.f32.mrb[12].mxu1  ;;  %v2915_v1 = vpack.c.bf16 %v1772_v63, %v1769_v61 }
 0x482   : > { %v4325_v2 = vpop.f32.mrb[13].mxu1 }
 0x483   : > { %v4326_v3 = vadd.f32 %v4325_v2, %v4324_v0  ;;  %v4327_v13 = vpop.f32.mrb[14].mxu1  ;;  %4454 = vmatprep.subr.bf16.mxu1 %v2915_v1  ;;  %v6447_v0 = vld [vmem:[#allocation3 + $0x40] sm:$0xff] }
 0x484   : > { %v4328_v19 = vpop.f32.mrb[15].mxu1  ;;  %4455 = vmatpush3.bf16.msra.mxu1 %v2915_v1  ;;  %v6384_v1 = vld [vmem:[#allocation3 + $0x8] sm:$0xff] }
 0x485   : > { %v1777_v39 = vadd.f32 %v4326_v3, %v6355_v38  ;;  %v4329_v40 = vadd.f32 %v4328_v19, %v4327_v13 }
 0x487   : > { %v1780_v41 = vadd.f32 %v4329_v40, %v6355_v38 }
 0x489   : > { %v4330_v42 = vpop.f32.mrb[16].mxu1  ;;  %v2916_v55 = vpack.c.bf16 %v1780_v41, %v1777_v39 }
 0x48a   : > { %v4331_v43 = vpop.f32.mrb[17].mxu1 }
 0x48b   : > { %v6256_v4 = vpop.f32.mrb[32].mxu0  ;;  %v4332_v44 = vadd.f32 %v4331_v43, %v4330_v42  ;;  %v4333_v56 = vpop.f32.mrb[18].mxu1  ;;  %4456 = vmatprep.subr.bf16.mxu1 %v2916_v55  ;;  %v6400_v42 = vld [vmem:[#allocation3 + $0x30] sm:$0xff] }
 0x48c   : > { %7341 = vst [vmem:[#allocation40_spill] sm:$0xff] %v6256_v4  ;;  %2036 = vmax.xlane.f32.xlu1 %v6256_v4  ;;  %v6259_v5 = vpop.f32.mrb[33].mxu0  ;;  %v4334_v45 = vpop.f32.mrb[19].mxu1  ;;  %4457 = vmatpush3.bf16.msra.mxu1 %v2916_v55  ;;  %v6404_v55 = vld [vmem:[#allocation3 + $0x38] sm:$0xff]  ;;  %v6620_v4 = vld [vmem:[#allocation3 + $0xe0] sm:$0xff] }
 0x48d   : > { %7342 = vst [vmem:[#allocation41_spill] sm:$0xff] %v6259_v5  ;;  %2032 = vmax.xlane.f32.xlu0 %v6259_v5  ;;  %v6262_v6 = vpop.f32.mrb[34].mxu0  ;;  %v1785_v46 = vadd.f32 %v4332_v44, %v6355_v38  ;;  %v4335_v47 = vadd.f32 %v4334_v45, %v4333_v56 }
 0x48e   : > { %7343 = vst [vmem:[#allocation42_spill] sm:$0xff] %v6262_v6  ;;  %v6264_v7 = vpop.f32.mrb[35].mxu0 }
 0x48f   : > { %7344 = vst [vmem:[#allocation43_spill] sm:$0xff] %v6264_v7  ;;  %v1788_v48 = vadd.f32 %v4335_v47, %v6355_v38 }
 0x490   : > { %2038 = vmax.xlane.f32.xlu1 %v6262_v6 }
 0x491   : > { %2034 = vmax.xlane.f32.xlu0 %v6264_v7  ;;  %v4336_v51 = vpop.f32.mrb[20].mxu1  ;;  %v2917_v52 = vpack.c.bf16 %v1788_v48, %v1785_v46  ;;  %v6413_v48 = vld [vmem:[#allocation3 + $0x20] sm:$0xff]  ;;  %v6606_v7 = vld [vmem:[#allocation3 + $0xf8] sm:$0xff] }
 0x492   : > { %v4337_v54 = vpop.f32.mrb[21].mxu1 }
 0x493   : > { %v6268_v8 = vpop.f32.mrb[36].mxu0  ;;  %v4338_v59 = vadd.f32 %v4337_v54, %v4336_v51  ;;  %v4339_v60 = vpop.f32.mrb[22].mxu1  ;;  %4458 = vmatprep.subr.bf16.mxu1 %v2917_v52 }
 0x494   : > { %7345 = vst [vmem:[#allocation44_spill] sm:$0xff] %v6268_v8  ;;  %v6270_v9 = vpop.f32.mrb[37].mxu0  ;;  %v4340_v63 = vpop.f32.mrb[23].mxu1  ;;  %4459 = vmatpush3.bf16.msra.mxu1 %v2917_v52 }
 0x495   : > { %7346 = vst [vmem:[#allocation45_spill] sm:$0xff] %v6270_v9  ;;  %2044 = vmax.xlane.f32.xlu0 %v6268_v8  ;;  %v6273_v10 = vpop.f32.mrb[38].mxu0  ;;  %v4341_v2 = vadd.f32 %v4340_v63, %v4339_v60  ;;  %v1793_v40 = vadd.f32 %v4338_v59, %v6355_v38 }
 0x496   : > { %7347 = vst [vmem:[#allocation46_spill] sm:$0xff] %v6273_v10  ;;  %2046 = vmax.xlane.f32.xlu1 %v6273_v10  ;;  %v6276_v11 = vpop.f32.mrb[39].mxu0  ;;  %v6588_v10 = vld [vmem:[#allocation3 + $0xc8] sm:$0xff] }
 0x497   : > { %7348 = vst [vmem:[#allocation47_spill] sm:$0xff] %v6276_v11  ;;  %v1796_v41 = vadd.f32 %v4341_v2, %v6355_v38 }
 0x499   : > { %2040 = vmax.xlane.f32.xlu0 %v6270_v9  ;;  %v4342_v43 = vpop.f32.mrb[24].mxu1  ;;  %v2918_v46 = vpack.c.bf16 %v1796_v41, %v1793_v40  ;;  %v6431_v41 = vld [vmem:[#allocation3 + $0x50] sm:$0xff] }
 0x49a   : > { %2042 = vmax.xlane.f32.xlu1 %v6276_v11  ;;  %v4343_v51 = vpop.f32.mrb[25].mxu1  ;;  %v6602_v9 = vld [vmem:[#allocation3 + $0xf0] sm:$0xff] }
 0x49b   : > { %v6280_v12 = vpop.f32.mrb[40].mxu0  ;;  %v4344_v54 = vadd.f32 %v4343_v51, %v4342_v43  ;;  %4460 = vmatprep.subr.bf16.mxu1 %v2918_v46  ;;  %7375 = vst [vmem:[#allocation73_spill] sm:$0xff] %v6602_v9 }
 0x49c   : > { %7349 = vst [vmem:[#allocation48_spill] sm:$0xff] %v6280_v12  ;;  %v6282_v14 = vpop.f32.mrb[41].mxu0  ;;  %4461 = vmatpush3.bf16.msra.mxu1 %v2918_v46 }
 0x49d   : > { %7350 = vst [vmem:[#allocation49_spill] sm:$0xff] %v6282_v14  ;;  %v6284_v15 = vpop.f32.mrb[42].mxu0  ;;  %2052 = vmax.xlane.f32.xlu0 %v6280_v12  ;;  %v6572_v12 = vld [vmem:[#allocation3 + $0xd8] sm:$0xff] }
 0x49e   : > { %7351 = vst [vmem:[#allocation50_spill] sm:$0xff] %v6284_v15  ;;  %2054 = vmax.xlane.f32.xlu1 %v6284_v15  ;;  %v6288_v16 = vpop.f32.mrb[43].mxu0  ;;  %v6584_v15 = vld [vmem:[#allocation3 + $0xc0] sm:$0xff] }
 0x49f   : > { %7352 = vst [vmem:[#allocation51_spill] sm:$0xff] %v6288_v16  ;;  %7374 = vst [vmem:[#allocation72_spill] sm:$0xff] %v6584_v15 }
 0x4a1   : > { %2048 = vmax.xlane.f32.xlu0 %v6282_v14 }
 0x4a2   : > { %2050 = vmax.xlane.f32.xlu1 %v6288_v16 }
 0x4a3   : > { %v6292_v17 = vpop.f32.mrb[44].mxu0 }
 0x4a4   : > { %7353 = vst [vmem:[#allocation52_spill] sm:$0xff] %v6292_v17  ;;  %v6294_v18 = vpop.f32.mrb[45].mxu0 }
 0x4a5   : > { %7354 = vst [vmem:[#allocation53_spill] sm:$0xff] %v6294_v18  ;;  %v6296_v20 = vpop.f32.mrb[46].mxu0  ;;  %2060 = vmax.xlane.f32.xlu0 %v6292_v17  ;;  %v6568_v17 = vld [vmem:[#allocation3 + $0xd0] sm:$0xff] }
 0x4a6   : > { %7355 = vst [vmem:[#allocation54_spill] sm:$0xff] %v6296_v20  ;;  %2062 = vmax.xlane.f32.xlu1 %v6296_v20  ;;  %v6300_v21 = vpop.f32.mrb[47].mxu0 }
 0x4a7   : > { %7356 = vst [vmem:[#allocation55_spill] sm:$0xff] %v6300_v21 }
 0x4a9   : > { %2056 = vmax.xlane.f32.xlu0 %v6294_v18 }
 0x4aa   : > { %2058 = vmax.xlane.f32.xlu1 %v6300_v21 }
 0x4ab   : > { %v6304_v22 = vpop.f32.mrb[48].mxu0 }
 0x4ac   : > { %7357 = vst [vmem:[#allocation56_spill] sm:$0xff] %v6304_v22  ;;  %v6306_v23 = vpop.f32.mrb[49].mxu0 }
 0x4ad   : > { %7358 = vst [vmem:[#allocation57_spill] sm:$0xff] %v6306_v23  ;;  %v6308_v24 = vpop.f32.mrb[50].mxu0  ;;  %2068 = vmax.xlane.f32.xlu0 %v6304_v22  ;;  %v6538_v22 = vld [vmem:[#allocation3 + $0xb8] sm:$0xff] }
 0x4ae   : > { %7359 = vst [vmem:[#allocation58_spill] sm:$0xff] %v6308_v24  ;;  %2070 = vmax.xlane.f32.xlu1 %v6308_v24  ;;  %v6312_v25 = vpop.f32.mrb[51].mxu0  ;;  %v6550_v24 = vld [vmem:[#allocation3 + $0xa0] sm:$0xff] }
 0x4af   : > { %7360 = vst [vmem:[#allocation59_spill] sm:$0xff] %v6312_v25 }
 0x4b1   : > { %2064 = vmax.xlane.f32.xlu0 %v6306_v23 }
 0x4b2   : > { %2066 = vmax.xlane.f32.xlu1 %v6312_v25  ;;  %v6556_v25 = vld [vmem:[#allocation3 + $0xa8] sm:$0xff] }
 0x4b3   : > { %v6316_v26 = vpop.f32.mrb[52].mxu0 }
 0x4b4   : > { %7361 = vst [vmem:[#allocation60_spill] sm:$0xff] %v6316_v26  ;;  %v6318_v27 = vpop.f32.mrb[53].mxu0 }
 0x4b5   : > { %7362 = vst [vmem:[#allocation61_spill] sm:$0xff] %v6318_v27  ;;  %v6320_v28 = vpop.f32.mrb[54].mxu0  ;;  %2076 = vmax.xlane.f32.xlu0 %v6316_v26  ;;  %v6534_v26 = vld [vmem:[#allocation3 + $0xb0] sm:$0xff] }
 0x4b6   : > { %7363 = vst [vmem:[#allocation62_spill] sm:$0xff] %v6320_v28  ;;  %2078 = vmax.xlane.f32.xlu1 %v6320_v28  ;;  %v6324_v29 = vpop.f32.mrb[55].mxu0 }
 0x4b7   : > { %7364 = vst [vmem:[#allocation63_spill] sm:$0xff] %v6324_v29 }
 0x4b9   : > { %2072 = vmax.xlane.f32.xlu0 %v6318_v27 }
 0x4ba   : > { %2074 = vmax.xlane.f32.xlu1 %v6324_v29 }
 0x4bb   : > { %v6328_v30 = vpop.f32.mrb[56].mxu0 }
 0x4bc   : > { %7365 = vst [vmem:[#allocation64_spill] sm:$0xff] %v6328_v30  ;;  %v6330_v31 = vpop.f32.mrb[57].mxu0 }
 0x4bd   : > { %7366 = vst [vmem:[#allocation65_spill] sm:$0xff] %v6330_v31  ;;  %v6332_v32 = vpop.f32.mrb[58].mxu0  ;;  %2084 = vmax.xlane.f32.xlu0 %v6328_v30  ;;  %v6504_v30 = vld [vmem:[#allocation3 + $0x98] sm:$0xff] }
 0x4be   : > { %7367 = vst [vmem:[#allocation66_spill] sm:$0xff] %v6332_v32  ;;  %2086 = vmax.xlane.f32.xlu1 %v6332_v32  ;;  %v6336_v33 = vpop.f32.mrb[59].mxu0  ;;  %v6516_v32 = vld [vmem:[#allocation3 + $0x80] sm:$0xff] }
 0x4bf   : > { %7368 = vst [vmem:[#allocation67_spill] sm:$0xff] %v6336_v33 }
 0x4c1   : > { %2080 = vmax.xlane.f32.xlu0 %v6330_v31 }
 0x4c2   : > { %2082 = vmax.xlane.f32.xlu1 %v6336_v33  ;;  %v6522_v33 = vld [vmem:[#allocation3 + $0x88] sm:$0xff] }
 0x4c3   : > { %v6340_v34 = vpop.f32.mrb[60].mxu0 }
 0x4c4   : > { %7369 = vst [vmem:[#allocation68_spill] sm:$0xff] %v6340_v34  ;;  %v6342_v35 = vpop.f32.mrb[61].mxu0 }
 0x4c5   : > { %7370 = vst [vmem:[#allocation69_spill] sm:$0xff] %v6342_v35  ;;  %v6344_v36 = vpop.f32.mrb[62].mxu0  ;;  %2092 = vmax.xlane.f32.xlu0 %v6340_v34 }
 0x4c6   : > { %7371 = vst [vmem:[#allocation70_spill] sm:$0xff] %v6344_v36  ;;  %2094 = vmax.xlane.f32.xlu1 %v6344_v36  ;;  %v6348_v37 = vpop.f32.mrb[63].mxu0  ;;  %v6453_v36 = vld [vmem:[#allocation3 + $0x48] sm:$0xff] }
 0x4c7   : > { %7372 = vst [vmem:[#allocation71_spill] sm:$0xff] %v6348_v37 }
 0x4c9   : > { %2088 = vmax.xlane.f32.xlu0 %v6342_v35  ;;  %v6470_v35 = vld [vmem:[#allocation3 + $0x78] sm:$0xff] }
 0x4ca   : > { %2090 = vmax.xlane.f32.xlu1 %v6348_v37 }
 0x519   : > { %v2037_v53 = vpop.xlane.xlu1 %2036 }
 0x51a   : > { %v6372_v57 = vmax.f32 %v6367_v49, %v2037_v53  ;;  %v2033_v58 = vpop.xlane.xlu0 %2032  ;;  %v6419_v53 = vld [vmem:[#allocation3 + $0x28] sm:$0xff] }
 0x51b   : > { %v6375_v61 = vmax.f32 %v6369_v50, %v2033_v58  ;;  %v4345_v58 = vpop.f32.mrb[26].mxu1 }
 0x51c   : > { %3148 = vst.msk [vmem:[#allocation3 + $0x10] sm:$0xff] %vm2640_vm1, %v6372_v57  ;;  %2236 = vperm.xlu1 %4814, %v6372_v57   ;;  %v4346_v60 = vpop.f32.mrb[27].mxu1 }
 0x51d   : > { %3146 = vst.msk [vmem:[#allocation3] sm:$0xff] %vm2640_vm1, %v6375_v61  ;;  %v2039_v3 = vpop.xlane.xlu1 %2038  ;;  %2226 = vperm.xlu0 %4813, %v6375_v61   ;;  %v4348_v43 = vpop.f32.mrb[28].mxu1 }
 0x51e   : > { %v6390_v13 = vmax.f32 %v6377_v62, %v2039_v3  ;;  %v2035_v19 = vpop.xlane.xlu0 %2034  ;;  %v1801_v3 = vadd.f32 %v4344_v54, %v6355_v38  ;;  %v4349_v46 = vpop.f32.mrb[29].mxu1 }
 0x51f   : > { %v6393_v39 = vmax.f32 %v6384_v1, %v2035_v19  ;;  %v4347_v19 = vadd.f32 %v4346_v60, %v4345_v58  ;;  %v4351_v54 = vpop.f32.mrb[30].mxu1 }
 0x520   : > { %3149 = vst.msk [vmem:[#allocation3 + $0x18] sm:$0xff] %vm2640_vm1, %v6390_v13  ;;  %2241 = vperm.xlu1 %4814, %v6390_v13  }
 0x521   : > { %3147 = vst.msk [vmem:[#allocation3 + $0x8] sm:$0xff] %vm2640_vm1, %v6393_v39 }
 0x522   : > { %v2045_v44 = vpop.xlane.xlu0 %2044 }
 0x523   : > { %v6407_v56 = vmax.f32 %v6400_v42, %v2045_v44  ;;  %v2047_v45 = vpop.xlane.xlu1 %2046  ;;  %v6435_v44 = vld [vmem:[#allocation3 + $0x58] sm:$0xff] }
 0x524   : > { %v6410_v47 = vmax.f32 %v6404_v55, %v2047_v45  ;;  %2231 = vperm.xlu1 %4814, %v6393_v39   ;;  %v1804_v45 = vadd.f32 %v4347_v19, %v6355_v38  ;;  %v4350_v19 = vadd.f32 %v4349_v46, %v4348_v43 }
 0x525   : > { %3152 = vst.msk [vmem:[#allocation3 + $0x30] sm:$0xff] %vm2640_vm1, %v6407_v56 }
 0x526   : > { %3153 = vst.msk [vmem:[#allocation3 + $0x38] sm:$0xff] %vm2640_vm1, %v6410_v47  ;;  %v2041_v59 = vpop.xlane.xlu0 %2040  ;;  %v2919_v60 = vpack.c.bf16 %v1804_v45, %v1801_v3  ;;  %v1809_v45 = vadd.f32 %v4350_v19, %v6355_v38 }
 0x527   : > { %v6424_v63 = vmax.f32 %v6413_v48, %v2041_v59  ;;  %v2043_v2 = vpop.xlane.xlu1 %2042 }
 0x528   : > { %v6428_v40 = vmax.f32 %v6419_v53, %v2043_v2  ;;  %2256 = vperm.xlu1 %4814, %v6407_v56   ;;  %v4352_v2 = vpop.f32.mrb[31].mxu1  ;;  %4462 = vmatprep.subr.bf16.mxu1 %v2919_v60 }
 0x529   : > { %3150 = vst.msk [vmem:[#allocation3 + $0x20] sm:$0xff] %vm2640_vm1, %v6424_v63  ;;  %v4353_v34 = vadd.f32 %v4352_v2, %v4351_v54  ;;  %4463 = vmatpush3.bf16.msra.mxu1 %v2919_v60 }
 0x52a   : > { %3151 = vst.msk [vmem:[#allocation3 + $0x28] sm:$0xff] %vm2640_vm1, %v6428_v40  ;;  %v2053_v51 = vpop.xlane.xlu0 %2052 }
 0x52b   : > { %v2055_v58 = vpop.xlane.xlu1 %2054  ;;  %v6441_v59 = vmax.f32 %v6431_v41, %v2053_v51  ;;  %v1812_v51 = vadd.f32 %v4353_v34, %v6355_v38 }
 0x52c   : > { %v6444_v52 = vmax.f32 %v6435_v44, %v2055_v58  ;;  %2246 = vperm.xlu1 %4814, %v6424_v63   ;;  %v6466_v58 = vld [vmem:[#allocation3 + $0x70] sm:$0xff] }
 0x52d   : > { %3156 = vst.msk [vmem:[#allocation3 + $0x50] sm:$0xff] %vm2640_vm1, %v6441_v59  ;;  %v2920_v2 = vpack.c.bf16 %v1812_v51, %v1809_v45  ;;  %v6488_v51 = vld [vmem:[#allocation3 + $0x68] sm:$0xff]  ;;  %v6500_v45 = vld [vmem:[#allocation3 + $0x90] sm:$0xff] }
 0x52e   : > { %3157 = vst.msk [vmem:[#allocation3 + $0x58] sm:$0xff] %vm2640_vm1, %v6444_v52  ;;  %v2049_v3 = vpop.xlane.xlu0 %2048 }
 0x52f   : > { %v2051_v43 = vpop.xlane.xlu1 %2050  ;;  %v6460_v46 = vmax.f32 %v6447_v0, %v2049_v3  ;;  %4464 = vmatprep.subr.bf16.mxu1 %v2920_v2  ;;  %v6482_v3 = vld [vmem:[#allocation3 + $0x60] sm:$0xff] }
 0x530   : > { %v6463_v54 = vmax.f32 %v6453_v36, %v2051_v43  ;;  %2251 = vperm.xlu1 %4814, %v6428_v40   ;;  %4465 = vmatpush3.bf16.msra.mxu1 %v2920_v2 }
 0x531   : > { %3154 = vst.msk [vmem:[#allocation3 + $0x40] sm:$0xff] %vm2640_vm1, %v6460_v46 }
 0x532   : > { %3155 = vst.msk [vmem:[#allocation3 + $0x48] sm:$0xff] %vm2640_vm1, %v6463_v54  ;;  %2271 = vperm.xlu0 %4813, %v6463_v54   ;;  %v2061_v34 = vpop.xlane.xlu0 %2060 }
 0x533   : > { %v2063_v38 = vpop.xlane.xlu1 %2062  ;;  %v6476_v60 = vmax.f32 %v6466_v58, %v2061_v34 }
 0x534   : > { %v6479_v19 = vmax.f32 %v6470_v35, %v2063_v38  ;;  %2261 = vperm.xlu1 %4814, %v6410_v47  }
 0x535   : > { %3160 = vst.msk [vmem:[#allocation3 + $0x70] sm:$0xff] %vm2640_vm1, %v6476_v60 }
 0x536   : > { %3161 = vst.msk [vmem:[#allocation3 + $0x78] sm:$0xff] %vm2640_vm1, %v6479_v19  ;;  %2281 = vperm.xlu0 %4813, %v6444_v52   ;;  %v2057_v43 = vpop.xlane.xlu0 %2056 }
 0x537   : > { %v2059_v2 = vpop.xlane.xlu1 %2058  ;;  %v6494_v34 = vmax.f32 %v6482_v3, %v2057_v43 }
 0x538   : > { %v6497_v38 = vmax.f32 %v6488_v51, %v2059_v2  ;;  %2266 = vperm.xlu1 %4814, %v6460_v46  }
 0x539   : > { %3158 = vst.msk [vmem:[#allocation3 + $0x60] sm:$0xff] %vm2640_vm1, %v6494_v34 }
 0x53a   : > { %3159 = vst.msk [vmem:[#allocation3 + $0x68] sm:$0xff] %vm2640_vm1, %v6497_v38  ;;  %2291 = vperm.xlu0 %4813, %v6497_v38   ;;  %v2069_v37 = vpop.xlane.xlu0 %2068 }
 0x53b   : > { %v2071_v43 = vpop.xlane.xlu1 %2070  ;;  %v6510_v31 = vmax.f32 %v6500_v45, %v2069_v37 }
 0x53c   : > { %v6513_v2 = vmax.f32 %v6504_v30, %v2071_v43  ;;  %2276 = vperm.xlu1 %4814, %v6441_v59  }
 0x53d   : > { %3164 = vst.msk [vmem:[#allocation3 + $0x90] sm:$0xff] %vm2640_vm1, %v6510_v31 }
 0x53e   : > { %3165 = vst.msk [vmem:[#allocation3 + $0x98] sm:$0xff] %vm2640_vm1, %v6513_v2  ;;  %2301 = vperm.xlu0 %4813, %v6479_v19   ;;  %v2065_v37 = vpop.xlane.xlu0 %2064 }
 0x53f   : > { %v2067_v43 = vpop.xlane.xlu1 %2066  ;;  %v6528_v27 = vmax.f32 %v6516_v32, %v2065_v37 }
 0x540   : > { %v6531_v28 = vmax.f32 %v6522_v33, %v2067_v43  ;;  %2286 = vperm.xlu1 %4814, %v6494_v34  }
 0x541   : > { %3162 = vst.msk [vmem:[#allocation3 + $0x80] sm:$0xff] %vm2640_vm1, %v6528_v27 }
 0x542   : > { %3163 = vst.msk [vmem:[#allocation3 + $0x88] sm:$0xff] %vm2640_vm1, %v6531_v28  ;;  %2311 = vperm.xlu0 %4813, %v6531_v28   ;;  %v2077_v29 = vpop.xlane.xlu0 %2076 }
 0x543   : > { %v2079_v37 = vpop.xlane.xlu1 %2078  ;;  %v6544_v23 = vmax.f32 %v6534_v26, %v2077_v29 }
 0x544   : > { %v6547_v43 = vmax.f32 %v6538_v22, %v2079_v37  ;;  %2296 = vperm.xlu1 %4814, %v6476_v60  }
 0x545   : > { %3168 = vst.msk [vmem:[#allocation3 + $0xb0] sm:$0xff] %vm2640_vm1, %v6544_v23 }
 0x546   : > { %3169 = vst.msk [vmem:[#allocation3 + $0xb8] sm:$0xff] %vm2640_vm1, %v6547_v43  ;;  %2321 = vperm.xlu0 %4813, %v6513_v2   ;;  %v2073_v29 = vpop.xlane.xlu0 %2072 }
 0x547   : > { %v2075_v37 = vpop.xlane.xlu1 %2074  ;;  %v6562_v18 = vmax.f32 %v6550_v24, %v2073_v29 }
 0x548   : > { %v6565_v20 = vmax.f32 %v6556_v25, %v2075_v37  ;;  %2306 = vperm.xlu1 %4814, %v6528_v27  }
 0x549   : > { %3166 = vst.msk [vmem:[#allocation3 + $0xa0] sm:$0xff] %vm2640_vm1, %v6562_v18 }
 0x54a   : > { %3167 = vst.msk [vmem:[#allocation3 + $0xa8] sm:$0xff] %vm2640_vm1, %v6565_v20  ;;  %2331 = vperm.xlu0 %4813, %v6565_v20   ;;  %v2085_v21 = vpop.xlane.xlu0 %2084 }
 0x54b   : > { %v2087_v29 = vpop.xlane.xlu1 %2086  ;;  %v6578_v14 = vmax.f32 %v6568_v17, %v2085_v21  ;;  %v2128_v21 = vsub.f32 %v6369_v50, %v6375_v61  ;;  %v2131_v61 = vsub.f32 %v6377_v62, %v6390_v13  ;;  %v6628_v62 = vld [vmem:[#allocation3 + $0xe8] sm:$0xff] }
 0x54c   : > { %v6581_v37 = vmax.f32 %v6572_v12, %v2087_v29  ;;  %2316 = vperm.xlu1 %4814, %v6510_v31  }
 0x54d   : > { %3172 = vst.msk [vmem:[#allocation3 + $0xd0] sm:$0xff] %vm2640_vm1, %v6578_v14 }
 0x54e   : > { %3173 = vst.msk [vmem:[#allocation3 + $0xd8] sm:$0xff] %vm2640_vm1, %v6581_v37  ;;  %2341 = vperm.xlu0 %4813, %v6547_v43   ;;  %v2081_v16 = vpop.xlane.xlu0 %2080 }
 0x54f   : > { %v2083_v29 = vpop.xlane.xlu1 %2082  ;;  %v6596_v11 = vmax.f32 %v6584_v15, %v2081_v16  ;;  %v2160_v16 = vmul.f32 1.442695, %v2128_v21  ;;  %v2129_v15 = vsub.f32 %v6384_v1, %v6393_v39  ;;  %v2133_v1 = vsub.f32 %v6419_v53, %v6428_v40 }
 0x550   : > { %v6599_v8 = vmax.f32 %v6588_v10, %v2083_v29  ;;  %2326 = vperm.xlu1 %4814, %v6562_v18   ;;  %v2135_v53 = vsub.f32 %v6404_v55, %v6410_v47 }
 0x551   : > { %3170 = vst.msk [vmem:[#allocation3 + $0xc0] sm:$0xff] %vm2640_vm1, %v6596_v11  ;;  %4895 = vpow2.f32 %v2160_v16  ;;  %v2162_v13 = vmul.f32 1.442695, %v2129_v15  ;;  %v2170_v40 = vmul.f32 1.442695, %v2133_v1  ;;  %v7376_v16 = vsub.f32 %v6367_v49, %v6372_v57 }
 0x552   : > { %3171 = vst.msk [vmem:[#allocation3 + $0xc8] sm:$0xff] %vm2640_vm1, %v6599_v8  ;;  %2351 = vperm.xlu0 %4813, %v6599_v8   ;;  %v2093_v50 = vpop.xlane.xlu0 %2092  ;;  %v2132_v15 = vsub.f32 %v6413_v48, %v6424_v63  ;;  %v2139_v49 = vsub.f32 %v6435_v44, %v6444_v52  ;;  %v2141_v52 = vsub.f32 %v6488_v51, %v6497_v38 }
 0x553   : > { %v2095_v29 = vpop.xlane.xlu1 %2094  ;;  %v6614_v6 = vmax.f32 %v6602_v9, %v2093_v50  ;;  %v7378_v51 = vsub.f32 %v6431_v41, %v6441_v59 }
 0x554   : > { %v6617_v5 = vmax.f32 %v6606_v7, %v2095_v29  ;;  %2336 = vperm.xlu1 %4814, %v6544_v23   ;;  %v2166_v29 = vmul.f32 1.442695, %v2131_v61  ;;  %v2164_v61 = vmul.f32 1.442695, %v7376_v16  ;;  %v2168_v47 = vmul.f32 1.442695, %v2132_v15 }
 0x555   : > { %3176 = vst.msk [vmem:[#allocation3 + $0xf0] sm:$0xff] %vm2640_vm1, %v6614_v6  ;;  %v2182_v1 = vmul.f32 1.442695, %v2139_v49  ;;  %v2180_v38 = vmul.f32 1.442695, %v7378_v51  ;;  %v2144_v15 = vsub.f32 %v6516_v32, %v6528_v27  ;;  %v2151_v27 = vsub.f32 %v6538_v22, %v6547_v43 }
 0x556   : > { %3177 = vst.msk [vmem:[#allocation3 + $0xf8] sm:$0xff] %vm2640_vm1, %v6617_v5  ;;  %2361 = vperm.xlu0 %4813, %v6581_v37   ;;  %v2089_v50 = vpop.xlane.xlu0 %2088  ;;  %4897 = vpow2.f32 %v2166_v29  ;;  %v2137_v29 = vsub.f32 %v6453_v36, %v6463_v54  ;;  %v7377_v36 = vsub.f32 %v6400_v42, %v6407_v56  ;;  %v2136_v54 = vsub.f32 %v6447_v0, %v6460_v46 }
 0x557   : > { %v2091_v39 = vpop.xlane.xlu1 %2090  ;;  %v6638_v21 = vmax.f32 %v6620_v4, %v2089_v50  ;;  %4899 = vpow2.f32 %v2162_v13  ;;  %v2174_v50 = vmul.f32 1.442695, %v2135_v53  ;;  %v2143_v0 = vsub.f32 %v6470_v35, %v6479_v19 }
 0x558   : > { %v6641_v9 = vmax.f32 %v6628_v62, %v2091_v39  ;;  %2346 = vperm.xlu1 %4814, %v6596_v11   ;;  %4901 = vpow2.f32 %v2170_v40  ;;  %v2178_v57 = vmul.f32 1.442695, %v2137_v29  ;;  %v2172_v63 = vmul.f32 1.442695, %v7377_v36 }
 0x559   : > { %3174 = vst.msk [vmem:[#allocation3 + $0xe0] sm:$0xff] %vm2640_vm1, %v6638_v21  ;;  %4903 = vpow2.f32 %v2164_v61  ;;  %v2176_v42 = vmul.f32 1.442695, %v2136_v54  ;;  %v2186_v46 = vmul.f32 1.442695, %v2141_v52  ;;  %v2140_v53 = vsub.f32 %v6482_v3, %v6494_v34 }
 0x55a   : > { %3175 = vst.msk [vmem:[#allocation3 + $0xe8] sm:$0xff] %vm2640_vm1, %v6641_v9  ;;  %2371 = vperm.xlu0 %4813, %v6641_v9   ;;  %4905 = vpow2.f32 %v2174_v50  ;;  %v2190_v16 = vmul.f32 1.442695, %v2143_v0  ;;  %v2145_v35 = vsub.f32 %v6522_v33, %v6531_v28  ;;  %v2147_v3 = vsub.f32 %v6504_v30, %v6513_v2 }
 0x55b   : > { %v6661_v55 = vpop.eup %4895  ;;  %4907 = vpow2.f32 %v2168_v47  ;;  %v2184_v41 = vmul.f32 1.442695, %v2140_v53  ;;  %v7379_v28 = vsub.f32 %v6466_v58, %v6476_v60  ;;  %v2149_v30 = vsub.f32 %v6556_v25, %v6565_v20 }
 0x55c   : > { %2356 = vperm.xlu1 %4814, %v6578_v14   ;;  %4909 = vpow2.f32 %v2178_v57  ;;  %v2194_v34 = vmul.f32 1.442695, %v2145_v35  ;;  %v2198_v29 = vmul.f32 1.442695, %v2147_v3  ;;  %v2192_v58 = vmul.f32 1.442695, %v2144_v15 }
 0x55d   : > { %4911 = vpow2.f32 %v2172_v63  ;;  %v2188_v33 = vmul.f32 1.442695, %v7379_v28  ;;  %v2202_v32 = vmul.f32 1.442695, %v2149_v30  ;;  %v7380_v20 = vsub.f32 %v6500_v45, %v6510_v31  ;;  %v7384_v15 = vld [vmem:[#allocation41_spill] sm:$0xff] }
 0x55e   : > { %2381 = vperm.xlu0 %4813, %v6617_v5   ;;  %4913 = vpow2.f32 %v2182_v1  ;;  %v2148_v49 = vsub.f32 %v6550_v24, %v6562_v18  ;;  %v2206_v36 = vmul.f32 1.442695, %v2151_v27  ;;  %v2155_v22 = vsub.f32 %v6572_v12, %v6581_v37 }
 0x55f   : > { %4915 = vpow2.f32 %v2176_v42  ;;  %v2196_v25 = vmul.f32 1.442695, %v7380_v20  ;;  %v2153_v24 = vsub.f32 %v6588_v10, %v6599_v8  ;;  %v7381_v12 = vsub.f32 %v6534_v26, %v6544_v23  ;;  %v7382_v26 = vld [vmem:[#allocation72_spill] sm:$0xff] }
 0x560   : > { %2366 = vperm.xlu1 %4814, %v6638_v21   ;;  %v6667_v48 = vpop.eup %4897  ;;  %4917 = vpow2.f32 %v2186_v46  ;;  %v2200_v31 = vmul.f32 1.442695, %v2148_v49  ;;  %v2214_v18 = vmul.f32 1.442695, %v2155_v22  ;;  %v2154_v54 = vsub.f32 %v6568_v17, %v6578_v14  ;;  %v7386_v49 = vld [vmem:[#allocation43_spill] sm:$0xff] }
 0x561   : > { %v6675_v13 = vpop.eup %4899  ;;  %4919 = vpow2.f32 %v2180_v38  ;;  %v2204_v37 = vmul.f32 1.442695, %v7381_v12  ;;  %v2210_v52 = vmul.f32 1.442695, %v2153_v24  ;;  %v2157_v8 = vsub.f32 %v6628_v62, %v6641_v9  ;;  %v7387_v24 = vld [vmem:[#allocation45_spill] sm:$0xff] }
 0x562   : > { %2707 = vperm.xlu0 %4813, %v6661_v55   ;;  %v6680_v44 = vpop.eup %4901  ;;  %4921 = vpow2.f32 %v2190_v16  ;;  %v2212_v23 = vmul.f32 1.442695, %v2154_v54  ;;  %v2152_v42 = vsub.f32 %v7382_v26, %v6596_v11  ;;  %v2156_v62 = vsub.f32 %v6620_v4, %v6638_v21 }
 0x563   : > { %v6683_v56 = vpop.eup %4903  ;;  %4923 = vpow2.f32 %v2184_v41  ;;  %v2218_v17 = vmul.f32 1.442695, %v2157_v8  ;;  %v7383_v41 = vld [vmem:[#allocation40_spill] sm:$0xff] }
 0x564   : > { %2376 = vperm.xlu1 %4814, %v6614_v6   ;;  %v6688_v39 = vpop.eup %4905  ;;  %4925 = vpow2.f32 %v2194_v34  ;;  %v2208_v9 = vmul.f32 1.442695, %v2152_v42  ;;  %v2216_v51 = vmul.f32 1.442695, %v2156_v62 }
 0x565   : > { %v6696_v40 = vpop.eup %4907  ;;  %4927 = vpow2.f32 %v2188_v33 }
 0x566   : > { %2722 = vperm.xlu0 %4813, %v6667_v48   ;;  %v6701_v19 = vpop.eup %4909  ;;  %4929 = vpow2.f32 %v2198_v29 }
 0x567   : > { %v6704_v59 = vpop.eup %4911  ;;  %4931 = vpow2.f32 %v2192_v58  ;;  %v7385_v58 = vld [vmem:[#allocation42_spill] sm:$0xff] }
 0x568   : > { %2712 = vperm.xlu1 %4814, %v6675_v13   ;;  %v6709_v61 = vpop.eup %4913  ;;  %4933 = vpow2.f32 %v2202_v32 }
 0x569   : > { %v6717_v50 = vpop.eup %4915  ;;  %4935 = vpow2.f32 %v2196_v25 }
 0x56a   : > { %2732 = vperm.xlu0 %4813, %v6680_v44   ;;  %v6722_v2 = vpop.eup %4917  ;;  %4937 = vpow2.f32 %v2206_v36 }
 0x56b   : > { %v6725_v60 = vpop.eup %4919  ;;  %4939 = vpow2.f32 %v2200_v31 }
 0x56c   : > { %2717 = vperm.xlu1 %4814, %v6683_v56   ;;  %v6730_v47 = vpop.eup %4921  ;;  %4941 = vpow2.f32 %v2214_v18 }
 0x56d   : > { %v6738_v57 = vpop.eup %4923  ;;  %4943 = vpow2.f32 %v2204_v37 }
 0x56e   : > { %2742 = vperm.xlu0 %4813, %v6688_v39   ;;  %v6743_v43 = vpop.eup %4925  ;;  %4945 = vpow2.f32 %v2210_v52  ;;  %v7388_v52 = vld [vmem:[#allocation44_spill] sm:$0xff] }
 0x56f   : > { %v6746_v45 = vpop.eup %4927  ;;  %4947 = vpow2.f32 %v2212_v23 }
 0x570   : > { %2727 = vperm.xlu1 %4814, %v6696_v40   ;;  %v6751_v63 = vpop.eup %4929  ;;  %4949 = vpow2.f32 %v2218_v17  ;;  %v7389_v17 = vld [vmem:[#allocation47_spill] sm:$0xff] }
 0x571   : > { %v6759_v1 = vpop.eup %4931  ;;  %4951 = vpow2.f32 %v2208_v9 }
 0x572   : > { %2752 = vperm.xlu0 %4813, %v6701_v19   ;;  %v6764_v10 = vpop.eup %4933  ;;  %4953 = vpow2.f32 %v2216_v51 }
 0x573   : > { %v6769_v14 = vpop.eup %4935 }
 0x574   : > { %2737 = vperm.xlu1 %4814, %v6704_v59   ;;  %v6772_v0 = vpop.eup %4937 }
 0x575   : > { %v6777_v46 = vpop.eup %4939 }
 0x576   : > { %2762 = vperm.xlu0 %4813, %v6709_v61   ;;  %v6780_v11 = vpop.eup %4941 }
 0x577   : > { %v6783_v38 = vpop.eup %4943 }
 0x578   : > { %2747 = vperm.xlu1 %4814, %v6717_v50   ;;  %v6786_v53 = vpop.eup %4945 }
 0x579   : > { %v6789_v4 = vpop.eup %4947 }
 0x57a   : > { %2772 = vperm.xlu0 %4813, %v6722_v2   ;;  %v6792_v21 = vpop.eup %4949 }
 0x57b   : > { %v6795_v16 = vpop.eup %4951 }
 0x57c   : > { %2757 = vperm.xlu1 %4814, %v6725_v60   ;;  %v6799_v28 = vpop.eup %4953 }
 0x57e   : > { %2782 = vperm.xlu0 %4813, %v6730_v47  }
 0x580   : > { %2767 = vperm.xlu1 %4814, %v6738_v57  }
 0x582   : > { %2792 = vperm.xlu0 %4813, %v6743_v43  }
 0x584   : > { %2777 = vperm.xlu1 %4814, %v6746_v45  }
 0x586   : > { %2802 = vperm.xlu0 %4813, %v6751_v63  }
 0x588   : > { %2787 = vperm.xlu1 %4814, %v6759_v1  }
 0x58a   : > { %2812 = vperm.xlu0 %4813, %v6764_v10  }
 0x58c   : > { %2797 = vperm.xlu1 %4814, %v6769_v14  }
 0x58e   : > { %2822 = vperm.xlu0 %4813, %v6772_v0  }
 0x590   : > { %2807 = vperm.xlu1 %4814, %v6777_v46  }
 0x592   : > { %2842 = vperm.xlu0 %4813, %v6780_v11  }
 0x594   : > { %2817 = vperm.xlu1 %4814, %v6783_v38  }
 0x596   : > { %2832 = vperm.xlu0 %4813, %v6786_v53  }
 0x598   : > { %2837 = vperm.xlu1 %4814, %v6789_v4  }
 0x59a   : > { %2852 = vperm.xlu0 %4813, %v6792_v21  }
 0x59b   : > { %v2237_v35 = vpop.permute.xlu1 %2236 }
 0x59c   : > { %v2386_v3 = vsub.f32 %v7383_v41, %v2237_v35  ;;  %v2227_v34 = vpop.permute.xlu0 %2226  ;;  %2827 = vperm.xlu1 %4814, %v6795_v16  }
 0x59d   : > { %v2384_v29 = vsub.f32 %v7384_v15, %v2227_v34  ;;  %v7390_v34 = vld [vmem:[#allocation51_spill] sm:$0xff] }
 0x59e   : > { %v2420_v33 = vmul.f32 1.442695, %v2386_v3 }
 0x59f   : > { %v2242_v30 = vpop.permute.xlu1 %2241  ;;  %v2416_v20 = vmul.f32 1.442695, %v2384_v29 }
 0x5a0   : > { %v2387_v27 = vsub.f32 %v7385_v58, %v2242_v30  ;;  %2847 = vperm.xlu1 %4814, %v6799_v28   ;;  %4955 = vpow2.f32 %v2420_v33  ;;  %v7391_v30 = vld [vmem:[#allocation46_spill] sm:$0xff] }
 0x5a2   : > { %v2422_v32 = vmul.f32 1.442695, %v2387_v27 }
 0x5a3   : > { %v2232_v25 = vpop.permute.xlu1 %2231 }
 0x5a4   : > { %4957 = vpow2.f32 %v2422_v32  ;;  %v2385_v36 = vsub.f32 %v7386_v49, %v2232_v25  ;;  %v7392_v25 = vld [vmem:[#allocation50_spill] sm:$0xff] }
 0x5a5   : > { %4959 = vpow2.f32 %v2416_v20 }
 0x5a6   : > { %v2418_v22 = vmul.f32 1.442695, %v2385_v36 }
 0x5a7   : > { %v2257_v31 = vpop.permute.xlu1 %2256 }
 0x5a8   : > { %4961 = vpow2.f32 %v2418_v22  ;;  %v2390_v8 = vsub.f32 %v7388_v52, %v2257_v31  ;;  %v7393_v22 = vld [vmem:[#allocation49_spill] sm:$0xff]  ;;  %v7394_v52 = vld [vmem:[#allocation55_spill] sm:$0xff] }
 0x5aa   : > { %v4956_v37 = vpop.eup %4955  ;;  %v2428_v41 = vmul.f32 1.442695, %v2390_v8 }
 0x5ab   : > { %v2247_v18 = vpop.permute.xlu1 %2246 }
 0x5ac   : > { %v2388_v12 = vsub.f32 %v7387_v24, %v2247_v18 }
 0x5ae   : > { %v6806_v54 = vpop.eup %4957  ;;  %v2424_v23 = vmul.f32 1.442695, %v2388_v12 }
 0x5af   : > { %v2252_v26 = vpop.permute.xlu1 %2251  ;;  %v2898_v42 = vpack.c.bf16 %v6806_v54, %v4956_v37  ;;  %v4960_v62 = vpop.eup %4959 }
 0x5b0   : > { %v2389_v9 = vsub.f32 %v7389_v17, %v2252_v26  ;;  %4963 = vpow2.f32 %v2424_v23  ;;  %v7395_v26 = vld [vmem:[#allocation48_spill] sm:$0xff] }
 0x5b1   : > { %v2272_v51 = vpop.permute.xlu0 %2271 }
 0x5b2   : > { %v4962_v35 = vpop.eup %4961  ;;  %v2426_v3 = vmul.f32 1.442695, %v2389_v9  ;;  %v2393_v33 = vsub.f32 %v7390_v34, %v2272_v51  ;;  %v7396_v34 = vld [vmem:[#allocation54_spill] sm:$0xff] }
 0x5b3   : > { %v2262_v15 = vpop.permute.xlu1 %2261  ;;  %v2897_v29 = vpack.c.bf16 %v4962_v35, %v4960_v62 }
 0x5b4   : > { %4965 = vpow2.f32 %v2426_v3  ;;  %v2391_v58 = vsub.f32 %v7391_v30, %v2262_v15  ;;  %v2434_v20 = vmul.f32 1.442695, %v2393_v33  ;;  %v7397_v30 = vld [vmem:[#allocation53_spill] sm:$0xff] }
 0x5b5   : > { %v2282_v27 = vpop.permute.xlu0 %2281  ;;  %4466 = vmatprep.mubr.bf16.mxu1 %v2897_v29  ;;  %4967 = vpow2.f32 %v2428_v41 }
 0x5b6   : > { %v2430_v32 = vmul.f32 1.442695, %v2391_v58  ;;  %4467 = vmatmul.mubr.bf16.vlgmr.msra.gmra.mrb[32].mxu1 %v2898_v42  ;;  %v2395_v49 = vsub.f32 %v7392_v25, %v2282_v27  ;;  %v7398_v25 = vld [vmem:[#allocation59_spill] sm:$0xff] }
 0x5b7   : > { %v2267_v36 = vpop.permute.xlu1 %2266 }
 0x5b8   : > { %4969 = vpow2.f32 %v2430_v32  ;;  %v2392_v31 = vsub.f32 %v7393_v22, %v2267_v36  ;;  %v2438_v12 = vmul.f32 1.442695, %v2395_v49 }
 0x5b9   : > { %v2292_v18 = vpop.permute.xlu0 %2291  ;;  %2548 = vadd.xlane.f32.xlu0 %v4956_v37  ;;  %4971 = vpow2.f32 %v2434_v20 }
 0x5ba   : > { %v2432_v24 = vmul.f32 1.442695, %v2392_v31  ;;  %v2397_v8 = vsub.f32 %v7394_v52, %v2292_v18  ;;  %v4964_v9 = vpop.eup %4963  ;;  %v7399_v31 = vld [vmem:[#allocation52_spill] sm:$0xff] }
 0x5bb   : > { %v2277_v23 = vpop.permute.xlu1 %2276 }
 0x5bc   : > { %4973 = vpow2.f32 %v2432_v24  ;;  %v2394_v17 = vsub.f32 %v7395_v26, %v2277_v23  ;;  %v2442_v3 = vmul.f32 1.442695, %v2397_v8  ;;  %v7400_v26 = vld [vmem:[#allocation58_spill] sm:$0xff] }
 0x5bd   : > { %v2302_v42 = vpop.permute.xlu0 %2301  ;;  %2546 = vadd.xlane.f32.xlu0 %v4962_v35  ;;  %4975 = vpow2.f32 %v2438_v12 }
 0x5be   : > { %v6817_v51 = vpop.eup %4965  ;;  %v2436_v41 = vmul.f32 1.442695, %v2394_v17  ;;  %v2399_v33 = vsub.f32 %v7396_v34, %v2302_v42 }
 0x5bf   : > { %v2287_v37 = vpop.permute.xlu1 %2286  ;;  %v2899_v15 = vpack.c.bf16 %v6817_v51, %v4964_v9  ;;  %v4968_v29 = vpop.eup %4967 }
 0x5c0   : > { %4977 = vpow2.f32 %v2436_v41  ;;  %v2396_v58 = vsub.f32 %v7397_v30, %v2287_v37  ;;  %v2446_v35 = vmul.f32 1.442695, %v2399_v33 }
 0x5c1   : > { %v2312_v27 = vpop.permute.xlu0 %2311  ;;  %2556 = vadd.xlane.f32.xlu0 %v4968_v29  ;;  %4470 = vmatprep.mubr.bf16.mxu1 %v2899_v15  ;;  %4979 = vpow2.f32 %v2442_v3  ;;  %v7401_v3 = vld [vmem:[#allocation57_spill] sm:$0xff] }
 0x5c2   : > { %v4970_v32 = vpop.eup %4969  ;;  %v2440_v20 = vmul.f32 1.442695, %v2396_v58  ;;  %v2401_v49 = vsub.f32 %v7398_v25, %v2312_v27 }
 0x5c3   : > { %v2297_v36 = vpop.permute.xlu1 %2296  ;;  %v2900_v22 = vpack.c.bf16 %v4970_v32, %v4968_v29  ;;  %v6824_v24 = vpop.eup %4971  ;;  %v7402_v29 = vld [vmem:[#allocation63_spill] sm:$0xff] }
 0x5c4   : > { %4981 = vpow2.f32 %v2440_v20  ;;  %v2398_v18 = vsub.f32 %v7399_v31, %v2297_v36  ;;  %2544 = vadd.xlane.f32.xlu1 %v4960_v62  ;;  %v2450_v23 = vmul.f32 1.442695, %v2401_v49  ;;  %v7403_v20 = vld [vmem:[#allocation56_spill] sm:$0xff]  ;;  %v7404_v31 = vld [vmem:[#allocation62_spill] sm:$0xff] }
 0x5c5   : > { %v2322_v12 = vpop.permute.xlu0 %2321  ;;  %2552 = vadd.xlane.f32.xlu0 %v4964_v9  ;;  %4471 = vmatmul.mubr.bf16.gmra.mrb[36].mxu1 %v2900_v22  ;;  %4983 = vpow2.f32 %v2446_v35 }
 0x5c6   : > { %v4974_v52 = vpop.eup %4973  ;;  %v2444_v8 = vmul.f32 1.442695, %v2398_v18  ;;  %v2403_v17 = vsub.f32 %v7400_v26, %v2322_v12 }
 0x5c7   : > { %v2307_v42 = vpop.permute.xlu1 %2306  ;;  %v2901_v41 = vpack.c.bf16 %v6824_v24, %v4974_v52  ;;  %v4976_v62 = vpop.eup %4975 }
 0x5c8   : > { %4985 = vpow2.f32 %v2444_v8  ;;  %v2400_v34 = vsub.f32 %v7401_v3, %v2307_v42  ;;  %2550 = vadd.xlane.f32.xlu1 %v6806_v54  ;;  %v2454_v15 = vmul.f32 1.442695, %v2403_v17 }
 0x5c9   : > { %v2332_v33 = vpop.permute.xlu0 %2331  ;;  %4474 = vmatprep.mubr.bf16.mxu1 %v2901_v41  ;;  %4987 = vpow2.f32 %v2450_v23  ;;  %v7405_v23 = vld [vmem:[#allocation61_spill] sm:$0xff] }
 0x5ca   : > { %v4978_v37 = vpop.eup %4977  ;;  %v2448_v9 = vmul.f32 1.442695, %v2400_v34  ;;  %v2405_v30 = vsub.f32 %v7402_v29, %v2332_v33  ;;  %v7406_v34 = vld [vmem:[#allocation67_spill] sm:$0xff] }
 0x5cb   : > { %2564 = vadd.xlane.f32.xlu0 %v4978_v37  ;;  %v2317_v58 = vpop.permute.xlu1 %2316  ;;  %v2902_v27 = vpack.c.bf16 %v4976_v62, %v4978_v37  ;;  %v6832_v25 = vpop.eup %4979 }
 0x5cc   : > { %4989 = vpow2.f32 %v2448_v9  ;;  %v2402_v35 = vsub.f32 %v7403_v20, %v2317_v58  ;;  %2558 = vadd.xlane.f32.xlu1 %v4970_v32  ;;  %v2458_v22 = vmul.f32 1.442695, %v2405_v30  ;;  %v7407_v9 = vld [vmem:[#allocation60_spill] sm:$0xff]  ;;  %v7408_v20 = vld [vmem:[#allocation66_spill] sm:$0xff] }
 0x5cd   : > { %v2342_v49 = vpop.permute.xlu0 %2341  ;;  %4475 = vmatmul.mubr.bf16.gmra.mrb[40].mxu1 %v2902_v27  ;;  %4991 = vpow2.f32 %v2454_v15 }
 0x5ce   : > { %v4982_v54 = vpop.eup %4981  ;;  %v2452_v36 = vmul.f32 1.442695, %v2402_v35  ;;  %v2407_v18 = vsub.f32 %v7404_v31, %v2342_v49 }
 0x5cf   : > { %2560 = vadd.xlane.f32.xlu0 %v4974_v52  ;;  %v2327_v12 = vpop.permute.xlu1 %2326  ;;  %v2903_v8 = vpack.c.bf16 %v6832_v25, %v4982_v54  ;;  %v4984_v32 = vpop.eup %4983 }
 0x5d0   : > { %4993 = vpow2.f32 %v2452_v36  ;;  %v2404_v26 = vsub.f32 %v7405_v23, %v2327_v12  ;;  %2554 = vadd.xlane.f32.xlu1 %v6817_v51  ;;  %v2462_v3 = vmul.f32 1.442695, %v2407_v18 }
 0x5d1   : > { %v2352_v17 = vpop.permute.xlu0 %2351  ;;  %4478 = vmatprep.mubr.bf16.mxu1 %v2903_v8  ;;  %4995 = vpow2.f32 %v2458_v22  ;;  %v7409_v22 = vld [vmem:[#allocation65_spill] sm:$0xff] }
 0x5d2   : > { %v4986_v42 = vpop.eup %4985  ;;  %v2456_v41 = vmul.f32 1.442695, %v2404_v26  ;;  %v2409_v33 = vsub.f32 %v7406_v34, %v2352_v17  ;;  %v7410_v26 = vld [vmem:[#allocation71_spill] sm:$0xff] }
 0x5d3   : > { %2572 = vadd.xlane.f32.xlu0 %v4986_v42  ;;  %v2337_v37 = vpop.permute.xlu1 %2336  ;;  %v2904_v52 = vpack.c.bf16 %v4984_v32, %v4986_v42  ;;  %v4988_v29 = vpop.eup %4987 }
 0x5d4   : > { %4997 = vpow2.f32 %v2456_v41  ;;  %v2406_v15 = vsub.f32 %v7407_v9, %v2337_v37  ;;  %2566 = vadd.xlane.f32.xlu1 %v4976_v62  ;;  %v2466_v27 = vmul.f32 1.442695, %v2409_v33  ;;  %v7412_v9 = vld [vmem:[#allocation70_spill] sm:$0xff] }
 0x5d5   : > { %v2362_v30 = vpop.permute.xlu0 %2361  ;;  %4479 = vmatmul.mubr.bf16.gmra.mrb[44].mxu1 %v2904_v52  ;;  %4999 = vpow2.f32 %v2462_v3 }
 0x5d6   : > { %v4990_v51 = vpop.eup %4989  ;;  %v2460_v58 = vmul.f32 1.442695, %v2406_v15  ;;  %v2411_v35 = vsub.f32 %v7408_v20, %v2362_v30 }
 0x5d7   : > { %2568 = vadd.xlane.f32.xlu0 %v4982_v54  ;;  %v2347_v49 = vpop.permute.xlu1 %2346  ;;  %v2905_v36 = vpack.c.bf16 %v4988_v29, %v4990_v51  ;;  %v4992_v18 = vpop.eup %4991  ;;  %v7411_v54 = vld [vmem:[#allocation64_spill] sm:$0xff] }
 0x5d8   : > { %5001 = vpow2.f32 %v2460_v58  ;;  %v2408_v31 = vsub.f32 %v7409_v22, %v2347_v49  ;;  %2562 = vadd.xlane.f32.xlu1 %v6824_v24  ;;  %v2470_v23 = vmul.f32 1.442695, %v2411_v35 }
 0x5d9   : > { %v2372_v12 = vpop.permute.xlu0 %2371  ;;  %4482 = vmatprep.mubr.bf16.mxu1 %v2905_v36  ;;  %5003 = vpow2.f32 %v2466_v27  ;;  %v7413_v27 = vld [vmem:[#allocation69_spill] sm:$0xff] }
 0x5da   : > { %v4994_v62 = vpop.eup %4993  ;;  %v2464_v8 = vmul.f32 1.442695, %v2408_v31  ;;  %v2413_v17 = vsub.f32 %v7410_v26, %v2372_v12  ;;  %v7414_v12 = vld [vmem:[#allocation68_spill] sm:$0xff] }
 0x5db   : > { %2580 = vadd.xlane.f32.xlu0 %v4994_v62  ;;  %v2357_v42 = vpop.permute.xlu1 %2356  ;;  %v2906_v41 = vpack.c.bf16 %v4992_v18, %v4994_v62  ;;  %v4996_v34 = vpop.eup %4995 }
 0x5dc   : > { %5005 = vpow2.f32 %v2464_v8  ;;  %v2410_v3 = vsub.f32 %v7411_v54, %v2357_v42  ;;  %2574 = vadd.xlane.f32.xlu1 %v4984_v32  ;;  %v2474_v52 = vmul.f32 1.442695, %v2413_v17 }
 0x5dd   : > { %v2382_v33 = vpop.permute.xlu0 %2381  ;;  %4483 = vmatmul.mubr.bf16.gmra.mrb[48].mxu1 %v2906_v41  ;;  %5007 = vpow2.f32 %v2470_v23 }
 0x5de   : > { %v4998_v24 = vpop.eup %4997  ;;  %v2468_v37 = vmul.f32 1.442695, %v2410_v3  ;;  %v2415_v15 = vsub.f32 %v7412_v9, %v2382_v33 }
 0x5df   : > { %2576 = vadd.xlane.f32.xlu0 %v4990_v51  ;;  %v2367_v30 = vpop.permute.xlu1 %2366  ;;  %v2907_v58 = vpack.c.bf16 %v4996_v34, %v4998_v24  ;;  %v5000_v35 = vpop.eup %4999 }
 0x5e0   : > { %5009 = vpow2.f32 %v2468_v37  ;;  %v2412_v20 = vsub.f32 %v7413_v27, %v2367_v30  ;;  %2570 = vadd.xlane.f32.xlu1 %v6832_v25  ;;  %v2478_v36 = vmul.f32 1.442695, %v2415_v15  ;;  %v7415_v15 = vsub.f32 %v6606_v7, %v6617_v5  ;;  %v7416_v27 = vld [vmem:[#allocation73_spill] sm:$0xff] }
 0x5e1   : > { %4486 = vmatprep.mubr.bf16.mxu1 %v2907_v58  ;;  %5011 = vpow2.f32 %v2474_v52  ;;  %v6849_v3 = vpop.permute.xlu0 %2707 }
 0x5e2   : > { %v5002_v32 = vpop.eup %5001  ;;  %v2472_v49 = vmul.f32 1.442695, %v2412_v20  ;;  %v7417_v20 = vsub.f32 %v7416_v27, %v6614_v6 }
 0x5e3   : > { %2588 = vadd.xlane.f32.xlu0 %v5002_v32  ;;  %v2377_v22 = vpop.permute.xlu1 %2376  ;;  %v2908_v31 = vpack.c.bf16 %v5000_v35, %v5002_v32  ;;  %v5004_v51 = vpop.eup %5003 }
 0x5e4   : > { %5013 = vpow2.f32 %v2472_v49  ;;  %v2414_v62 = vsub.f32 %v7414_v12, %v2377_v22  ;;  %2582 = vadd.xlane.f32.xlu1 %v4992_v18 }
 0x5e5   : > { %4487 = vmatmul.mubr.bf16.gmra.mrb[52].mxu1 %v2908_v31  ;;  %5015 = vpow2.f32 %v2478_v36 }
 0x5e6   : > { %v5006_v8 = vpop.eup %5005  ;;  %v2476_v23 = vmul.f32 1.442695, %v2414_v62 }
 0x5e7   : > { %2584 = vadd.xlane.f32.xlu0 %v4998_v24  ;;  %v2909_v25 = vpack.c.bf16 %v5004_v51, %v5006_v8  ;;  %v5008_v26 = vpop.eup %5007  ;;  %v6853_v52 = vpop.permute.xlu1 %2712 }
 0x5e8   : > { %5017 = vpow2.f32 %v2476_v23  ;;  %2578 = vadd.xlane.f32.xlu1 %v4988_v29  ;;  %v6851_v29 = vpop.permute.xlu0 %2722 }
 0x5e9   : > { %4490 = vmatprep.mubr.bf16.mxu1 %v2909_v25 }
 0x5ea   : > { %v5010_v17 = vpop.eup %5009 }
 0x5eb   : > { %2596 = vadd.xlane.f32.xlu0 %v5010_v17  ;;  %v2910_v42 = vpack.c.bf16 %v5008_v26, %v5010_v17  ;;  %v5012_v41 = vpop.eup %5011  ;;  %v6860_v30 = vpop.permute.xlu1 %2717 }
 0x5ec   : > { %2590 = vadd.xlane.f32.xlu1 %v5000_v35  ;;  %v6855_v9 = vpop.permute.xlu0 %2732  ;;  %v2220_v35 = vmul.f32 1.442695, %v7417_v20 }
 0x5ed   : > { %4491 = vmatmul.mubr.bf16.gmra.mrb[56].mxu1 %v2910_v42 }
 0x5ee   : > { %v5014_v54 = vpop.eup %5013 }
 0x5ef   : > { %2592 = vadd.xlane.f32.xlu0 %v5006_v8  ;;  %v2911_v18 = vpack.c.bf16 %v5012_v41, %v5014_v54  ;;  %v5016_v33 = vpop.eup %5015  ;;  %v6867_v32 = vpop.permute.xlu1 %2727 }
 0x5f0   : > { %2586 = vadd.xlane.f32.xlu1 %v4996_v34  ;;  %v2222_v34 = vmul.f32 1.442695, %v7415_v15  ;;  %v6862_v58 = vpop.permute.xlu0 %2742 }
 0x5f1   : > { %4494 = vmatprep.mubr.bf16.mxu1 %v2911_v18 }
 0x5f2   : > { %v5018_v24 = vpop.eup %5017  ;;  %5019 = vpow2.f32 %v2222_v34  ;;  %v2482_v34 = vld [vmem:[#allocation4 + $0x10] sm:$0xff] }
 0x5f3   : > { %2604 = vadd.xlane.f32.xlu0 %v5018_v24  ;;  %v2912_v37 = vpack.c.bf16 %v5016_v33, %v5018_v24  ;;  %5021 = vpow2.f32 %v2220_v35  ;;  %v6871_v36 = vpop.permute.xlu1 %2737  ;;  %v2514_v27 = vmul.f32 %v6683_v56, %v2482_v34  ;;  %v2481_v35 = vld [vmem:[#allocation4 + $0x8] sm:$0xff]  ;;  %v2484_v34 = vld [vmem:[#allocation4 + $0x20] sm:$0xff] }
 0x5f4   : > { %2598 = vadd.xlane.f32.xlu1 %v5008_v26  ;;  %v6869_v49 = vpop.permute.xlu0 %2752 }
 0x5f5   : > { %4495 = vmatmul.mubr.bf16.gmra.mrb[60].mxu1 %v2912_v37 }
 0x5f7   : > { %2600 = vadd.xlane.f32.xlu0 %v5014_v54  ;;  %v6880_v31 = vpop.permute.xlu1 %2747 }
 0x5f8   : > { %2594 = vadd.xlane.f32.xlu1 %v5004_v51  ;;  %v6875_v5 = vpop.permute.xlu0 %2762 }
 0x5fb   : > { %v6885_v12 = vpop.permute.xlu1 %2757 }
 0x5fc   : > { %2606 = vadd.xlane.f32.xlu1 %v5016_v33  ;;  %v6873_v22 = vpop.eup %5019  ;;  %v6883_v6 = vpop.permute.xlu0 %2772 }
 0x5fd   : > { %v6878_v7 = vpop.eup %5021 }
 0x5ff   : > { %v6889_v51 = vpop.permute.xlu1 %2767 }
 0x600   : > { %2602 = vadd.xlane.f32.xlu1 %v5012_v41  ;;  %v6887_v62 = vpop.permute.xlu0 %2782 }
 0x603   : > { %v6893_v23 = vpop.permute.xlu1 %2777 }
 0x604   : > { %v6891_v8 = vpop.permute.xlu0 %2792 }
 0x605   : > { %7418 = vst [vmem:[#allocation72_spill] sm:$0xff] %v6891_v8 }
 0x607   : > { %v6897_v26 = vpop.permute.xlu1 %2787 }
 0x608   : > { %v6895_v25 = vpop.permute.xlu0 %2802 }
 0x609   : > { %7419 = vst [vmem:[#allocation40_spill] sm:$0xff] %v6895_v25 }
 0x60b   : > { %v6901_v42 = vpop.permute.xlu1 %2797 }
 0x60c   : > { %v6899_v17 = vpop.permute.xlu0 %2812 }
 0x60d   : > { %2862 = vperm.xlu0 %4813, %v6873_v22   ;;  %7420 = vst [vmem:[#allocation41_spill] sm:$0xff] %v6899_v17 }
 0x60f   : > { %v6905_v54 = vpop.permute.xlu1 %2807 }
 0x610   : > { %v6903_v41 = vpop.permute.xlu0 %2822  ;;  %7422 = vst [vmem:[#allocation43_spill] sm:$0xff] %v6905_v54 }
 0x611   : > { %2857 = vperm.xlu1 %4814, %v6878_v7   ;;  %7421 = vst [vmem:[#allocation42_spill] sm:$0xff] %v6903_v41 }
 0x613   : > { %v6909_v33 = vpop.permute.xlu1 %2817 }
 0x614   : > { %v6907_v18 = vpop.permute.xlu0 %2842  ;;  %7424 = vst [vmem:[#allocation44_spill] sm:$0xff] %v6909_v33  ;;  %v2486_v33 = vld [vmem:[#allocation4 + $0x30] sm:$0xff] }
 0x615   : > { %7423 = vst [vmem:[#allocation45_spill] sm:$0xff] %v6907_v18  ;;  %v2513_v18 = vmul.f32 %v6675_v13, %v2481_v35  ;;  %v2516_v13 = vmul.f32 %v6696_v40, %v2484_v34  ;;  %v2485_v34 = vld [vmem:[#allocation4 + $0x28] sm:$0xff] }
 0x617   : > { %v6913_v37 = vpop.permute.xlu1 %2837 }
 0x618   : > { %v6911_v24 = vpop.permute.xlu0 %2832  ;;  %7426 = vst [vmem:[#allocation51_spill] sm:$0xff] %v6913_v37  ;;  %v2480_v37 = vld [vmem:[#allocation4] sm:$0xff] }
 0x619   : > { %7425 = vst [vmem:[#allocation47_spill] sm:$0xff] %v6911_v24 }
 0x61b   : > { %v6918_v17 = vpop.permute.xlu1 %2827 }
 0x61c   : > { %v6915_v15 = vpop.permute.xlu0 %2852  ;;  %7428 = vst [vmem:[#allocation50_spill] sm:$0xff] %v6918_v17  ;;  %v2512_v17 = vmul.f32 %v6661_v55, %v2480_v37 }
 0x61d   : > { %7427 = vst [vmem:[#allocation46_spill] sm:$0xff] %v6915_v15  ;;  %v2518_v15 = vmul.f32 %v6704_v59, %v2486_v33  ;;  %v2490_v59 = vld [vmem:[#allocation4 + $0x50] sm:$0xff] }
 0x61e   : > { %v2522_v55 = vmul.f32 %v6725_v60, %v2490_v59  ;;  %v2494_v60 = vld [vmem:[#allocation4 + $0x70] sm:$0xff] }
 0x61f   : > { %v6922_v24 = vpop.permute.xlu1 %2847 }
 0x646   : > { %v2549_v20 = vpop.xlane.xlu0 %2548 }
 0x647   : > { %v2610_v41 = vadd.f32 %v2549_v20, %v2514_v27  ;;  %v2483_v27 = vld [vmem:[#allocation4 + $0x18] sm:$0xff] }
 0x649   : > { %2643 = vst.msk [vmem:[#allocation4 + $0x10] sm:$0xff] %vm2640_vm1, %v2610_v41 }
 0x64a   : > { %v2547_v54 = vpop.xlane.xlu0 %2546 }
 0x64b   : > { %v2609_v8 = vadd.f32 %v2547_v54, %v2513_v18 }
 0x64d   : > { %2642 = vst.msk [vmem:[#allocation4 + $0x8] sm:$0xff] %vm2640_vm1, %v2609_v8  ;;  %v2515_v8 = vmul.f32 %v6667_v48, %v2483_v27  ;;  %v2517_v27 = vmul.f32 %v6680_v44, %v2485_v34  ;;  %v2495_v34 = vld [vmem:[#allocation4 + $0x78] sm:$0xff] }
 0x64e   : > { %v2557_v56 = vpop.xlane.xlu0 %2556 }
 0x64f   : > { %v2614_v25 = vadd.f32 %v2557_v56, %v2518_v15  ;;  %v2487_v15 = vld [vmem:[#allocation4 + $0x38] sm:$0xff] }
 0x650   : > { %v2519_v40 = vmul.f32 %v6688_v39, %v2487_v15  ;;  %v2526_v39 = vmul.f32 %v6746_v45, %v2494_v60  ;;  %v2498_v45 = vld [vmem:[#allocation4 + $0x90] sm:$0xff] }
 0x651   : > { %2647 = vst.msk [vmem:[#allocation4 + $0x30] sm:$0xff] %vm2640_vm1, %v2614_v25  ;;  %v2545_v41 = vpop.xlane.xlu1 %2544 }
 0x652   : > { %v2608_v20 = vadd.f32 %v2545_v41, %v2512_v17  ;;  %v2553_v54 = vpop.xlane.xlu0 %2552  ;;  %v2488_v17 = vld [vmem:[#allocation4 + $0x40] sm:$0xff] }
 0x653   : > { %v2612_v18 = vadd.f32 %v2553_v54, %v2516_v13  ;;  %v2520_v48 = vmul.f32 %v6717_v50, %v2488_v17  ;;  %v2492_v50 = vld [vmem:[#allocation4 + $0x60] sm:$0xff] }
 0x654   : > { %2641 = vst.msk [vmem:[#allocation4] sm:$0xff] %vm2640_vm1, %v2608_v20  ;;  %v2524_v44 = vmul.f32 %v6738_v57, %v2492_v50  ;;  %v2496_v57 = vld [vmem:[#allocation4 + $0x80] sm:$0xff] }
 0x655   : > { %2645 = vst.msk [vmem:[#allocation4 + $0x20] sm:$0xff] %vm2640_vm1, %v2612_v18  ;;  %v2551_v33 = vpop.xlane.xlu1 %2550  ;;  %v2491_v18 = vld [vmem:[#allocation4 + $0x58] sm:$0xff] }
 0x656   : > { %v2611_v35 = vadd.f32 %v2551_v33, %v2515_v8  ;;  %v2523_v33 = vmul.f32 %v6709_v61, %v2491_v18  ;;  %v2530_v61 = vmul.f32 %v6769_v14, %v2498_v45  ;;  %v2502_v14 = vld [vmem:[#allocation4 + $0xb0] sm:$0xff] }
 0x658   : > { %2644 = vst.msk [vmem:[#allocation4 + $0x18] sm:$0xff] %vm2640_vm1, %v2611_v35  ;;  %v2565_v25 = vpop.xlane.xlu0 %2564 }
 0x659   : > { %v2618_v37 = vadd.f32 %v2565_v25, %v2522_v55  ;;  %v2559_v56 = vpop.xlane.xlu1 %2558  ;;  %v2489_v55 = vld [vmem:[#allocation4 + $0x48] sm:$0xff] }
 0x65a   : > { %v2615_v41 = vadd.f32 %v2559_v56, %v2519_v40  ;;  %v2521_v17 = vmul.f32 %v6701_v19, %v2489_v55  ;;  %v2528_v19 = vmul.f32 %v6759_v1, %v2496_v57  ;;  %v2500_v1 = vld [vmem:[#allocation4 + $0xa0] sm:$0xff] }
 0x65b   : > { %2651 = vst.msk [vmem:[#allocation4 + $0x50] sm:$0xff] %vm2640_vm1, %v2618_v37 }
 0x65c   : > { %2648 = vst.msk [vmem:[#allocation4 + $0x38] sm:$0xff] %vm2640_vm1, %v2615_v41  ;;  %v2561_v13 = vpop.xlane.xlu0 %2560 }
 0x65d   : > { %v2616_v20 = vadd.f32 %v2561_v13, %v2520_v48  ;;  %v2555_v54 = vpop.xlane.xlu1 %2554  ;;  %v2527_v13 = vmul.f32 %v6730_v47, %v2495_v34  ;;  %v2534_v47 = vmul.f32 %v6783_v38, %v2502_v14  ;;  %v2506_v38 = vld [vmem:[#allocation4 + $0xd0] sm:$0xff]  ;;  %v2503_v34 = vld [vmem:[#allocation4 + $0xb8] sm:$0xff] }
 0x65e   : > { %v2613_v8 = vadd.f32 %v2555_v54, %v2517_v27 }
 0x65f   : > { %2649 = vst.msk [vmem:[#allocation4 + $0x40] sm:$0xff] %vm2640_vm1, %v2616_v20  ;;  %v2493_v20 = vld [vmem:[#allocation4 + $0x68] sm:$0xff] }
 0x660   : > { %2646 = vst.msk [vmem:[#allocation4 + $0x28] sm:$0xff] %vm2640_vm1, %v2613_v8  ;;  %v2573_v59 = vpop.xlane.xlu0 %2572  ;;  %v2525_v8 = vmul.f32 %v6722_v2, %v2493_v20  ;;  %v2532_v2 = vmul.f32 %v6777_v46, %v2500_v1  ;;  %v2504_v46 = vld [vmem:[#allocation4 + $0xc0] sm:$0xff] }
 0x661   : > { %v2622_v15 = vadd.f32 %v2573_v59, %v2526_v39  ;;  %v2567_v35 = vpop.xlane.xlu1 %2566 }
 0x662   : > { %v2619_v25 = vadd.f32 %v2567_v35, %v2523_v33  ;;  %v2499_v33 = vld [vmem:[#allocation4 + $0x98] sm:$0xff] }
 0x663   : > { %2655 = vst.msk [vmem:[#allocation4 + $0x70] sm:$0xff] %vm2640_vm1, %v2622_v15  ;;  %v2531_v35 = vmul.f32 %v6751_v63, %v2499_v33  ;;  %v2538_v63 = vmul.f32 %v6789_v4, %v2506_v38  ;;  %v2510_v4 = vld [vmem:[#allocation4 + $0xf0] sm:$0xff] }
 0x664   : > { %2652 = vst.msk [vmem:[#allocation4 + $0x58] sm:$0xff] %vm2640_vm1, %v2619_v25  ;;  %v2569_v40 = vpop.xlane.xlu0 %2568 }
 0x665   : > { %v2620_v37 = vadd.f32 %v2569_v40, %v2524_v44  ;;  %v2563_v56 = vpop.xlane.xlu1 %2562  ;;  %v2497_v44 = vld [vmem:[#allocation4 + $0x88] sm:$0xff] }
 0x666   : > { %v2617_v41 = vadd.f32 %v2563_v56, %v2521_v17  ;;  %v2529_v45 = vmul.f32 %v6743_v43, %v2497_v44  ;;  %v2536_v43 = vmul.f32 %v6795_v16, %v2504_v46  ;;  %v2508_v16 = vld [vmem:[#allocation4 + $0xe0] sm:$0xff]  ;;  %v2511_v44 = vld [vmem:[#allocation4 + $0xf8] sm:$0xff] }
 0x667   : > { %2653 = vst.msk [vmem:[#allocation4 + $0x60] sm:$0xff] %vm2640_vm1, %v2620_v37 }
 0x668   : > { %2650 = vst.msk [vmem:[#allocation4 + $0x48] sm:$0xff] %vm2640_vm1, %v2617_v41  ;;  %v2581_v48 = vpop.xlane.xlu0 %2580 }
 0x669   : > { %v2626_v27 = vadd.f32 %v2581_v48, %v2530_v61  ;;  %v2575_v60 = vpop.xlane.xlu1 %2574  ;;  %v2535_v48 = vmul.f32 %v6772_v0, %v2503_v34  ;;  %v2542_v0 = vmul.f32 %v6878_v7, %v2510_v4  ;;  %v2675_v7 = vld [vmem:[#allocation5 + $0x10] sm:$0xff] }
 0x66a   : > { %v2623_v54 = vadd.f32 %v2575_v60, %v2527_v13 }
 0x66b   : > { %2659 = vst.msk [vmem:[#allocation4 + $0x90] sm:$0xff] %vm2640_vm1, %v2626_v27  ;;  %v2501_v27 = vld [vmem:[#allocation4 + $0xa8] sm:$0xff] }
 0x66c   : > { %2656 = vst.msk [vmem:[#allocation4 + $0x78] sm:$0xff] %vm2640_vm1, %v2623_v54  ;;  %v2577_v18 = vpop.xlane.xlu0 %2576  ;;  %v2533_v54 = vmul.f32 %v6764_v10, %v2501_v27  ;;  %v2540_v10 = vmul.f32 %v6799_v28, %v2508_v16  ;;  %v2543_v28 = vmul.f32 %v6873_v22, %v2511_v44 }
 0x66d   : > { %v2624_v39 = vadd.f32 %v2577_v18, %v2528_v19  ;;  %v2571_v59 = vpop.xlane.xlu1 %2570 }
 0x66e   : > { %v2621_v50 = vadd.f32 %v2571_v59, %v2525_v8  ;;  %v2507_v8 = vld [vmem:[#allocation4 + $0xd8] sm:$0xff] }
 0x66f   : > { %2657 = vst.msk [vmem:[#allocation4 + $0x80] sm:$0xff] %vm2640_vm1, %v2624_v39  ;;  %v2539_v59 = vmul.f32 %v6780_v11, %v2507_v8 }
 0x670   : > { %2654 = vst.msk [vmem:[#allocation4 + $0x68] sm:$0xff] %vm2640_vm1, %v2621_v50  ;;  %v2589_v15 = vpop.xlane.xlu0 %2588 }
 0x671   : > { %v2630_v55 = vadd.f32 %v2589_v15, %v2534_v47  ;;  %v2583_v25 = vpop.xlane.xlu1 %2582  ;;  %v2505_v47 = vld [vmem:[#allocation4 + $0xc8] sm:$0xff] }
 0x672   : > { %v2627_v40 = vadd.f32 %v2583_v25, %v2531_v35  ;;  %v2537_v1 = vmul.f32 %v6786_v53, %v2505_v47  ;;  %v2681_v47 = vld [vmem:[#allocation5 + $0x40] sm:$0xff] }
 0x673   : > { %2663 = vst.msk [vmem:[#allocation4 + $0xb0] sm:$0xff] %vm2640_vm1, %v2630_v55 }
 0x674   : > { %2660 = vst.msk [vmem:[#allocation4 + $0x98] sm:$0xff] %vm2640_vm1, %v2627_v40  ;;  %v2585_v17 = vpop.xlane.xlu0 %2584  ;;  %v2673_v40 = vld [vmem:[#allocation5] sm:$0xff] }
 0x675   : > { %v2628_v37 = vadd.f32 %v2585_v17, %v2532_v2  ;;  %v2579_v56 = vpop.xlane.xlu1 %2578  ;;  %v2676_v2 = vld [vmem:[#allocation5 + $0x18] sm:$0xff]  ;;  %v2674_v17 = vld [vmem:[#allocation5 + $0x8] sm:$0xff]  ;;  %v2865_v38 = vmul.f32 %v6849_v3, %v2673_v40 }
 0x676   : > { %v2625_v41 = vadd.f32 %v2579_v56, %v2529_v45  ;;  %v2867_v45 = vmul.f32 %v6860_v30, %v2675_v7  ;;  %v2509_v56 = vld [vmem:[#allocation4 + $0xe8] sm:$0xff]  ;;  %v2868_v34 = vmul.f32 %v6851_v29, %v2676_v2  ;;  %v2679_v29 = vld [vmem:[#allocation5 + $0x30] sm:$0xff] }
 0x677   : > { %2661 = vst.msk [vmem:[#allocation4 + $0xa0] sm:$0xff] %vm2640_vm1, %v2628_v37  ;;  %v2541_v22 = vmul.f32 %v6792_v21, %v2509_v56 }
 0x678   : > { %2658 = vst.msk [vmem:[#allocation4 + $0x88] sm:$0xff] %vm2640_vm1, %v2625_v41  ;;  %v2597_v61 = vpop.xlane.xlu0 %2596 }
 0x679   : > { %v2634_v13 = vadd.f32 %v2597_v61, %v2538_v63  ;;  %v2591_v57 = vpop.xlane.xlu1 %2590 }
 0x67a   : > { %v2631_v60 = vadd.f32 %v2591_v57, %v2535_v48  ;;  %v2866_v48 = vmul.f32 %v6853_v52, %v2674_v17  ;;  %v2680_v52 = vld [vmem:[#allocation5 + $0x38] sm:$0xff]  ;;  %v2685_v17 = vld [vmem:[#allocation5 + $0x60] sm:$0xff] }
 0x67b   : > { %2667 = vst.msk [vmem:[#allocation4 + $0xd0] sm:$0xff] %vm2640_vm1, %v2634_v13 }
 0x67c   : > { %2664 = vst.msk [vmem:[#allocation4 + $0xb8] sm:$0xff] %vm2640_vm1, %v2631_v60  ;;  %v2593_v20 = vpop.xlane.xlu0 %2592 }
 0x67d   : > { %v2632_v19 = vadd.f32 %v2593_v20, %v2536_v43  ;;  %v2587_v18 = vpop.xlane.xlu1 %2586  ;;  %v2677_v43 = vld [vmem:[#allocation5 + $0x20] sm:$0xff]  ;;  %v2678_v20 = vld [vmem:[#allocation5 + $0x28] sm:$0xff] }
 0x67e   : > { %v2629_v14 = vadd.f32 %v2587_v18, %v2533_v54  ;;  %v2871_v54 = vmul.f32 %v6871_v36, %v2679_v29  ;;  %v2869_v4 = vmul.f32 %v6867_v32, %v2677_v43  ;;  %v2872_v18 = vmul.f32 %v6862_v58, %v2680_v52  ;;  %v2684_v36 = vld [vmem:[#allocation5 + $0x58] sm:$0xff]  ;;  %v2682_v32 = vld [vmem:[#allocation5 + $0x48] sm:$0xff] }
 0x67f   : > { %2665 = vst.msk [vmem:[#allocation4 + $0xc0] sm:$0xff] %vm2640_vm1, %v2632_v19  ;;  %v2873_v58 = vmul.f32 %v6880_v31, %v2681_v47  ;;  %v2874_v7 = vmul.f32 %v6869_v49, %v2682_v32  ;;  %v2686_v31 = vld [vmem:[#allocation5 + $0x68] sm:$0xff] }
 0x680   : > { %2662 = vst.msk [vmem:[#allocation4 + $0xa8] sm:$0xff] %vm2640_vm1, %v2629_v14  ;;  %v2605_v39 = vpop.xlane.xlu0 %2604  ;;  %v2870_v14 = vmul.f32 %v6855_v9, %v2678_v20  ;;  %v2876_v9 = vmul.f32 %v6875_v5, %v2684_v36  ;;  %v2877_v5 = vmul.f32 %v6889_v51, %v2685_v17  ;;  %v2690_v51 = vld [vmem:[#allocation5 + $0x88] sm:$0xff] }
 0x681   : > { %v2638_v33 = vadd.f32 %v2605_v39, %v2542_v0  ;;  %v2599_v50 = vpop.xlane.xlu1 %2598 }
 0x682   : > { %v2635_v15 = vadd.f32 %v2599_v50, %v2539_v59 }
 0x683   : > { %2671 = vst.msk [vmem:[#allocation4 + $0xf0] sm:$0xff] %vm2640_vm1, %v2638_v33  ;;  %v2683_v33 = vld [vmem:[#allocation5 + $0x50] sm:$0xff] }
 0x684   : > { %2668 = vst.msk [vmem:[#allocation4 + $0xd8] sm:$0xff] %vm2640_vm1, %v2635_v15  ;;  %v2601_v35 = vpop.xlane.xlu0 %2600  ;;  %v2875_v15 = vmul.f32 %v6885_v12, %v2683_v33  ;;  %v2688_v12 = vld [vmem:[#allocation5 + $0x78] sm:$0xff] }
 0x685   : > { %v2636_v55 = vadd.f32 %v2601_v35, %v2540_v10  ;;  %v2595_v25 = vpop.xlane.xlu1 %2594  ;;  %v2880_v49 = vmul.f32 %v6887_v62, %v2688_v12 }
 0x686   : > { %v2633_v11 = vadd.f32 %v2595_v25, %v2537_v1 }
 0x687   : > { %2669 = vst.msk [vmem:[#allocation4 + $0xe0] sm:$0xff] %vm2640_vm1, %v2636_v55 }
 0x688   : > { %2666 = vst.msk [vmem:[#allocation4 + $0xc8] sm:$0xff] %vm2640_vm1, %v2633_v11  ;;  %v2687_v11 = vld [vmem:[#allocation5 + $0x70] sm:$0xff] }
 0x689   : > { %v4468_v37 = vpop.f32.mrb[32].mxu1  ;;  %v2607_v53 = vpop.xlane.xlu1 %2606 }
 0x68a   : > { %v3084_v41 = vadd.f32 %v4468_v37, %v2867_v45  ;;  %v2639_v63 = vadd.f32 %v2607_v53, %v2543_v28  ;;  %v2955_v61 = vpop.f32.mrb[33].mxu1  ;;  %v2879_v45 = vmul.f32 %v6893_v23, %v2687_v11  ;;  %v2878_v53 = vmul.f32 %v6883_v6, %v2686_v31  ;;  %v2692_v23 = vld [vmem:[#allocation5 + $0x98] sm:$0xff] }
 0x68b   : > { %v3082_v46 = vadd.f32 %v2955_v61, %v2865_v38  ;;  %v4469_v13 = vpop.f32.mrb[34].mxu1  ;;  %v2691_v61 = vld [vmem:[#allocation5 + $0x90] sm:$0xff] }
 0x68c   : > { %3116 = vst [vmem:[#allocation5 + $0x10] sm:$0xff] %v3084_v41  ;;  %2672 = vst.msk [vmem:[#allocation4 + $0xf8] sm:$0xff] %vm2640_vm1, %v2639_v63  ;;  %v3085_v30 = vadd.f32 %v4469_v13, %v2868_v34  ;;  %v2958_v57 = vpop.f32.mrb[35].mxu1  ;;  %v2883_v13 = vmul.f32 %v6901_v42, %v2691_v61  ;;  %v2696_v42 = vld [vmem:[#allocation5 + $0xb8] sm:$0xff]  ;;  %v2863_v61 = vpop.permute.xlu0 %2862 }
 0x68d   : > { %3114 = vst [vmem:[#allocation5] sm:$0xff] %v3082_v46  ;;  %v3083_v3 = vadd.f32 %v2958_v57, %v2866_v48  ;;  %v2603_v27 = vpop.xlane.xlu1 %2602  ;;  %v2689_v46 = vld [vmem:[#allocation5 + $0x80] sm:$0xff] }
 0x68e   : > { %3117 = vst [vmem:[#allocation5 + $0x18] sm:$0xff] %v3085_v30  ;;  %v2637_v60 = vadd.f32 %v2603_v27, %v2541_v22  ;;  %v2881_v62 = vmul.f32 %v6897_v26, %v2689_v46  ;;  %v7429_v57 = vld [vmem:[#allocation40_spill] sm:$0xff]  ;;  %v2694_v26 = vld [vmem:[#allocation5 + $0xa8] sm:$0xff] }
 0x68f   : > { %3115 = vst [vmem:[#allocation5 + $0x8] sm:$0xff] %v3083_v3  ;;  %v2884_v6 = vmul.f32 %v7429_v57, %v2692_v23  ;;  %v7430_v27 = vld [vmem:[#allocation72_spill] sm:$0xff]  ;;  %v7439_v57 = vld [vmem:[#allocation46_spill] sm:$0xff] }
 0x690   : > { %2670 = vst.msk [vmem:[#allocation4 + $0xe8] sm:$0xff] %vm2640_vm1, %v2637_v60  ;;  %v2882_v60 = vmul.f32 %v7430_v27, %v2690_v51 }
 0x698   : > { %v4472_v19 = vpop.f32.mrb[36].mxu1 }
 0x699   : > { %v3088_v21 = vadd.f32 %v4472_v19, %v2871_v54  ;;  %v2971_v8 = vpop.f32.mrb[37].mxu1  ;;  %v2695_v54 = vld [vmem:[#allocation5 + $0xb0] sm:$0xff]  ;;  %v2693_v19 = vld [vmem:[#allocation5 + $0xa0] sm:$0xff] }
 0x69a   : > { %v3086_v0 = vadd.f32 %v2971_v8, %v2869_v4  ;;  %v4473_v39 = vpop.f32.mrb[38].mxu1  ;;  %v7432_v8 = vld [vmem:[#allocation43_spill] sm:$0xff] }
 0x69b   : > { %3120 = vst [vmem:[#allocation5 + $0x30] sm:$0xff] %v3088_v21  ;;  %v3089_v59 = vadd.f32 %v4473_v39, %v2872_v18  ;;  %v2974_v16 = vpop.f32.mrb[39].mxu1  ;;  %v7431_v18 = vld [vmem:[#allocation44_spill] sm:$0xff]  ;;  %v7433_v39 = vld [vmem:[#allocation42_spill] sm:$0xff] }
 0x69c   : > { %3118 = vst [vmem:[#allocation5 + $0x20] sm:$0xff] %v3086_v0  ;;  %v3087_v50 = vadd.f32 %v2974_v16, %v2870_v14  ;;  %v2887_v21 = vmul.f32 %v7431_v18, %v2695_v54  ;;  %v2885_v14 = vmul.f32 %v7432_v8, %v2693_v19  ;;  %v3231_v54 = vld [vmem:[#allocation4 + $0x88] sm:$0xff] (!%p4182_p8)  ;;  %v3214_v19 = vld [vmem:[#allocation4] sm:$0xff] (!%p4182_p8)  ;;  %v5028_v8 = vld [vmem:[#allocation17 + $0x14] ss:$8 sps:$4 sm:$0xff] (!%p4182_p8)  }
 0x69d   : > { %3121 = vst [vmem:[#allocation5 + $0x38] sm:$0xff] %v3089_v59  ;;  %v2888_v59 = vmul.f32 %v7433_v39, %v2696_v42  ;;  %v3223_v42 = vld [vmem:[#allocation4 + $0x48] sm:$0xff] (!%p4182_p8)  ;;  %v5030_v39 = vld [vmem:[#allocation17 + $0x10] ss:$8 sps:$4 sm:$0xff] (!%p4182_p8)  }
 0x69e   : > { %3119 = vst [vmem:[#allocation5 + $0x28] sm:$0xff] %v3087_v50  ;;  %v7434_v50 = vld [vmem:[#allocation41_spill] sm:$0xff] }
 0x69f   : > { %v2886_v47 = vmul.f32 %v7434_v50, %v2694_v26  ;;  %v3222_v26 = vld [vmem:[#allocation4 + $0x40] sm:$0xff] (!%p4182_p8) }
 0x6a0   : > { %v4476_v10 = vpop.f32.mrb[40].mxu1  ;;  %v5025_v18 = vld [vmem:[#allocation17 + $0x4] ss:$8 sps:$4 sm:$0xff] (!%p4182_p8)   ;;  %v5033_v50 = vld [vmem:[#allocation17 + $0x20] ss:$8 sps:$4 sm:$0xff] (!%p4182_p8)  }
 0x6a1   : > { %v3092_v35 = vadd.f32 %v4476_v10, %v2875_v15  ;;  %v2987_v1 = vpop.f32.mrb[41].mxu1  ;;  %v2699_v10 = vld [vmem:[#allocation5 + $0xd0] sm:$0xff]  ;;  %3690 = vmatprep.subr.bf16.mxu0 (!%p4182_p8), %v5025_v18  ;;  %4530 = vmatprep.subr.bf16.mxu1 (!%p4182_p8), %v5025_v18 }
 0x6a2   : > { %v3090_v55 = vadd.f32 %v2987_v1, %v2873_v58  ;;  %v4477_v25 = vpop.f32.mrb[42].mxu1  ;;  %v2700_v1 = vld [vmem:[#allocation5 + $0xd8] sm:$0xff] }
 0x6a3   : > { %3124 = vst [vmem:[#allocation5 + $0x50] sm:$0xff] %v3092_v35  ;;  %v3093_v44 = vadd.f32 %v4477_v25, %v2876_v9  ;;  %v2990_v40 = vpop.f32.mrb[43].mxu1  ;;  %v2697_v35 = vld [vmem:[#allocation5 + $0xc0] sm:$0xff] }
 0x6a4   : > { %3122 = vst [vmem:[#allocation5 + $0x40] sm:$0xff] %v3090_v55  ;;  %v3091_v2 = vadd.f32 %v2990_v40, %v2874_v7  ;;  %v2698_v7 = vld [vmem:[#allocation5 + $0xc8] sm:$0xff]  ;;  %v7435_v55 = vld [vmem:[#allocation51_spill] sm:$0xff] }
 0x6a5   : > { %3125 = vst [vmem:[#allocation5 + $0x58] sm:$0xff] %v3093_v44  ;;  %v2891_v25 = vmul.f32 %v7435_v55, %v2699_v10  ;;  %v7436_v44 = vld [vmem:[#allocation50_spill] sm:$0xff]  ;;  %v3225_v10 = vld [vmem:[#allocation4 + $0x58] sm:$0xff] (!%p4182_p8)  ;;  %v3234_v55 = vld [vmem:[#allocation4 + $0xa0] sm:$0xff] (!%p4182_p8) }
 0x6a6   : > { %3123 = vst [vmem:[#allocation5 + $0x48] sm:$0xff] %v3091_v2  ;;  %v2889_v40 = vmul.f32 %v7436_v44, %v2697_v35  ;;  %v7437_v2 = vld [vmem:[#allocation45_spill] sm:$0xff] }
 0x6a7   : > { %v2892_v17 = vmul.f32 %v7437_v2, %v2700_v1  ;;  %v5039_v35 = vld [vmem:[#allocation17 + $0x40] ss:$8 sps:$4 sm:$0xff] (!%p4182_p8)   ;;  %v5040_v1 = vld [vmem:[#allocation17 + $0x54] ss:$8 sps:$4 sm:$0xff] (!%p4182_p8)   ;;  %v5043_v44 = vld [vmem:[#allocation17 + $0x64] ss:$8 sps:$4 sm:$0xff] (!%p4182_p8)  }
 0x6a8   : > { %v4480_v28 = vpop.f32.mrb[44].mxu1  ;;  %v5045_v2 = vld [vmem:[#allocation17 + $0x60] ss:$8 sps:$4 sm:$0xff] (!%p4182_p8)  }
 0x6a9   : > { %v3096_v38 = vadd.f32 %v4480_v28, %v2879_v45  ;;  %v3003_v37 = vpop.f32.mrb[45].mxu1  ;;  %v7438_v45 = vld [vmem:[#allocation47_spill] sm:$0xff] }
 0x6aa   : > { %v3094_v56 = vadd.f32 %v3003_v37, %v2877_v5  ;;  %v4481_v34 = vpop.f32.mrb[46].mxu1  ;;  %v2890_v5 = vmul.f32 %v7438_v45, %v2698_v7  ;;  %v3235_v7 = vld [vmem:[#allocation4 + $0xa8] sm:$0xff] (!%p4182_p8)  ;;  %v5048_v45 = vld [vmem:[#allocation17 + $0x70] ss:$8 sps:$4 sm:$0xff] (!%p4182_p8)  }
 0x6ab   : > { %3128 = vst [vmem:[#allocation5 + $0x70] sm:$0xff] %v3096_v38  ;;  %v3097_v41 = vadd.f32 %v4481_v34, %v2880_v49  ;;  %v3006_v63 = vpop.f32.mrb[47].mxu1 }
 0x6ac   : > { %3126 = vst [vmem:[#allocation5 + $0x60] sm:$0xff] %v3094_v56  ;;  %v3095_v48 = vadd.f32 %v3006_v63, %v2878_v53  ;;  %v2703_v53 = vld [vmem:[#allocation5 + $0xf0] sm:$0xff]  ;;  %v2858_v56 = vpop.permute.xlu1 %2857  ;;  %v2704_v63 = vld [vmem:[#allocation5 + $0xf8] sm:$0xff] }
 0x6ad   : > { %3129 = vst [vmem:[#allocation5 + $0x78] sm:$0xff] %v3097_v41  ;;  %v2701_v41 = vld [vmem:[#allocation5 + $0xe0] sm:$0xff]  ;;  %v2895_v46 = vmul.f32 %v2858_v56, %v2703_v53  ;;  %v3237_v53 = vld [vmem:[#allocation4 + $0xb8] sm:$0xff] (!%p4182_p8)  ;;  %v3236_v56 = vld [vmem:[#allocation4 + $0xb0] sm:$0xff] (!%p4182_p8) }
 0x6ae   : > { %3127 = vst [vmem:[#allocation5 + $0x68] sm:$0xff] %v3095_v48  ;;  %v2702_v48 = vld [vmem:[#allocation5 + $0xe8] sm:$0xff]  ;;  %v2893_v23 = vmul.f32 %v6922_v24, %v2701_v41  ;;  %v3230_v24 = vld [vmem:[#allocation4 + $0x80] sm:$0xff] (!%p4182_p8) }
 0x6af   : > { %v5055_v41 = vld [vmem:[#allocation17 + $0xa4] ss:$8 sps:$4 sm:$0xff] (!%p4182_p8)  }
 0x6b0   : > { %v4484_v30 = vpop.f32.mrb[48].mxu1 }
 0x6b1   : > { %v3100_v22 = vadd.f32 %v4484_v30, %v2883_v13  ;;  %v3019_v3 = vpop.f32.mrb[49].mxu1  ;;  %v2896_v13 = vmul.f32 %v2863_v61, %v2704_v63  ;;  %v3245_v63 = vld [vmem:[#allocation4 + $0xf8] sm:$0xff] (!%p4182_p8)  ;;  %v3244_v61 = vld [vmem:[#allocation4 + $0xf0] sm:$0xff] (!%p4182_p8) }
 0x6b2   : > { %v3098_v29 = vadd.f32 %v3019_v3, %v2881_v62  ;;  %v4485_v43 = vpop.f32.mrb[50].mxu1 }
 0x6b3   : > { %3132 = vst [vmem:[#allocation5 + $0x90] sm:$0xff] %v3100_v22  ;;  %v3101_v52 = vadd.f32 %v4485_v43, %v2884_v6  ;;  %v3022_v20 = vpop.f32.mrb[51].mxu1  ;;  %v2894_v6 = vmul.f32 %v7439_v57, %v2702_v48  ;;  %v3238_v43 = vld [vmem:[#allocation4 + $0xc0] sm:$0xff] (!%p4182_p8)  ;;  %v3228_v57 = vld [vmem:[#allocation4 + $0x70] sm:$0xff] (!%p4182_p8) }
 0x6b4   : > { %3130 = vst [vmem:[#allocation5 + $0x80] sm:$0xff] %v3098_v29  ;;  %v3099_v4 = vadd.f32 %v3022_v20, %v2882_v60  ;;  %v3239_v20 = vld [vmem:[#allocation4 + $0xc8] sm:$0xff] (!%p4182_p8) }
 0x6b5   : > { %3133 = vst [vmem:[#allocation5 + $0x98] sm:$0xff] %v3101_v52  ;;  %v5505_v52 = vmov (!%p4182_p8), 0   ;;  %v5057_v48 = vld [vmem:[#allocation17 + $0xa0] ss:$8 sps:$4 sm:$0xff] (!%p4182_p8)  }
 0x6b6   : > { %3131 = vst [vmem:[#allocation5 + $0x88] sm:$0xff] %v3099_v4  ;;  %5024 = vset.pattern.permute.xlu1 (!%p4182_p8), %v5505_v52  ;;  %5023 = vset.pattern.permute.xlu0 (!%p4182_p8), %v5505_v52  ;;  %v3215_v4 = vld [vmem:[#allocation4 + $0x8] sm:$0xff] (!%p4182_p8) }
 0x6b7   : > { %3368 = vperm.xlu1 (!%p4182_p8), %5024, %v3238_v43   ;;  %3328 = vperm.xlu0 (!%p4182_p8), %5023, %v3230_v24   ;;  %v5072_v43 = vld [vmem:[#allocation17 + $0xf0] ss:$8 sps:$4 sm:$0xff] (!%p4182_p8)  }
 0x6b8   : > { %v4488_v0 = vpop.f32.mrb[52].mxu1 }
 0x6b9   : > { %v3104_v16 = vadd.f32 %v4488_v0, %v2887_v21  ;;  %v3035_v33 = vpop.f32.mrb[53].mxu1  ;;  %v5027_v21 = vld [vmem:[#allocation17] ss:$8 sps:$4 sm:$0xff] (!%p4182_p8)   ;;  %v3232_v0 = vld [vmem:[#allocation4 + $0x90] sm:$0xff] (!%p4182_p8) }
 0x6ba   : > { %v3102_v36 = vadd.f32 %v3035_v33, %v2885_v14  ;;  %v4489_v32 = vpop.f32.mrb[54].mxu1  ;;  %v3233_v14 = vld [vmem:[#allocation4 + $0x98] sm:$0xff] (!%p4182_p8)  ;;  %3691 = vmatpush1.bf16.msra.mxu0 (!%p4182_p8), %v5027_v21  ;;  %4546 = vmatpush1.bf16.msra.mxu1 (!%p4182_p8), %v5027_v21  ;;  %v3240_v33 = vld [vmem:[#allocation4 + $0xd0] sm:$0xff] (!%p4182_p8) }
 0x6bb   : > { %3136 = vst [vmem:[#allocation5 + $0xb0] sm:$0xff] %v3104_v16  ;;  %v3105_v15 = vadd.f32 %v4489_v32, %v2888_v59  ;;  %v3038_v58 = vpop.f32.mrb[55].mxu1  ;;  %3373 = vperm.xlu1 (!%p4182_p8), %5024, %v3239_v20   ;;  %3333 = vperm.xlu0 (!%p4182_p8), %5023, %v3231_v54   ;;  %v5031_v59 = vld [vmem:[#allocation17 + $0x24] ss:$8 sps:$4 sm:$0xff] (!%p4182_p8)   ;;  %v3241_v16 = vld [vmem:[#allocation4 + $0xd8] sm:$0xff] (!%p4182_p8)  ;;  %v3216_v32 = vld [vmem:[#allocation4 + $0x10] sm:$0xff] (!%p4182_p8) }
 0x6bc   : > { %3134 = vst [vmem:[#allocation5 + $0xa0] sm:$0xff] %v3102_v36  ;;  %v3103_v9 = vadd.f32 %v3038_v58, %v2886_v47  ;;  %3692 = vmatprep.subr.bf16.mxu0 (!%p4182_p8), %v5028_v8  ;;  %4531 = vmatprep.subr.bf16.mxu1 (!%p4182_p8), %v5028_v8  ;;  %v5034_v47 = vld [vmem:[#allocation17 + $0x34] ss:$8 sps:$4 sm:$0xff] (!%p4182_p8)   ;;  %v5037_v58 = vld [vmem:[#allocation17 + $0x44] ss:$8 sps:$4 sm:$0xff] (!%p4182_p8)  }
 0x6bd   : > { %3137 = vst [vmem:[#allocation5 + $0xb8] sm:$0xff] %v3105_v15  ;;  %v3217_v36 = vld [vmem:[#allocation4 + $0x18] sm:$0xff] (!%p4182_p8) }
 0x6be   : > { %3135 = vst [vmem:[#allocation5 + $0xa8] sm:$0xff] %v3103_v9  ;;  %3693 = vmatpush1.bf16.msra.mxu0 (!%p4182_p8), %v5030_v39  ;;  %4547 = vmatpush1.bf16.msra.mxu1 (!%p4182_p8), %v5030_v39  ;;  %v5036_v15 = vld [vmem:[#allocation17 + $0x30] ss:$8 sps:$4 sm:$0xff] (!%p4182_p8)   ;;  %v3199_v39 = vld [vmem:[#allocation5 + $0x88] sm:$0xff] (!%p4182_p8) }
 0x6bf   : > { %3253 = vperm.xlu1 (!%p4182_p8), %5024, %v3215_v4   ;;  %3248 = vperm.xlu0 (!%p4182_p8), %5023, %v3214_v19   ;;  %v3224_v9 = vld [vmem:[#allocation4 + $0x50] sm:$0xff] (!%p4182_p8) }
 0x6c0   : > { %v4492_v11 = vpop.f32.mrb[56].mxu1  ;;  %3694 = vmatprep.subr.bf16.mxu0 (!%p4182_p8), %v5031_v59  ;;  %4532 = vmatprep.subr.bf16.mxu1 (!%p4182_p8), %v5031_v59 }
 0x6c1   : > { %v3108_v12 = vadd.f32 %v4492_v11, %v2891_v25  ;;  %v3051_v31 = vpop.f32.mrb[57].mxu1  ;;  %v5042_v25 = vld [vmem:[#allocation17 + $0x50] ss:$8 sps:$4 sm:$0xff] (!%p4182_p8)   ;;  %v3242_v11 = vld [vmem:[#allocation4 + $0xe0] sm:$0xff] (!%p4182_p8) }
 0x6c2   : > { %v3106_v28 = vadd.f32 %v3051_v31, %v2889_v40  ;;  %v4493_v49 = vpop.f32.mrb[58].mxu1  ;;  %3695 = vmatpush1.bf16.msra.mxu0 (!%p4182_p8), %v5033_v50  ;;  %4548 = vmatpush1.bf16.msra.mxu1 (!%p4182_p8), %v5033_v50  ;;  %v3243_v40 = vld [vmem:[#allocation4 + $0xe8] sm:$0xff] (!%p4182_p8)  ;;  %v3218_v31 = vld [vmem:[#allocation4 + $0x20] sm:$0xff] (!%p4182_p8) }
 0x6c3   : > { %3140 = vst [vmem:[#allocation5 + $0xd0] sm:$0xff] %v3108_v12  ;;  %v3109_v38 = vadd.f32 %v4493_v49, %v2892_v17  ;;  %v3054_v37 = vpop.f32.mrb[59].mxu1  ;;  %3293 = vperm.xlu1 (!%p4182_p8), %5024, %v3223_v42   ;;  %3288 = vperm.xlu0 (!%p4182_p8), %5023, %v3222_v26   ;;  %v5046_v17 = vld [vmem:[#allocation17 + $0x74] ss:$8 sps:$4 sm:$0xff] (!%p4182_p8)   ;;  %v3219_v12 = vld [vmem:[#allocation4 + $0x28] sm:$0xff] (!%p4182_p8)  ;;  %v3226_v49 = vld [vmem:[#allocation4 + $0x60] sm:$0xff] (!%p4182_p8) }
 0x6c4   : > { %3138 = vst [vmem:[#allocation5 + $0xc0] sm:$0xff] %v3106_v28  ;;  %v3107_v34 = vadd.f32 %v3054_v37, %v2890_v5  ;;  %3696 = vmatprep.subr.bf16.mxu0 (!%p4182_p8), %v5034_v47  ;;  %4533 = vmatprep.subr.bf16.mxu1 (!%p4182_p8), %v5034_v47  ;;  %v5049_v5 = vld [vmem:[#allocation17 + $0x84] ss:$8 sps:$4 sm:$0xff] (!%p4182_p8)   ;;  %v5052_v37 = vld [vmem:[#allocation17 + $0x94] ss:$8 sps:$4 sm:$0xff] (!%p4182_p8)  }
 0x6c5   : > { %3141 = vst [vmem:[#allocation5 + $0xd8] sm:$0xff] %v3109_v38  ;;  %v3227_v28 = vld [vmem:[#allocation4 + $0x68] sm:$0xff] (!%p4182_p8) }
 0x6c6   : > { %3139 = vst [vmem:[#allocation5 + $0xc8] sm:$0xff] %v3107_v34  ;;  %3697 = vmatpush1.bf16.msra.mxu0 (!%p4182_p8), %v5036_v15  ;;  %4549 = vmatpush1.bf16.msra.mxu1 (!%p4182_p8), %v5036_v15  ;;  %v5051_v38 = vld [vmem:[#allocation17 + $0x80] ss:$8 sps:$4 sm:$0xff] (!%p4182_p8)   ;;  %v5054_v34 = vld [vmem:[#allocation17 + $0x90] ss:$8 sps:$4 sm:$0xff] (!%p4182_p8)  }
 0x6c7   : > { %3343 = vperm.xlu1 (!%p4182_p8), %5024, %v3233_v14   ;;  %3338 = vperm.xlu0 (!%p4182_p8), %5023, %v3232_v0   ;;  %v3198_v0 = vld [vmem:[#allocation5 + $0x80] sm:$0xff] (!%p4182_p8) }
 0x6c8   : > { %v4496_v51 = vpop.f32.mrb[60].mxu1  ;;  %3181 = sbr.rel (%p4182_p8) target bundleno = 2141 (0x85d), region = 100  ;;  %3698 = vmatprep.subr.bf16.mxu0 (!%p4182_p8), %v5037_v58  ;;  %4534 = vmatprep.subr.bf16.mxu1 (!%p4182_p8), %v5037_v58  ;;  %v3183_v58 = vld [vmem:[#allocation5 + $0x8] sm:$0xff] (!%p4182_p8) }
 0x6c9   : > { %v3112_v62 = vadd.f32 %v4496_v51, %v2895_v46  ;;  %v3067_v30 = vpop.f32.mrb[61].mxu1  ;;  %v5058_v46 = vld [vmem:[#allocation17 + $0xb4] ss:$8 sps:$4 sm:$0xff] (!%p4182_p8)  }
 0x6ca   : > { %v3110_v22 = vadd.f32 %v3067_v30, %v2893_v23  ;;  %v4497_v3 = vpop.f32.mrb[62].mxu1  ;;  %3699 = vmatpush1.bf16.msra.mxu0 (!%p4182_p8), %v5039_v35  ;;  %4550 = vmatpush1.bf16.msra.mxu1 (!%p4182_p8), %v5039_v35  ;;  %v3221_v23 = vld [vmem:[#allocation4 + $0x38] sm:$0xff] (!%p4182_p8)  ;;  %v3220_v51 = vld [vmem:[#allocation4 + $0x30] sm:$0xff] (!%p4182_p8) }
 0x6cb   : > { %3144 = vst [vmem:[#allocation5 + $0xf0] sm:$0xff] %v3112_v62  ;;  %v3113_v27 = vadd.f32 %v4497_v3, %v2896_v13  ;;  %v3070_v60 = vpop.f32.mrb[63].mxu1  ;;  %3383 = vperm.xlu1 (!%p4182_p8), %5024, %v3241_v16   ;;  %3378 = vperm.xlu0 (!%p4182_p8), %5023, %v3240_v33   ;;  %v5060_v13 = vld [vmem:[#allocation17 + $0xb0] ss:$8 sps:$4 sm:$0xff] (!%p4182_p8)   ;;  %v5061_v62 = vld [vmem:[#allocation17 + $0xc4] ss:$8 sps:$4 sm:$0xff] (!%p4182_p8)  }
 0x6cc   : > { %3142 = vst [vmem:[#allocation5 + $0xe0] sm:$0xff] %v3110_v22  ;;  %v3111_v29 = vadd.f32 %v3070_v60, %v2894_v6  ;;  %3700 = vmatprep.subr.bf16.mxu0 (!%p4182_p8), %v5040_v1  ;;  %4535 = vmatprep.subr.bf16.mxu1 (!%p4182_p8), %v5040_v1  ;;  %v3229_v30 = vld [vmem:[#allocation4 + $0x78] sm:$0xff] (!%p4182_p8)  ;;  %v5063_v6 = vld [vmem:[#allocation17 + $0xc0] ss:$8 sps:$4 sm:$0xff] (!%p4182_p8)  }
 0x6cd   : > { %3145 = vst [vmem:[#allocation5 + $0xf8] sm:$0xff] %v3113_v27  ;;  %v5064_v22 = vld [vmem:[#allocation17 + $0xd4] ss:$8 sps:$4 sm:$0xff] (!%p4182_p8)   ;;  %v5066_v3 = vld [vmem:[#allocation17 + $0xd0] ss:$8 sps:$4 sm:$0xff] (!%p4182_p8)   ;;  %v3206_v21 = vld [vmem:[#allocation5 + $0xc0] sm:$0xff] (!%p4182_p8) }
 0x6ce   : > { %3143 = vst [vmem:[#allocation5 + $0xe8] sm:$0xff] %v3111_v29  ;;  %3701 = vmatpush1.bf16.msra.mxu0 (!%p4182_p8), %v5042_v25  ;;  %4551 = vmatpush1.bf16.msra.mxu1 (!%p4182_p8), %v5042_v25  ;;  %v5067_v27 = vld [vmem:[#allocation17 + $0xe4] ss:$8 sps:$4 sm:$0xff] (!%p4182_p8)   ;;  %v5069_v60 = vld [vmem:[#allocation17 + $0xe0] ss:$8 sps:$4 sm:$0xff] (!%p4182_p8)  }
 0x6cf   : > { %3263 = vperm.xlu1 %5024, %v3217_v36   ;;  %3258 = vperm.xlu0 %5023, %v3216_v32   ;;  %v5070_v29 = vld [vmem:[#allocation17 + $0xf4] ss:$8 sps:$4 sm:$0xff]   ;;  %v3207_v8 = vld [vmem:[#allocation5 + $0xc8] sm:$0xff] }
 0x6d0   : > { %3702 = vmatprep.subr.bf16.mxu0 %v5043_v44  ;;  %4536 = vmatprep.subr.bf16.mxu1 %v5043_v44 }
 0x6d2   : > { %3703 = vmatpush1.bf16.msra.mxu0 %v5045_v2  ;;  %4552 = vmatpush1.bf16.msra.mxu1 %v5045_v2  ;;  %v3190_v2 = vld [vmem:[#allocation5 + $0x40] sm:$0xff] }
 0x6d3   : > { %3303 = vperm.xlu1 %5024, %v3225_v10   ;;  %3298 = vperm.xlu0 %5023, %v3224_v9   ;;  %v3182_v9 = vld [vmem:[#allocation5] sm:$0xff] }
 0x6d4   : > { %3704 = vmatprep.subr.bf16.mxu0 %v5046_v17  ;;  %4537 = vmatprep.subr.bf16.mxu1 %v5046_v17 }
 0x6d6   : > { %3705 = vmatpush1.bf16.msra.mxu0 %v5048_v45  ;;  %4553 = vmatpush1.bf16.msra.mxu1 %v5048_v45 }
 0x6d7   : > { %3353 = vperm.xlu1 %5024, %v3235_v7   ;;  %3348 = vperm.xlu0 %5023, %v3234_v55  }
 0x6d8   : > { %3706 = vmatprep.subr.bf16.mxu0 %v5049_v5  ;;  %4538 = vmatprep.subr.bf16.mxu1 %v5049_v5 }
 0x6da   : > { %3707 = vmatpush1.bf16.msra.mxu0 %v5051_v38  ;;  %4554 = vmatpush1.bf16.msra.mxu1 %v5051_v38  ;;  %v3201_v38 = vld [vmem:[#allocation5 + $0x98] sm:$0xff] }
 0x6db   : > { %3393 = vperm.xlu1 %5024, %v3243_v40   ;;  %3388 = vperm.xlu0 %5023, %v3242_v11   ;;  %v3191_v11 = vld [vmem:[#allocation5 + $0x48] sm:$0xff] }
 0x6dc   : > { %3708 = vmatprep.subr.bf16.mxu0 %v5052_v37  ;;  %4539 = vmatprep.subr.bf16.mxu1 %v5052_v37  ;;  %v3200_v37 = vld [vmem:[#allocation5 + $0x90] sm:$0xff] }
 0x6de   : > { %3709 = vmatpush1.bf16.msra.mxu0 %v5054_v34  ;;  %4555 = vmatpush1.bf16.msra.mxu1 %v5054_v34 }
 0x6df   : > { %3273 = vperm.xlu1 %5024, %v3219_v12   ;;  %3268 = vperm.xlu0 %5023, %v3218_v31  }
 0x6e0   : > { %3710 = vmatprep.subr.bf16.mxu0 %v5055_v41  ;;  %4540 = vmatprep.subr.bf16.mxu1 %v5055_v41 }
 0x6e2   : > { %3711 = vmatpush1.bf16.msra.mxu0 %v5057_v48  ;;  %4556 = vmatpush1.bf16.msra.mxu1 %v5057_v48 }
 0x6e3   : > { %3313 = vperm.xlu1 %5024, %v3227_v28   ;;  %3308 = vperm.xlu0 %5023, %v3226_v49  }
 0x6e4   : > { %3712 = vmatprep.subr.bf16.mxu0 %v5058_v46  ;;  %4541 = vmatprep.subr.bf16.mxu1 %v5058_v46  ;;  %v3209_v46 = vld [vmem:[#allocation5 + $0xd8] sm:$0xff] }
 0x6e6   : > { %3713 = vmatpush1.bf16.msra.mxu0 %v5060_v13  ;;  %4557 = vmatpush1.bf16.msra.mxu1 %v5060_v13 }
 0x6e7   : > { %3363 = vperm.xlu1 %5024, %v3237_v53   ;;  %3358 = vperm.xlu0 %5023, %v3236_v56  }
 0x6e8   : > { %3714 = vmatprep.subr.bf16.mxu0 %v5061_v62  ;;  %4542 = vmatprep.subr.bf16.mxu1 %v5061_v62 }
 0x6ea   : > { %3715 = vmatpush1.bf16.msra.mxu0 %v5063_v6  ;;  %4558 = vmatpush1.bf16.msra.mxu1 %v5063_v6 }
 0x6eb   : > { %3403 = vperm.xlu1 %5024, %v3245_v63   ;;  %3398 = vperm.xlu0 %5023, %v3244_v61  }
 0x6ec   : > { %3716 = vmatprep.subr.bf16.mxu0 %v5064_v22  ;;  %4543 = vmatprep.subr.bf16.mxu1 %v5064_v22 }
 0x6ee   : > { %3717 = vmatpush1.bf16.msra.mxu0 %v5066_v3  ;;  %4559 = vmatpush1.bf16.msra.mxu1 %v5066_v3  ;;  %v3185_v3 = vld [vmem:[#allocation5 + $0x18] sm:$0xff] }
 0x6ef   : > { %3283 = vperm.xlu1 %5024, %v3221_v23   ;;  %3278 = vperm.xlu0 %5023, %v3220_v51   ;;  %v3208_v23 = vld [vmem:[#allocation5 + $0xd0] sm:$0xff] }
 0x6f0   : > { %3718 = vmatprep.subr.bf16.mxu0 %v5067_v27  ;;  %4544 = vmatprep.subr.bf16.mxu1 %v5067_v27  ;;  %v3184_v27 = vld [vmem:[#allocation5 + $0x10] sm:$0xff] }
 0x6f2   : > { %3719 = vmatpush1.bf16.msra.mxu0 %v5069_v60  ;;  %4560 = vmatpush1.bf16.msra.mxu1 %v5069_v60 }
 0x6f3   : > { %3323 = vperm.xlu1 %5024, %v3229_v30   ;;  %3318 = vperm.xlu0 %5023, %v3228_v57  }
 0x6f4   : > { %3720 = vmatprep.subr.bf16.mxu0 %v5070_v29  ;;  %4545 = vmatprep.subr.bf16.mxu1 %v5070_v29 }
 0x6f6   : > { %3721 = vmatpush1.bf16.msra.mxu0 %v5072_v43  ;;  %4561 = vmatpush1.bf16.msra.mxu1 %v5072_v43 }
 0x736   : > { %v3369_v24 = vpop.permute.xlu1 %3368  ;;  %v3329_v52 = vpop.permute.xlu0 %3328 }
 0x737   : > { %5073 = vrcp.f32 %v3369_v24 }
 0x738   : > { %5075 = vrcp.f32 %v3329_v52 }
 0x73a   : > { %v3374_v20 = vpop.permute.xlu1 %3373  ;;  %v3334_v54 = vpop.permute.xlu0 %3333 }
 0x73b   : > { %5077 = vrcp.f32 %v3374_v20 }
 0x73c   : > { %5079 = vrcp.f32 %v3334_v54 }
 0x73e   : > { %v3254_v4 = vpop.permute.xlu1 %3253  ;;  %v3249_v19 = vpop.permute.xlu0 %3248 }
 0x73f   : > { %5081 = vrcp.f32 %v3254_v4  ;;  %v3193_v4 = vld [vmem:[#allocation5 + $0x58] sm:$0xff] }
 0x740   : > { %5083 = vrcp.f32 %v3249_v19  ;;  %v3192_v19 = vld [vmem:[#allocation5 + $0x50] sm:$0xff] }
 0x741   : > { %v5074_v18 = vpop.eup %5073 }
 0x742   : > { %v3294_v42 = vpop.permute.xlu1 %3293  ;;  %v3289_v26 = vpop.permute.xlu0 %3288  ;;  %v3455_v47 = vmul.f32 %v5074_v18, %v3206_v21 }
 0x743   : > { %5085 = vrcp.f32 %v3294_v42  ;;  %v5076_v14 = vpop.eup %5075 }
 0x744   : > { %5087 = vrcp.f32 %v3289_v26  ;;  %v3439_v32 = vmul.f32 %v5076_v14, %v3198_v0 }
 0x745   : > { %v5078_v59 = vpop.eup %5077 }
 0x746   : > { %v5080_v16 = vpop.eup %5079  ;;  %v3344_v33 = vpop.permute.xlu1 %3343  ;;  %v3457_v36 = vmul.f32 %v5078_v59, %v3207_v8  ;;  %v3202_v59 = vld [vmem:[#allocation5 + $0xa0] sm:$0xff] }
 0x747   : > { %v3339_v50 = vpop.permute.xlu0 %3338  ;;  %5089 = vrcp.f32 %v3344_v33  ;;  %v3441_v15 = vmul.f32 %v5080_v16, %v3199_v39  ;;  %v3203_v39 = vld [vmem:[#allocation5 + $0xa8] sm:$0xff] }
 0x748   : > { %5091 = vrcp.f32 %v3339_v50  ;;  %v3479_v10 = vpack.c.bf16 %v3457_v36, %v3455_v47 }
 0x749   : > { %v5082_v35 = vpop.eup %5081  ;;  %v3471_v1 = vpack.c.bf16 %v3441_v15, %v3439_v32 }
 0x74a   : > { %v5084_v7 = vpop.eup %5083  ;;  %v3384_v55 = vpop.permute.xlu1 %3383  ;;  %3762 = vmatprep.mubr.bf16.mxu1 %v3479_v10  ;;  %v3409_v44 = vmul.f32 %v5082_v35, %v3183_v58  ;;  %v3211_v58 = vld [vmem:[#allocation5 + $0xe8] sm:$0xff]  ;;  %v3210_v10 = vld [vmem:[#allocation5 + $0xe0] sm:$0xff] }
 0x74b   : > { %v3379_v25 = vpop.permute.xlu0 %3378  ;;  %5093 = vrcp.f32 %v3384_v55  ;;  %3722 = vmatprep.mubr.bf16.mxu0 %v3471_v1  ;;  %v3407_v40 = vmul.f32 %v5084_v7, %v3182_v9 }
 0x74c   : > { %5095 = vrcp.f32 %v3379_v25 }
 0x74d   : > { %v5086_v17 = vpop.eup %5085  ;;  %v3470_v12 = vpack.c.bf16 %v3409_v44, %v3407_v40  ;;  %v3187_v40 = vld [vmem:[#allocation5 + $0x28] sm:$0xff] }
 0x74e   : > { %v5088_v31 = vpop.eup %5087  ;;  %v3264_v45 = vpop.permute.xlu1 %3263  ;;  %v3425_v28 = vmul.f32 %v5086_v17, %v3191_v11  ;;  %v3186_v11 = vld [vmem:[#allocation5 + $0x20] sm:$0xff] }
 0x74f   : > { %v3259_v5 = vpop.permute.xlu0 %3258  ;;  %5097 = vrcp.f32 %v3264_v45  ;;  %3723 = vmatmul.mubr.bf16.vlgmr.msra.gmra.mrb[0].mxu0 %v3470_v12  ;;  %v3423_v49 = vmul.f32 %v5088_v31, %v3190_v2 }
 0x750   : > { %5099 = vrcp.f32 %v3259_v5 }
 0x751   : > { %v5090_v53 = vpop.eup %5089  ;;  %v3478_v56 = vpack.c.bf16 %v3425_v28, %v3423_v49  ;;  %v3195_v49 = vld [vmem:[#allocation5 + $0x68] sm:$0xff] }
 0x752   : > { %v5092_v34 = vpop.eup %5091  ;;  %v3304_v41 = vpop.permute.xlu1 %3303  ;;  %v3445_v61 = vmul.f32 %v5090_v53, %v3201_v38  ;;  %v3194_v38 = vld [vmem:[#allocation5 + $0x60] sm:$0xff] }
 0x753   : > { %v3299_v63 = vpop.permute.xlu0 %3298  ;;  %5101 = vrcp.f32 %v3304_v41  ;;  %3763 = vmatmul.mubr.bf16.vlgmr.msra.gmra.mrb[0].mxu1 %v3478_v56  ;;  %v3443_v48 = vmul.f32 %v5092_v34, %v3200_v37 }
 0x754   : > { %5103 = vrcp.f32 %v3299_v63 }
 0x755   : > { %v5094_v51 = vpop.eup %5093  ;;  %v3473_v13 = vpack.c.bf16 %v3445_v61, %v3443_v48  ;;  %v3205_v48 = vld [vmem:[#allocation5 + $0xb8] sm:$0xff] }
 0x756   : > { %v5096_v62 = vpop.eup %5095  ;;  %v3354_v30 = vpop.permute.xlu1 %3353  ;;  %v3461_v6 = vmul.f32 %v5094_v51, %v3209_v46  ;;  %v3204_v46 = vld [vmem:[#allocation5 + $0xb0] sm:$0xff] }
 0x757   : > { %v3349_v57 = vpop.permute.xlu0 %3348  ;;  %5105 = vrcp.f32 %v3354_v30  ;;  %3732 = vmatprep.mubr.bf16.mxu0 %v3473_v13  ;;  %v3459_v22 = vmul.f32 %v5096_v62, %v3208_v23 }
 0x758   : > { %5107 = vrcp.f32 %v3349_v57 }
 0x759   : > { %v5098_v60 = vpop.eup %5097  ;;  %v3481_v29 = vpack.c.bf16 %v3461_v6, %v3459_v22  ;;  %v3213_v22 = vld [vmem:[#allocation5 + $0xf8] sm:$0xff] }
 0x75a   : > { %v5100_v43 = vpop.eup %5099  ;;  %v3394_v24 = vpop.permute.xlu1 %3393  ;;  %v3413_v20 = vmul.f32 %v5098_v60, %v3185_v3  ;;  %v3212_v3 = vld [vmem:[#allocation5 + $0xf0] sm:$0xff] }
 0x75b   : > { %v3389_v52 = vpop.permute.xlu0 %3388  ;;  %5109 = vrcp.f32 %v3394_v24  ;;  %3772 = vmatprep.mubr.bf16.mxu1 %v3481_v29  ;;  %v3411_v54 = vmul.f32 %v5100_v43, %v3184_v27 }
 0x75c   : > { %5111 = vrcp.f32 %v3389_v52  ;;  %v3189_v52 = vld [vmem:[#allocation5 + $0x38] sm:$0xff] }
 0x75d   : > { %v5102_v42 = vpop.eup %5101  ;;  %v3472_v26 = vpack.c.bf16 %v3413_v20, %v3411_v54  ;;  %v3188_v20 = vld [vmem:[#allocation5 + $0x30] sm:$0xff] }
 0x75e   : > { %v5104_v18 = vpop.eup %5103  ;;  %v3274_v21 = vpop.permute.xlu1 %3273  ;;  %v3429_v14 = vmul.f32 %v5102_v42, %v3193_v4 }
 0x75f   : > { %v3269_v8 = vpop.permute.xlu0 %3268  ;;  %5113 = vrcp.f32 %v3274_v21  ;;  %3733 = vmatmul.mubr.bf16.gmra.mrb[4].mxu0 %v3472_v26  ;;  %v3427_v0 = vmul.f32 %v5104_v18, %v3192_v19  ;;  %v3197_v18 = vld [vmem:[#allocation5 + $0x78] sm:$0xff]  ;;  %v3196_v21 = vld [vmem:[#allocation5 + $0x70] sm:$0xff] }
 0x760   : > { %5115 = vrcp.f32 %v3269_v8 }
 0x761   : > { %v5106_v16 = vpop.eup %5105  ;;  %v3480_v33 = vpack.c.bf16 %v3429_v14, %v3427_v0 }
 0x762   : > { %v5108_v50 = vpop.eup %5107  ;;  %v3314_v47 = vpop.permute.xlu1 %3313  ;;  %v3449_v32 = vmul.f32 %v5106_v16, %v3203_v39 }
 0x763   : > { %v3309_v36 = vpop.permute.xlu0 %3308  ;;  %5117 = vrcp.f32 %v3314_v47  ;;  %3773 = vmatmul.mubr.bf16.gmra.mrb[4].mxu1 %v3480_v33  ;;  %v3447_v15 = vmul.f32 %v5108_v50, %v3202_v59  ;;  %v3520_v33 = vlaneseq }
 0x764   : > { %5119 = vrcp.f32 %v3309_v36  ;;  %v3518_v36 = vld [vmem:[%s7441_s17] sm:$0x3] }
 0x765   : > { %v5110_v9 = vpop.eup %5109  ;;  %v3475_v35 = vpack.c.bf16 %v3449_v32, %v3447_v15  ;;  %v3521_v50 = vshrl.u32 %v3520_v33, 7 }
 0x766   : > { %v5112_v1 = vpop.eup %5111  ;;  %v3364_v7 = vpop.permute.xlu1 %3363  ;;  %v3465_v25 = vmul.f32 %v5110_v9, %v3211_v58 }
 0x767   : > { %v3359_v55 = vpop.permute.xlu0 %3358  ;;  %5121 = vrcp.f32 %v3364_v7  ;;  %3742 = vmatprep.mubr.bf16.mxu0 %v3475_v35  ;;  %v3463_v44 = vmul.f32 %v5112_v1, %v3210_v10  ;;  %v3522_v47 = vsub.s32 0, %v3521_v50  ;;  %v3526_v32 = vsub.s32 1, %v3521_v50 }
 0x768   : > { %5123 = vrcp.f32 %v3359_v55 }
 0x769   : > { %v5114_v2 = vpop.eup %5113  ;;  %v3483_v17 = vpack.c.bf16 %v3465_v25, %v3463_v44  ;;  %v7019_v15 = vrot.slane %v3518_v36, %v3522_v47  ;;  %v7021_v58 = vrot.slane %v3518_v36, %v3526_v32 }
 0x76a   : > { %v5116_v12 = vpop.eup %5115  ;;  %v3404_v31 = vpop.permute.xlu1 %3403  ;;  %v3417_v5 = vmul.f32 %v5114_v2, %v3187_v40 }
 0x76b   : > { %v3399_v45 = vpop.permute.xlu0 %3398  ;;  %5125 = vrcp.f32 %v3404_v31  ;;  %3782 = vmatprep.mubr.bf16.mxu1 %v3483_v17  ;;  %v3415_v28 = vmul.f32 %v5116_v12, %v3186_v11 }
 0x76c   : > { %5127 = vrcp.f32 %v3399_v45 }
 0x76d   : > { %v5118_v37 = vpop.eup %5117  ;;  %v3474_v53 = vpack.c.bf16 %v3417_v5, %v3415_v28 }
 0x76e   : > { %v5120_v56 = vpop.eup %5119  ;;  %v3284_v34 = vpop.permute.xlu1 %3283  ;;  %v3433_v63 = vmul.f32 %v5118_v37, %v3195_v49 }
 0x76f   : > { %v3279_v41 = vpop.permute.xlu0 %3278  ;;  %5129 = vrcp.f32 %v3284_v34  ;;  %3743 = vmatmul.mubr.bf16.gmra.mrb[8].mxu0 %v3474_v53  ;;  %v3431_v61 = vmul.f32 %v5120_v56, %v3194_v38 }
 0x770   : > { %5131 = vrcp.f32 %v3279_v41 }
 0x771   : > { %v5122_v23 = vpop.eup %5121  ;;  %v3482_v51 = vpack.c.bf16 %v3433_v63, %v3431_v61 }
 0x772   : > { %v5124_v13 = vpop.eup %5123  ;;  %v3324_v62 = vpop.permute.xlu1 %3323  ;;  %v3453_v57 = vmul.f32 %v5122_v23, %v3205_v48 }
 0x773   : > { %v3319_v30 = vpop.permute.xlu0 %3318  ;;  %5133 = vrcp.f32 %v3324_v62  ;;  %3783 = vmatmul.mubr.bf16.gmra.mrb[8].mxu1 %v3482_v51  ;;  %v3451_v6 = vmul.f32 %v5124_v13, %v3204_v46 }
 0x774   : > { %5135 = vrcp.f32 %v3319_v30 }
 0x775   : > { %v5126_v27 = vpop.eup %5125  ;;  %v3477_v60 = vpack.c.bf16 %v3453_v57, %v3451_v6 }
 0x776   : > { %v5128_v29 = vpop.eup %5127  ;;  %v3469_v43 = vmul.f32 %v5126_v27, %v3213_v22 }
 0x777   : > { %3752 = vmatprep.mubr.bf16.mxu0 %v3477_v60  ;;  %v3467_v24 = vmul.f32 %v5128_v29, %v3212_v3 }
 0x779   : > { %v5130_v54 = vpop.eup %5129  ;;  %v3485_v4 = vpack.c.bf16 %v3469_v43, %v3467_v24 }
 0x77a   : > { %v5132_v19 = vpop.eup %5131  ;;  %v3421_v42 = vmul.f32 %v5130_v54, %v3189_v52 }
 0x77b   : > { %3792 = vmatprep.mubr.bf16.mxu1 %v3485_v4  ;;  %v3419_v26 = vmul.f32 %v5132_v19, %v3188_v20 }
 0x77d   : > { %v5134_v8 = vpop.eup %5133  ;;  %v3476_v14 = vpack.c.bf16 %v3421_v42, %v3419_v26 }
 0x77e   : > { %v5136_v0 = vpop.eup %5135  ;;  %v3437_v39 = vmul.f32 %v5134_v8, %v3197_v18 }
 0x77f   : > { %3753 = vmatmul.mubr.bf16.gmra.mrb[12].mxu0 %v3476_v14  ;;  %v3435_v59 = vmul.f32 %v5136_v0, %v3196_v21 }
 0x781   : > { %v3484_v16 = vpack.c.bf16 %v3437_v39, %v3435_v59 }
 0x783   : > { %3793 = vmatmul.mubr.bf16.gmra.mrb[12].mxu1 %v3484_v16 }
 0x822   : > { %v3724_v10 = vpop.f32.mrb[0].mxu0 }
 0x823   : > { %v3725_v9 = vadd.f32 %v3724_v10, %v7019_v15  ;;  %v3726_v35 = vpop.f32.mrb[1].mxu0 }
 0x824   : > { %v3727_v1 = vadd.f32 %v3726_v35, %v7021_v58  ;;  %v3728_v7 = vpop.f32.mrb[2].mxu0 }
 0x825   : > { %3803 = vst [vmem:[%s6017_s7] sm:$0xff] %v3725_v9  ;;  %v3729_v55 = vadd.f32 %v3728_v7, %v7019_v15  ;;  %v3730_v25 = vpop.f32.mrb[3].mxu0 }
 0x826   : > { %3804 = vst [vmem:[%s6017_s7 + $0x8] sm:$0xff] %v3727_v1  ;;  %v3731_v44 = vadd.f32 %v3730_v25, %v7021_v58  ;;  %v3764_v40 = vpop.f32.mrb[0].mxu1 }
 0x827   : > { %3805 = vst [vmem:[%s6017_s7 + $0x10] sm:$0xff] %v3729_v55  ;;  %v3765_v11 = vadd.f32 %v3764_v40, %v7019_v15  ;;  %v3766_v2 = vpop.f32.mrb[1].mxu1 }
 0x828   : > { %3806 = vst [vmem:[%s6017_s7 + $0x18] sm:$0xff] %v3731_v44  ;;  %v3767_v17 = vadd.f32 %v3766_v2, %v7021_v58  ;;  %v3768_v12 = vpop.f32.mrb[2].mxu1 }
 0x829   : > { %3819 = vst [vmem:[%s6017_s7 + $0x80] sm:$0xff] %v3765_v11  ;;  %v3769_v31 = vadd.f32 %v3768_v12, %v7019_v15  ;;  %v3770_v45 = vpop.f32.mrb[3].mxu1 }
 0x82a   : > { %3820 = vst [vmem:[%s6017_s7 + $0x88] sm:$0xff] %v3767_v17  ;;  %v3771_v5 = vadd.f32 %v3770_v45, %v7021_v58 }
 0x82b   : > { %3821 = vst [vmem:[%s6017_s7 + $0x90] sm:$0xff] %v3769_v31 }
 0x82c   : > { %3822 = vst [vmem:[%s6017_s7 + $0x98] sm:$0xff] %v3771_v5 }
 0x832   : > { %v3734_v28 = vpop.f32.mrb[4].mxu0 }
 0x833   : > { %v3735_v49 = vadd.f32 %v3734_v28, %v7019_v15  ;;  %v3736_v38 = vpop.f32.mrb[5].mxu0 }
 0x834   : > { %v3737_v37 = vadd.f32 %v3736_v38, %v7021_v58  ;;  %v3738_v53 = vpop.f32.mrb[6].mxu0 }
 0x835   : > { %3807 = vst [vmem:[%s6017_s7 + $0x20] sm:$0xff] %v3735_v49  ;;  %v3739_v56 = vadd.f32 %v3738_v53, %v7019_v15  ;;  %v3740_v34 = vpop.f32.mrb[7].mxu0 }
 0x836   : > { %3808 = vst [vmem:[%s6017_s7 + $0x28] sm:$0xff] %v3737_v37  ;;  %v3741_v41 = vadd.f32 %v3740_v34, %v7021_v58  ;;  %v3774_v63 = vpop.f32.mrb[4].mxu1 }
 0x837   : > { %3809 = vst [vmem:[%s6017_s7 + $0x30] sm:$0xff] %v3739_v56  ;;  %v3775_v61 = vadd.f32 %v3774_v63, %v7019_v15  ;;  %v3776_v48 = vpop.f32.mrb[5].mxu1 }
 0x838   : > { %3810 = vst [vmem:[%s6017_s7 + $0x38] sm:$0xff] %v3741_v41  ;;  %v3777_v46 = vadd.f32 %v3776_v48, %v7021_v58  ;;  %v3778_v23 = vpop.f32.mrb[6].mxu1 }
 0x839   : > { %3823 = vst [vmem:[%s6017_s7 + $0xa0] sm:$0xff] %v3775_v61  ;;  %v3779_v51 = vadd.f32 %v3778_v23, %v7019_v15  ;;  %v3780_v13 = vpop.f32.mrb[7].mxu1 }
 0x83a   : > { %3824 = vst [vmem:[%s6017_s7 + $0xa8] sm:$0xff] %v3777_v46  ;;  %v3781_v62 = vadd.f32 %v3780_v13, %v7021_v58 }
 0x83b   : > { %3825 = vst [vmem:[%s6017_s7 + $0xb0] sm:$0xff] %v3779_v51 }
 0x83c   : > { %3826 = vst [vmem:[%s6017_s7 + $0xb8] sm:$0xff] %v3781_v62 }
 0x842   : > { %v3744_v30 = vpop.f32.mrb[8].mxu0 }
 0x843   : > { %v3745_v57 = vadd.f32 %v3744_v30, %v7019_v15  ;;  %v3746_v6 = vpop.f32.mrb[9].mxu0 }
 0x844   : > { %v3747_v22 = vadd.f32 %v3746_v6, %v7021_v58  ;;  %v3748_v3 = vpop.f32.mrb[10].mxu0 }
 0x845   : > { %3811 = vst [vmem:[%s6017_s7 + $0x40] sm:$0xff] %v3745_v57  ;;  %v3749_v27 = vadd.f32 %v3748_v3, %v7019_v15  ;;  %v3750_v60 = vpop.f32.mrb[11].mxu0 }
 0x846   : > { %3812 = vst [vmem:[%s6017_s7 + $0x48] sm:$0xff] %v3747_v22  ;;  %v3751_v29 = vadd.f32 %v3750_v60, %v7021_v58  ;;  %v3784_v43 = vpop.f32.mrb[8].mxu1 }
 0x847   : > { %3813 = vst [vmem:[%s6017_s7 + $0x50] sm:$0xff] %v3749_v27  ;;  %v3785_v24 = vadd.f32 %v3784_v43, %v7019_v15  ;;  %v3786_v52 = vpop.f32.mrb[9].mxu1 }
 0x848   : > { %3814 = vst [vmem:[%s6017_s7 + $0x58] sm:$0xff] %v3751_v29  ;;  %v3787_v20 = vadd.f32 %v3786_v52, %v7021_v58  ;;  %v3788_v54 = vpop.f32.mrb[10].mxu1 }
 0x849   : > { %3827 = vst [vmem:[%s6017_s7 + $0xc0] sm:$0xff] %v3785_v24  ;;  %v3789_v4 = vadd.f32 %v3788_v54, %v7019_v15  ;;  %v3790_v19 = vpop.f32.mrb[11].mxu1 }
 0x84a   : > { %3828 = vst [vmem:[%s6017_s7 + $0xc8] sm:$0xff] %v3787_v20  ;;  %v3791_v42 = vadd.f32 %v3790_v19, %v7021_v58 }
 0x84b   : > { %3829 = vst [vmem:[%s6017_s7 + $0xd0] sm:$0xff] %v3789_v4 }
 0x84c   : > { %3830 = vst [vmem:[%s6017_s7 + $0xd8] sm:$0xff] %v3791_v42 }
 0x852   : > { %v3754_v26 = vpop.f32.mrb[12].mxu0 }
 0x853   : > { %v3755_v18 = vadd.f32 %v3754_v26, %v7019_v15  ;;  %v3756_v21 = vpop.f32.mrb[13].mxu0 }
 0x854   : > { %v3757_v8 = vadd.f32 %v3756_v21, %v7021_v58  ;;  %v3758_v14 = vpop.f32.mrb[14].mxu0 }
 0x855   : > { %3815 = vst [vmem:[%s6017_s7 + $0x60] sm:$0xff] %v3755_v18  ;;  %v3759_v0 = vadd.f32 %v3758_v14, %v7019_v15  ;;  %v3760_v39 = vpop.f32.mrb[15].mxu0 }
 0x856   : > { %3816 = vst [vmem:[%s6017_s7 + $0x68] sm:$0xff] %v3757_v8  ;;  %v3761_v59 = vadd.f32 %v3760_v39, %v7021_v58  ;;  %v3794_v16 = vpop.f32.mrb[12].mxu1 }
 0x857   : > { %3817 = vst [vmem:[%s6017_s7 + $0x70] sm:$0xff] %v3759_v0  ;;  %v3795_v33 = vadd.f32 %v3794_v16, %v7019_v15  ;;  %v3796_v50 = vpop.f32.mrb[13].mxu1 }
 0x858   : > { %3818 = vst [vmem:[%s6017_s7 + $0x78] sm:$0xff] %v3761_v59  ;;  %v3797_v47 = vadd.f32 %v3796_v50, %v7021_v58  ;;  %v3798_v36 = vpop.f32.mrb[14].mxu1 }
 0x859   : > { %3831 = vst [vmem:[%s6017_s7 + $0xe0] sm:$0xff] %v3795_v33  ;;  %v3799_v32 = vadd.f32 %v3798_v36, %v7019_v15  ;;  %v3800_v10 = vpop.f32.mrb[15].mxu1 }
 0x85a   : > { %3832 = vst [vmem:[%s6017_s7 + $0xe8] sm:$0xff] %v3797_v47  ;;  %v3801_v9 = vadd.f32 %v3800_v10, %v7021_v58 }
 0x85b   : > { %3833 = vst [vmem:[%s6017_s7 + $0xf0] sm:$0xff] %v3799_v32 }
 0x85c   : > { %3834 = vst [vmem:[%s6017_s7 + $0xf8] sm:$0xff] %v3801_v9 }
 0x85d PF: > { %s7442_s24 = sld [smem:[#allocation28_spill]]  ;;  %s7443_s8 = sld [smem:[#allocation29_spill]] }
 0x85e   : > { %s7444_s2 = sld [smem:[#allocation35_spill]]  ;;  %s3852_s25 = sshll.u32 %s6017_s7, 4  ;;  %s7090_s25 = int_to_ptr.vmem [resolvable:$true] %s3852_s25 }
 0x85f   : > { %s7445_s20 = sld [smem:[#allocation85_spill]]  ;;  %s3836_s11 = scalar_lea.sflag [#allocation8], %s5988_s6 }
 0x860   : > { %s5339_s1 = scalar_lea.vmem %s7090_s25, 4096  ;;  %s5506_s13 = smov [#allocation18]  }
 0x861   : > { %p5340_p2 = scmp.ne.s32.totalorder %s7090_s25, %s5339_s1  ;;  %s5343_s7 = sshll.u32 %s5506_s13, 4  ;;  %s5344_s7 = int_to_ptr.vmem [resolvable:$false] %s5343_s7 }
 0x862   : > { %s5345_s5 = scalar_lea.vmem %s5344_s7, 8192  ;;  %p5346_p13 = scmp.lt.s32.totalorder %s7090_s25, %s5344_s7 }
 0x863   : > { %s4225_s23 = sshll.u32 %s7442_s24, 5  ;;  %s4218_s9 = sshll.u32 %s7443_s8, 6 }
 0x864   : > { %s3849_s30 = sadd.s32 %s4225_s23, %s4218_s9  ;;  %p7447_p11 = scmp.ne.s32.totalorder %s7444_s2, 0 }
 0x865   : > { %s4219_s14 = sshll.u32 %s3849_s30, 7  ;;  %s7446_s10 = smov %s7445_s20 }
 0x866   : > { %s7095_s0 = scalar_lea.hbm %s7445_s20, %s4219_s14  ;;  %p5341_p1 = pnand %p5340_p2, %p7447_p11 }
 0x867   : > { %p5347_p7 = scmp.lt.s32.totalorder %s5345_s5, %s5339_s1 }
 0x868   : > { %p5342_p0 = pneg %p5341_p1 }
 0x869   : > { %p5348_p10 = por %p5347_p7, %p5346_p13 }
 0x86b   : > { %p5349_p12 = pnand %p5348_p10, %p5342_p0 }
 0x86d   : > { %5352 = shalt.err (!%p5349_p12)
}
 0x86e   : > { %s5353_s19 = scalar_lea.hbm %s7095_s0, 4096  ;;  %s5357_s24 = scalar_lea.hbm %s7446_s10, 16384 }
 0x86f   : > { %p5354_p3 = scmp.ne.s32.totalorder %s7095_s0, %s5353_s19  ;;  %p5358_p5 = scmp.lt.u32.totalorder %s7095_s0, %s7446_s10 }
 0x870   : > { %p5359_p9 = scmp.lt.u32.totalorder %s5357_s24, %s5353_s19  ;;  %p5361_p2 = scmp.lt.u32.totalorder %s5353_s19, %s7095_s0 }
 0x871   : > { %p5355_p4 = pnand %p5354_p3, %p7447_p11 }
 0x872   : > { %p5360_p8 = por %p5359_p9, %p5358_p5 }
 0x873   : > { %p5356_p6 = pneg %p5355_p4 }
 0x874   : > { %p5362_p1 = por %p5361_p2, %p5360_p8 }
 0x876   : > { %p5363_p0 = pnand %p5362_p1, %p5356_p6 }
 0x878   : > { %5366 = shalt.err (!%p5363_p0)
}
 0x879   : > { %s5507_s9 = smov 256   ;;  %s5508_s30 = smov 16  }
 0x87a   : > { %4584 = dma.vmem_to_hbm [thread:$0]  (%p7447_p11), %s7090_s25, 4096, %s7095_s0, %s3836_s11, %s5507_s9, %s5507_s9, %s5508_s30  }
 0x87b PF: > { %s7448_s14 = sld [smem:[#allocation26_spill]]  ;;  %s7449_s3 = sld [smem:[#allocation39_spill]] }
 0x87c   : > { %p4622_p13 = scmp.ge.s32.totalorder %s5489_s29, 2 }
 0x881   : > { %s3867_s27 = sand.u32 1, %s7448_s14   ;;  %p7450_p7 = scmp.ne.s32.totalorder %s7449_s3, 0 }
 0x882   : > { %s3868_s20 = scalar_lea.sflag [#allocation8], %s3867_s27 }
 0x883   : > { %p4610_p10 = pnand %p4622_p13, %p7450_p7 }
 0x885   : > { %5436 = dma.done.wait (!%p4610_p10), %s3868_s20, 4096  }
 0x886   : > { %5438 = vsyncadd (!%p4610_p10), %s3868_s20, 4294963200  ;;  %s32_s29 = sadd.s32 1, %s5489_s29   ;;  %s7452_s17 = sld [smem:[#allocation24_spill]] }
 0x887   : > { %p7126_p12 = scmp.ge.s32.totalorder %s32_s29, 10   ;;  %s7453_s6 = sld [smem:[#allocation25_spill]] }
 0x888   : > { %s7454_s2 = smov %s7478_s18  ;;  %s7455_s24 = sld [smem:[#allocation30_spill]] }
 0x889   : > { %s7456_s27 = sld [smem:[#allocation36_spill]]  ;;  %s7457_s0 = sld [smem:[#allocation38_spill]] }
 0x88a   : > { %s7459_s19 = smov %s7454_s2  ;;  %s7460_s20 = smov %s5457_s21 }
 0x88b   : > { %s7461_s21 = smov %s5461_s22  ;;  %s7462_s22 = smov %s5903_s15 }
 0x88c   : > { %s7463_s23 = smov %s5477_s26  ;;  %s7464_s25 = smov %s5485_s28 }
 0x88d   : > { %s7458_s18 = smov %s7453_s6  ;;  %s7465_s26 = smov %s7468_s4 }
 0x88e   :  { %31 = sbr.rel (!%p7126_p12) target bundleno = 27 (0x1b), region = 157 }
 0x88f   : > { %s7466_s28 = smov %s7457_s0 }
 0x895   :  { %3873 = vsyncpa [#allocation7], 1 }
 0x896   :  { %3875 = vsyncpa [#allocation7 + $0x1], 1 }
 0x897   :  { %3876 = vsyncpa [#allocation10], 1 }
 0x898   :  { %3878 = vsyncpa [#allocation10 + $0x1], 1 }
 0x899   :  { %3879 = vsyncpa [#allocation13], 1 }
 0x89a   :  { %3880 = vsyncpa [#allocation16], 1 }
 0x89b   :  { %3881 = vsyncpa [#allocation8], 1 }
 0x89c   :  { %3883 = vsyncpa [#allocation8 + $0x1], 1 }

</bundles_post_ra>
